<compile_context>
chip_gen: v7x
topology: tpu7x:2x2x1
jax: 0.10.0
libtpu: 0.0.40
codegen_flags: <defaults>
</compile_context>

<pallas_src>
import functools

import jax
import jax.numpy as jnp
from jax import lax
from jax.experimental import pallas as pl
from jax.experimental.pallas import tpu as pltpu

K = 3  # kernel_size = (3, 3), padding = 1, stride = 1 ("same" conv)


# ------------------------------- Pallas kernel ------------------------------

def _convlstm_kernel(xh_ref, c_ref, wc_ref, w_ref, b_ref,
                     ht_ref, ct_ref,
                     xh32_ref, col_ref, acc_ref, *, H, Wp, Ch, Cio):
    Nq = H * Wp                       # padded-width output rows (q = y*Wp + x)
    KKCio = K * K * Cio               # true contraction depth (324)
    Kpad = col_ref.shape[1]           # contraction depth rounded to 128 (384)

    # Upcast the bf16 activation stream once so the nine shifted slices below
    # are plain 32-bit sublane loads (no bf16 sublane repacking).
    xh32_ref[...] = xh_ref[...].astype(jnp.float32)

    # im2col in VMEM: tap (ky, kx) of the 3x3 kernel is the contiguous
    # row-slice [ky*Wp + kx : ... + Nq] of the flat padded image; it lands in
    # bf16 lanes [t*Cio, (t+1)*Cio) of the slab.
    for ky in range(K):
        for kx in range(K):
            t = ky * K + kx
            col_ref[:, t * Cio:(t + 1) * Cio] = (
                xh32_ref[pl.ds(ky * Wp + kx, Nq), :].astype(jnp.bfloat16))
    if Kpad > KKCio:
        # Zero the padded contraction tail (its weight rows are zero too, but
        # uninitialized VMEM could be NaN and 0*NaN would poison the acc).
        col_ref[:, KKCio:] = jnp.zeros((Nq, Kpad - KKCio), jnp.bfloat16)

    # Single deep bf16 x bf16 matmul, f32 accumulation on the MXU.
    acc_ref[...] = jnp.dot(col_ref[...], w_ref[...],
                           preferred_element_type=jnp.float32)   # [Nq, 4*Ch]

    # Epilogue: consume one gate at a time (slice -> small transpose ->
    # activation) to keep the vreg working set low.  Gate math stays f32.
    c = c_ref[...]                                   # [Ch, Nq] f32

    def pre(g):                                      # [Ch, Nq] f32
        return acc_ref[:, g * Ch:(g + 1) * Ch].T

    ft = jax.nn.sigmoid(pre(1) + wc_ref[1] * c)
    ct = ft * c
    it = jax.nn.sigmoid(pre(0) + wc_ref[0] * c)
    gt = jnp.tanh(pre(3) + b_ref[...])               # bias only on the g-gate
    ct = ct + it * gt
    ot = jax.nn.sigmoid(pre(2) + wc_ref[2] * c)      # peephole uses c_{t-1}
    ht = ot * jnp.tanh(ct)

    ct_ref[...] = ct      # [Ch, Nq] lane-dense stores; the 2 padded width
    ht_ref[...] = ht      # columns per row are junk and stripped in the wrapper


# ------------------------------- wrapper -------------------------------------

def conv_lstm_cell(x, hidden_state, params):
    """Matches ConvLSTMCell.forward: returns (ht, (ht, ct)). NCHW in/out."""
    h, c = hidden_state
    B, Cin, H, W = x.shape
    Ch = h.shape[1]
    Hp, Wp = H + 2, W + 2
    Cio = Cin + Ch                     # concatenated input channels
    G = 4 * Ch                         # concatenated gate width (i|f|o|g)
    Nq = H * Wp                        # padded-width output rows per image
    Nf = Hp * Wp + 2                   # flat padded input rows (+2 tail zeros)
    KKCio = K * K * Cio                # im2col contraction depth
    Kpad = -(-KKCio // 128) * 128      # rounded to a full lane tile

    # --- activations: concat(x, h) on channels -> flat zero-padded NHWC, bf16
    xh = jnp.concatenate([x, h], axis=1)                    # [B, Cio, H, W]
    xh = jnp.transpose(xh, (0, 2, 3, 1))                    # [B, H, W, Cio]
    xh = jnp.pad(xh, ((0, 0), (1, 1), (1, 1), (0, 0)))      # [B, Hp, Wp, Cio]
    xh = xh.reshape(B, Hp * Wp, Cio)
    xh = jnp.pad(xh, ((0, 0), (0, Nf - Hp * Wp), (0, 0))).astype(jnp.bfloat16)

    # --- c_{t-1} / peephole weights: channel-major, width right-padded by 2
    def chan_padw(a):                  # [N, Ch, H, W] -> [N, Ch, H*Wp]
        a = jnp.pad(a, ((0, 0), (0, 0), (0, 0), (0, Wp - W)))
        return a.reshape(a.shape[0], a.shape[1], Nq)

    c_pm = chan_padw(c).astype(jnp.float32)                  # [B, Ch, Nq]
    wc_pack = jnp.concatenate(                               # [3, Ch, Nq]
        [chan_padw(params['Wci']), chan_padw(params['Wcf']),
         chan_padw(params['Wco'])], axis=0).astype(jnp.float32)
    bias = params['bhc'].reshape(Ch, 1).astype(jnp.float32)

    # --- gate-concatenated conv weights, flattened tap-major for im2col:
    #     row index = tap*Cio + channel, zero-padded to Kpad rows.
    wx = jnp.stack([params['Wxi'], params['Wxf'], params['Wxo'], params['Wxc']])
    wh = jnp.stack([params['Whi'], params['Whf'], params['Who'], params['Whc']])
    wx = jnp.transpose(wx, (3, 4, 2, 0, 1)).reshape(K * K, Cin, G)
    wh = jnp.transpose(wh, (3, 4, 2, 0, 1)).reshape(K * K, Ch, G)
    w_cat = jnp.concatenate([wx, wh], axis=1).reshape(KKCio, G)
    w_cat = jnp.pad(w_cat, ((0, Kpad - KKCio), (0, 0))).astype(jnp.bfloat16)

    kernel = functools.partial(_convlstm_kernel, H=H, Wp=Wp, Ch=Ch, Cio=Cio)

    ht_p, ct_p = pl.pallas_call(
        kernel,
        out_shape=(jax.ShapeDtypeStruct((B, Ch, Nq), jnp.float32),
                   jax.ShapeDtypeStruct((B, Ch, Nq), jnp.float32)),
        grid=(B,),
        in_specs=[
            pl.BlockSpec((None, Nf, Cio), lambda b: (b, 0, 0)),   # xh (bf16)
            pl.BlockSpec((None, Ch, Nq), lambda b: (b, 0, 0)),    # c_{t-1}
            pl.BlockSpec((3, Ch, Nq), lambda b: (0, 0, 0)),       # Wci|Wcf|Wco
            pl.BlockSpec((Kpad, G), lambda b: (0, 0)),            # conv weights
            pl.BlockSpec((Ch, 1), lambda b: (0, 0)),              # bhc
        ],
        out_specs=[pl.BlockSpec((None, Ch, Nq), lambda b: (b, 0, 0)),
                   pl.BlockSpec((None, Ch, Nq), lambda b: (b, 0, 0))],
        scratch_shapes=[pltpu.VMEM((Nf, Cio), jnp.float32),       # f32 image
                        pltpu.VMEM((Nq, Kpad), jnp.bfloat16),     # im2col slab
                        pltpu.VMEM((Nq, G), jnp.float32)],        # gate acc
        compiler_params=pltpu.CompilerParams(
            dimension_semantics=("parallel",),
            vmem_limit_bytes=32 * 1024 * 1024),
    )(xh, c_pm, wc_pack, w_cat, bias)

    # Outputs are already NCHW-major; just drop the 2 padded width columns.
    ht = ht_p.reshape(B, Ch, H, Wp)[:, :, :, :W]
    ct = ct_p.reshape(B, Ch, H, Wp)[:, :, :, :W]
    return ht, (ht, ct)


# ------------------------------- pure-JAX reference -------------------------

def _conv_ref(x, w, b=None):
    out = lax.conv_general_dilated(
        x, w, window_strides=(1, 1), padding='SAME',
        dimension_numbers=('NCHW', 'OIHW', 'NCHW'))
    if b is not None:
        out = out + b[None, :, None, None]
    return out


def conv_lstm_ref(x, h, c, p):
    it = jax.nn.sigmoid(_conv_ref(x, p['Wxi']) + _conv_ref(h, p['Whi']) + p['Wci'] * c)
    ft = jax.nn.sigmoid(_conv_ref(x, p['Wxf']) + _conv_ref(h, p['Whf']) + p['Wcf'] * c)
    ot = jax.nn.sigmoid(_conv_ref(x, p['Wxo']) + _conv_ref(h, p['Who']) + p['Wco'] * c)
    ct = ft * c + it * jnp.tanh(_conv_ref(x, p['Wxc']) + _conv_ref(h, p['Whc'], p['bhc']))
    ht = ot * jnp.tanh(ct)
    return ht, ct


# ------------------------------- main ----------------------------------------

if __name__ == "__main__":
    B, Cin, Ch, H, W = 2, 4, 32, 16, 16

    key = jax.random.PRNGKey(0)
    keys = jax.random.split(key, 15)

    def w(k, shape, scale=0.1):
        return (scale * jax.random.normal(k, shape)).astype(jnp.float32)

    params = {
        'Wxi': w(keys[0], (Ch, Cin, K, K)),
        'Whi': w(keys[1], (Ch, Ch, K, K)),
        'Wxf': w(keys[2], (Ch, Cin, K, K)),
        'Whf': w(keys[3], (Ch, Ch, K, K)),
        'Wxo': w(keys[4], (Ch, Cin, K, K)),
        'Who': w(keys[5], (Ch, Ch, K, K)),
        'Wxc': w(keys[6], (Ch, Cin, K, K)),
        'Whc': w(keys[7], (Ch, Ch, K, K)),
        'bhc': w(keys[8], (Ch,)),
        # zero-initialized in the PyTorch module; nonzero here so the
        # peephole path is actually exercised numerically.
        'Wci': w(keys[12], (1, Ch, H, W)),
        'Wcf': w(keys[13], (1, Ch, H, W)),
        'Wco': w(keys[14], (1, Ch, H, W)),
    }

    x = w(keys[9], (B, Cin, H, W), scale=1.0)
    h0 = w(keys[10], (B, Ch, H, W), scale=1.0)
    c0 = w(keys[11], (B, Ch, H, W), scale=1.0)

    fwd = jax.jit(conv_lstm_cell)
    ht, (ht2, ct) = fwd(x, (h0, c0), params)
    jax.block_until_ready((ht, ct))

    ht_ref, ct_ref = conv_lstm_ref(x, h0, c0, params)
    # x/h/weights are fed to the matmuls as bf16, so allow ~1e-2 level error.
    assert jnp.allclose(ht, ht_ref, atol=3e-2, rtol=3e-2)
    assert jnp.allclose(ct, ct_ref, atol=3e-2, rtol=3e-2)

    print("KERNEL_OK")
</pallas_src>

<mosaic_0001>
module attributes {stable_mosaic.version = 11 : i64} {
  func.func @_convlstm_kernel(%arg0: i32, %arg1: memref<1x326x36xbf16, #tpu.memory_space<vmem>>, %arg2: memref<1x32x288xf32, #tpu.memory_space<vmem>>, %arg3: memref<3x32x288xf32, #tpu.memory_space<vmem>>, %arg4: memref<384x128xbf16, #tpu.memory_space<vmem>>, %arg5: memref<32x1xf32, #tpu.memory_space<vmem>>, %arg6: memref<1x32x288xf32, #tpu.memory_space<vmem>>, %arg7: memref<1x32x288xf32, #tpu.memory_space<vmem>>, %arg8: memref<326x36xf32, #tpu.memory_space<vmem>>, %arg9: memref<288x384xbf16, #tpu.memory_space<vmem>>, %arg10: memref<288x128xf32, #tpu.memory_space<vmem>>) attributes {dimension_semantics = [#tpu.dimension_semantics<parallel>], iteration_bounds = array<i64: 2>, scalar_prefetch = 0 : i64, scratch_operands = 3 : i64, tpu.core_type = #tpu.core_type<tc>, window_params = [{transform_indices = @transform_0, window_bounds = array<i64: 1, 326, 36>}, {transform_indices = @transform_1, window_bounds = array<i64: 1, 32, 288>}, {pipeline_mode = #tpu.pipeline_mode<synchronous>, transform_indices = @transform_2, window_bounds = array<i64: 3, 32, 288>}, {pipeline_mode = #tpu.pipeline_mode<synchronous>, transform_indices = @transform_3, window_bounds = array<i64: 384, 128>}, {pipeline_mode = #tpu.pipeline_mode<synchronous>, transform_indices = @transform_4, window_bounds = array<i64: 32, 1>}, {transform_indices = @transform_5, window_bounds = array<i64: 1, 32, 288>}, {transform_indices = @transform_6, window_bounds = array<i64: 1, 32, 288>}]} {
    %c0 = arith.constant 0 : index
    %c0_0 = arith.constant 0 : index
    %c0_1 = arith.constant 0 : index
    %0 = vector.load %arg1[%c0, %c0_0, %c0_1] : memref<1x326x36xbf16, #tpu.memory_space<vmem>>, vector<1x326x36xbf16>
    %1 = vector.shape_cast %0 : vector<1x326x36xbf16> to vector<326x36xbf16>
    %2 = arith.extf %1 : vector<326x36xbf16> to vector<326x36xf32>
    %c0_2 = arith.constant 0 : index
    %c0_3 = arith.constant 0 : index
    %3 = vector.load %arg8[%c0_2, %c0_3] : memref<326x36xf32, #tpu.memory_space<vmem>>, vector<326x36xf32>
    tpu.vector_store %arg8[%c0_2, %c0_3], %2 {strides = array<i32>} : memref<326x36xf32, #tpu.memory_space<vmem>>, vector<326x36xf32>,
    %c0_4 = arith.constant 0 : index
    %c0_5 = arith.constant 0 : index
    %4 = vector.load %arg8[%c0_4, %c0_5] : memref<326x36xf32, #tpu.memory_space<vmem>>, vector<288x36xf32>
    %5 = arith.truncf %4 : vector<288x36xf32> to vector<288x36xbf16>
    %c0_6 = arith.constant 0 : index
    %c0_7 = arith.constant 0 : index
    %6 = vector.load %arg9[%c0_6, %c0_7] : memref<288x384xbf16, #tpu.memory_space<vmem>>, vector<288x36xbf16>
    tpu.vector_store %arg9[%c0_6, %c0_7], %5 {strides = array<i32>} : memref<288x384xbf16, #tpu.memory_space<vmem>>, vector<288x36xbf16>,
    %c1 = arith.constant 1 : index
    %c0_8 = arith.constant 0 : index
    %7 = vector.load %arg8[%c1, %c0_8] : memref<326x36xf32, #tpu.memory_space<vmem>>, vector<288x36xf32>
    %8 = arith.truncf %7 : vector<288x36xf32> to vector<288x36xbf16>
    %c0_9 = arith.constant 0 : index
    %c36 = arith.constant 36 : index
    %9 = vector.load %arg9[%c0_9, %c36] : memref<288x384xbf16, #tpu.memory_space<vmem>>, vector<288x36xbf16>
    tpu.vector_store %arg9[%c0_9, %c36], %8 {strides = array<i32>} : memref<288x384xbf16, #tpu.memory_space<vmem>>, vector<288x36xbf16>,
    %c2 = arith.constant 2 : index
    %c0_10 = arith.constant 0 : index
    %10 = vector.load %arg8[%c2, %c0_10] : memref<326x36xf32, #tpu.memory_space<vmem>>, vector<288x36xf32>
    %11 = arith.truncf %10 : vector<288x36xf32> to vector<288x36xbf16>
    %c0_11 = arith.constant 0 : index
    %c72 = arith.constant 72 : index
    %12 = vector.load %arg9[%c0_11, %c72] : memref<288x384xbf16, #tpu.memory_space<vmem>>, vector<288x36xbf16>
    tpu.vector_store %arg9[%c0_11, %c72], %11 {strides = array<i32>} : memref<288x384xbf16, #tpu.memory_space<vmem>>, vector<288x36xbf16>,
    %c18 = arith.constant 18 : index
    %c0_12 = arith.constant 0 : index
    %13 = vector.load %arg8[%c18, %c0_12] : memref<326x36xf32, #tpu.memory_space<vmem>>, vector<288x36xf32>
    %14 = arith.truncf %13 : vector<288x36xf32> to vector<288x36xbf16>
    %c0_13 = arith.constant 0 : index
    %c108 = arith.constant 108 : index
    %15 = vector.load %arg9[%c0_13, %c108] : memref<288x384xbf16, #tpu.memory_space<vmem>>, vector<288x36xbf16>
    tpu.vector_store %arg9[%c0_13, %c108], %14 {strides = array<i32>} : memref<288x384xbf16, #tpu.memory_space<vmem>>, vector<288x36xbf16>,
    %c19 = arith.constant 19 : index
    %c0_14 = arith.constant 0 : index
    %16 = vector.load %arg8[%c19, %c0_14] : memref<326x36xf32, #tpu.memory_space<vmem>>, vector<288x36xf32>
    %17 = arith.truncf %16 : vector<288x36xf32> to vector<288x36xbf16>
    %c0_15 = arith.constant 0 : index
    %c144 = arith.constant 144 : index
    %18 = vector.load %arg9[%c0_15, %c144] : memref<288x384xbf16, #tpu.memory_space<vmem>>, vector<288x36xbf16>
    tpu.vector_store %arg9[%c0_15, %c144], %17 {strides = array<i32>} : memref<288x384xbf16, #tpu.memory_space<vmem>>, vector<288x36xbf16>,
    %c20 = arith.constant 20 : index
    %c0_16 = arith.constant 0 : index
    %19 = vector.load %arg8[%c20, %c0_16] : memref<326x36xf32, #tpu.memory_space<vmem>>, vector<288x36xf32>
    %20 = arith.truncf %19 : vector<288x36xf32> to vector<288x36xbf16>
    %c0_17 = arith.constant 0 : index
    %c180 = arith.constant 180 : index
    %21 = vector.load %arg9[%c0_17, %c180] : memref<288x384xbf16, #tpu.memory_space<vmem>>, vector<288x36xbf16>
    tpu.vector_store %arg9[%c0_17, %c180], %20 {strides = array<i32>} : memref<288x384xbf16, #tpu.memory_space<vmem>>, vector<288x36xbf16>,
    %c36_18 = arith.constant 36 : index
    %c0_19 = arith.constant 0 : index
    %22 = vector.load %arg8[%c36_18, %c0_19] : memref<326x36xf32, #tpu.memory_space<vmem>>, vector<288x36xf32>
    %23 = arith.truncf %22 : vector<288x36xf32> to vector<288x36xbf16>
    %c0_20 = arith.constant 0 : index
    %c216 = arith.constant 216 : index
    %24 = vector.load %arg9[%c0_20, %c216] : memref<288x384xbf16, #tpu.memory_space<vmem>>, vector<288x36xbf16>
    tpu.vector_store %arg9[%c0_20, %c216], %23 {strides = array<i32>} : memref<288x384xbf16, #tpu.memory_space<vmem>>, vector<288x36xbf16>,
    %c37 = arith.constant 37 : index
    %c0_21 = arith.constant 0 : index
    %25 = vector.load %arg8[%c37, %c0_21] : memref<326x36xf32, #tpu.memory_space<vmem>>, vector<288x36xf32>
    %26 = arith.truncf %25 : vector<288x36xf32> to vector<288x36xbf16>
    %c0_22 = arith.constant 0 : index
    %c252 = arith.constant 252 : index
    %27 = vector.load %arg9[%c0_22, %c252] : memref<288x384xbf16, #tpu.memory_space<vmem>>, vector<288x36xbf16>
    tpu.vector_store %arg9[%c0_22, %c252], %26 {strides = array<i32>} : memref<288x384xbf16, #tpu.memory_space<vmem>>, vector<288x36xbf16>,
    %c38 = arith.constant 38 : index
    %c0_23 = arith.constant 0 : index
    %28 = vector.load %arg8[%c38, %c0_23] : memref<326x36xf32, #tpu.memory_space<vmem>>, vector<288x36xf32>
    %29 = arith.truncf %28 : vector<288x36xf32> to vector<288x36xbf16>
    %c0_24 = arith.constant 0 : index
    %c288 = arith.constant 288 : index
    %30 = vector.load %arg9[%c0_24, %c288] : memref<288x384xbf16, #tpu.memory_space<vmem>>, vector<288x36xbf16>
    tpu.vector_store %arg9[%c0_24, %c288], %29 {strides = array<i32>} : memref<288x384xbf16, #tpu.memory_space<vmem>>, vector<288x36xbf16>,
    %cst = arith.constant 0.000000e+00 : bf16
    %31 = vector.broadcast %cst : bf16 to vector<288x60xbf16>
    %c0_25 = arith.constant 0 : index
    %c324 = arith.constant 324 : index
    %32 = vector.load %arg9[%c0_25, %c324] : memref<288x384xbf16, #tpu.memory_space<vmem>>, vector<288x60xbf16>
    tpu.vector_store %arg9[%c0_25, %c324], %31 {strides = array<i32>} : memref<288x384xbf16, #tpu.memory_space<vmem>>, vector<288x60xbf16>,
    %c0_26 = arith.constant 0 : index
    %c0_27 = arith.constant 0 : index
    %33 = vector.load %arg9[%c0_26, %c0_27] : memref<288x384xbf16, #tpu.memory_space<vmem>>, vector<288x384xbf16>
    %c0_28 = arith.constant 0 : index
    %c0_29 = arith.constant 0 : index
    %34 = vector.load %arg4[%c0_28, %c0_29] : memref<384x128xbf16, #tpu.memory_space<vmem>>, vector<384x128xbf16>
    %cst_30 = arith.constant dense<0.000000e+00> : vector<288x128xf32>
    %35 = tpu.matmul %33, %34, %cst_30 {dimension_numbers = #tpu.dot_dimension_numbers<[1], [0], [0], [1], [0, 0, 1, 1], [], []>} : vector<288x384xbf16>, vector<384x128xbf16>, vector<288x128xf32> -> vector<288x128xf32>
    %c0_31 = arith.constant 0 : index
    %c0_32 = arith.constant 0 : index
    %36 = vector.load %arg10[%c0_31, %c0_32] : memref<288x128xf32, #tpu.memory_space<vmem>>, vector<288x128xf32>
    tpu.vector_store %arg10[%c0_31, %c0_32], %35 {strides = array<i32>} : memref<288x128xf32, #tpu.memory_space<vmem>>, vector<288x128xf32>,
    %c0_33 = arith.constant 0 : index
    %c0_34 = arith.constant 0 : index
    %c0_35 = arith.constant 0 : index
    %37 = vector.load %arg2[%c0_33, %c0_34, %c0_35] : memref<1x32x288xf32, #tpu.memory_space<vmem>>, vector<1x32x288xf32>
    %38 = vector.shape_cast %37 : vector<1x32x288xf32> to vector<32x288xf32>
    %c0_36 = arith.constant 0 : index
    %c32 = arith.constant 32 : index
    %39 = vector.load %arg10[%c0_36, %c32] : memref<288x128xf32, #tpu.memory_space<vmem>>, vector<288x32xf32>
    %40 = tpu.transpose %39, [1, 0] : vector<288x32xf32> -> vector<32x288xf32>
    %c1_37 = arith.constant 1 : index
    %c0_38 = arith.constant 0 : index
    %c0_39 = arith.constant 0 : index
    %41 = vector.load %arg3[%c1_37, %c0_38, %c0_39] : memref<3x32x288xf32, #tpu.memory_space<vmem>>, vector<1x32x288xf32>
    %42 = vector.shape_cast %41 : vector<1x32x288xf32> to vector<32x288xf32>
    %43 = arith.mulf %42, %38 : vector<32x288xf32>
    %44 = arith.addf %40, %43 : vector<32x288xf32>
    %45 = arith.negf %44 : vector<32x288xf32>
    %46 = math.exp %45 : vector<32x288xf32>
    %cst_40 = arith.constant 1.000000e+00 : f32
    %47 = vector.broadcast %cst_40 : f32 to vector<32x288xf32>
    %48 = arith.addf %47, %46 : vector<32x288xf32>
    %49 = arith.divf %47, %48 : vector<32x288xf32>
    %50 = arith.mulf %49, %38 : vector<32x288xf32>
    %c0_41 = arith.constant 0 : index
    %c0_42 = arith.constant 0 : index
    %51 = vector.load %arg10[%c0_41, %c0_42] : memref<288x128xf32, #tpu.memory_space<vmem>>, vector<288x32xf32>
    %52 = tpu.transpose %51, [1, 0] : vector<288x32xf32> -> vector<32x288xf32>
    %c0_43 = arith.constant 0 : index
    %c0_44 = arith.constant 0 : index
    %c0_45 = arith.constant 0 : index
    %53 = vector.load %arg3[%c0_43, %c0_44, %c0_45] : memref<3x32x288xf32, #tpu.memory_space<vmem>>, vector<1x32x288xf32>
    %54 = vector.shape_cast %53 : vector<1x32x288xf32> to vector<32x288xf32>
    %55 = arith.mulf %54, %38 : vector<32x288xf32>
    %56 = arith.addf %52, %55 : vector<32x288xf32>
    %57 = arith.negf %56 : vector<32x288xf32>
    %58 = math.exp %57 : vector<32x288xf32>
    %cst_46 = arith.constant 1.000000e+00 : f32
    %59 = vector.broadcast %cst_46 : f32 to vector<32x288xf32>
    %60 = arith.addf %59, %58 : vector<32x288xf32>
    %61 = arith.divf %59, %60 : vector<32x288xf32>
    %c0_47 = arith.constant 0 : index
    %c96 = arith.constant 96 : index
    %62 = vector.load %arg10[%c0_47, %c96] : memref<288x128xf32, #tpu.memory_space<vmem>>, vector<288x32xf32>
    %63 = tpu.transpose %62, [1, 0] : vector<288x32xf32> -> vector<32x288xf32>
    %c0_48 = arith.constant 0 : index
    %c0_49 = arith.constant 0 : index
    %64 = vector.load %arg5[%c0_48, %c0_49] : memref<32x1xf32, #tpu.memory_space<vmem>>, vector<32x1xf32>
    %65 = vector.broadcast %64 : vector<32x1xf32> to vector<32x288xf32>
    %66 = arith.addf %63, %65 : vector<32x288xf32>
    %67 = math.tanh %66 : vector<32x288xf32>
    %68 = arith.mulf %61, %67 : vector<32x288xf32>
    %69 = arith.addf %50, %68 : vector<32x288xf32>
    %c0_50 = arith.constant 0 : index
    %c64 = arith.constant 64 : index
    %70 = vector.load %arg10[%c0_50, %c64] : memref<288x128xf32, #tpu.memory_space<vmem>>, vector<288x32xf32>
    %71 = tpu.transpose %70, [1, 0] : vector<288x32xf32> -> vector<32x288xf32>
    %c2_51 = arith.constant 2 : index
    %c0_52 = arith.constant 0 : index
    %c0_53 = arith.constant 0 : index
    %72 = vector.load %arg3[%c2_51, %c0_52, %c0_53] : memref<3x32x288xf32, #tpu.memory_space<vmem>>, vector<1x32x288xf32>
    %73 = vector.shape_cast %72 : vector<1x32x288xf32> to vector<32x288xf32>
    %74 = arith.mulf %73, %38 : vector<32x288xf32>
    %75 = arith.addf %71, %74 : vector<32x288xf32>
    %76 = arith.negf %75 : vector<32x288xf32>
    %77 = math.exp %76 : vector<32x288xf32>
    %cst_54 = arith.constant 1.000000e+00 : f32
    %78 = vector.broadcast %cst_54 : f32 to vector<32x288xf32>
    %79 = arith.addf %78, %77 : vector<32x288xf32>
    %80 = arith.divf %78, %79 : vector<32x288xf32>
    %81 = math.tanh %69 : vector<32x288xf32>
    %82 = arith.mulf %80, %81 : vector<32x288xf32>
    %c0_55 = arith.constant 0 : index
    %c0_56 = arith.constant 0 : index
    %c0_57 = arith.constant 0 : index
    %83 = vector.load %arg7[%c0_55, %c0_56, %c0_57] : memref<1x32x288xf32, #tpu.memory_space<vmem>>, vector<1x32x288xf32>
    %84 = vector.shape_cast %83 : vector<1x32x288xf32> to vector<32x288xf32>
    %85 = vector.shape_cast %69 : vector<32x288xf32> to vector<1x32x288xf32>
    tpu.vector_store %arg7[%c0_55, %c0_56, %c0_57], %85 {strides = array<i32>} : memref<1x32x288xf32, #tpu.memory_space<vmem>>, vector<1x32x288xf32>,
    %c0_58 = arith.constant 0 : index
    %c0_59 = arith.constant 0 : index
    %c0_60 = arith.constant 0 : index
    %86 = vector.load %arg6[%c0_58, %c0_59, %c0_60] : memref<1x32x288xf32, #tpu.memory_space<vmem>>, vector<1x32x288xf32>
    %87 = vector.shape_cast %86 : vector<1x32x288xf32> to vector<32x288xf32>
    %88 = vector.shape_cast %82 : vector<32x288xf32> to vector<1x32x288xf32>
    tpu.vector_store %arg6[%c0_58, %c0_59, %c0_60], %88 {strides = array<i32>} : memref<1x32x288xf32, #tpu.memory_space<vmem>>, vector<1x32x288xf32>,
    return
  }
  func.func @transform_0(%arg0: i32) -> (i32, i32, i32) {
    %c0_i32 = arith.constant 0 : i32
    %c0_i32_0 = arith.constant 0 : i32
    %c0_i32_1 = arith.constant 0 : i32
    return %arg0, %c0_i32, %c0_i32_0 : i32, i32, i32
  }
  func.func @transform_1(%arg0: i32) -> (i32, i32, i32) {
    %c0_i32 = arith.constant 0 : i32
    %c0_i32_0 = arith.constant 0 : i32
    %c0_i32_1 = arith.constant 0 : i32
    return %arg0, %c0_i32, %c0_i32_0 : i32, i32, i32
  }
  func.func @transform_2(%arg0: i32) -> (i32, i32, i32) {
    %c0_i32 = arith.constant 0 : i32
    %c0_i32_0 = arith.constant 0 : i32
    %c0_i32_1 = arith.constant 0 : i32
    %c0_i32_2 = arith.constant 0 : i32
    return %c0_i32, %c0_i32_0, %c0_i32_1 : i32, i32, i32
  }
  func.func @transform_3(%arg0: i32) -> (i32, i32) {
    %c0_i32 = arith.constant 0 : i32
    %c0_i32_0 = arith.constant 0 : i32
    %c0_i32_1 = arith.constant 0 : i32
    return %c0_i32, %c0_i32_0 : i32, i32
  }
  func.func @transform_4(%arg0: i32) -> (i32, i32) {
    %c0_i32 = arith.constant 0 : i32
    %c0_i32_0 = arith.constant 0 : i32
    %c0_i32_1 = arith.constant 0 : i32
    return %c0_i32, %c0_i32_0 : i32, i32
  }
  func.func @transform_5(%arg0: i32) -> (i32, i32, i32) {
    %c0_i32 = arith.constant 0 : i32
    %c0_i32_0 = arith.constant 0 : i32
    %c0_i32_1 = arith.constant 0 : i32
    return %arg0, %c0_i32, %c0_i32_0 : i32, i32, i32
  }
  func.func @transform_6(%arg0: i32) -> (i32, i32, i32) {
    %c0_i32 = arith.constant 0 : i32
    %c0_i32_0 = arith.constant 0 : i32
    %c0_i32_1 = arith.constant 0 : i32
    return %arg0, %c0_i32, %c0_i32_0 : i32, i32, i32
  }
}

</mosaic_0001>

<bundles_post_ra>
// kernel: conv_lstm_cell.1
= control target key start
LH: loop header
LB: loop body
LE: loop exit
PB: predicated region body
PF: predicated region fallthrough
CT: control target
= control target key end

     0   :  { %s4284_s21 = smov 0   ;;  %s5930_s0 = inlined_call_operand.vmem [shape: bf16[2,326,36], index: 0, kind: input, shape index: {}]   ;;  %s5931_s1 = inlined_call_operand.vmem [shape: f32[2,32,288], index: 1, kind: input, shape index: {}]   ;;  %s5932_s2 = inlined_call_operand.vmem [shape: f32[3,32,288], index: 2, kind: input, shape index: {}]   ;;  %s5933_s3 = inlined_call_operand.vmem [shape: bf16[384,128], index: 3, kind: input, shape index: {}]   ;;  %s5934_s4 = inlined_call_operand.vmem [shape: f32[32,1], index: 4, kind: input, shape index: {}]   ;;  %s5935_s5 = inlined_call_operand.vmem [shape: f32[2,32,288], index: 5, kind: output, shape index: {0}]   ;;  %s5936_s6 = inlined_call_operand.vmem [shape: f32[2,32,288], index: 6, kind: output, shape index: {1}]  }
   0x1 LB: > { %s3686_s22 = sadd.s32 4294967295, %s4236_s21   ;;  %p3690_p0 = scmp.ge.s32.totalorder %s4236_s21, 1  ;;  %s4236_s21 = sphi %s4284_s21, %s17_s21  }
   0x2   : > { %p225_p1 = scmp.lt.s32.totalorder %s4236_s21, 3 }
   0x4   : > { %p226_p2 = pnand %p3690_p0, %p225_p1 }
   0x6   : > { %229 = sbr.rel (%p226_p2) target bundleno = 1349 (0x545), region = 40 }
   0xd   : > { %p265_p3 = scmp.lt.s32.totalorder %s3686_s22, 1  ;;  %vm368_vm0 = vcmask 293888   ;;  %s4238_s27 = smov 36   ;;  %vm409_vm1 = vcmask 291840   ;;  %vm609_vm2 = vcmask 589088   ;;  %vm754_vm3 = vcmask 884288  }
   0xe   : > { %s4239_s28 = smov 72   ;;  %s4240_s29 = smov 108   ;;  %vm899_vm4 = vcmask 1048416   ;;  %vm901_vm5 = vcmask 130048   ;;  %vm1063_vm6 = vcmask 425088   ;;  %vm1208_vm7 = vcmask 720288  }
   0xf   : > { %s5995_s22 = smov (!%p265_p3, %s3686_s22), 1  ;;  %s4241_s30 = smov 16   ;;  %vm1353_vm8 = vcmask 1015488   ;;  %vm1498_vm9 = vcmask 1048544   ;;  %vm1500_vm10 = vcmask 261120   ;;  %vm1662_vm11 = vcmask 556288  }
  0x10   : > { %s3990_s23 = smul.u32 164, %s5995_s22  ;;  %s4242_s7 = smov 52   ;;  %vm1681_vm12 = vcmask 1048096  }
  0x11   : > { %s4245_s19 = smov 124   ;;  %s4246_s24 = smov 32  }
  0x12   : > { %s4298_s26 = scalar_lea.vmem %s5930_s0, %s3990_s23  ;;  %s4247_s15 = smov 96  }
  0x13   : > { %v3782_v0 = vld [vmem:[%s4298_s26] sm:$0xff]   ;;  %v3861_v1 = vld [vmem:[%s4298_s26 + $0x8] sm:$0xff]   ;;  %v3862_v2 = vld [vmem:[%s4298_s26 + $0x10] sm:$0xff]   ;;  %s4248_s25 = smov 64  }
  0x14   : > { %v3783_v3 = vunpack.c.l.bf16 %v3782_v0  ;;  %v3784_v4 = vunpack.c.h.bf16 %v3782_v0  ;;  %v3787_v5 = vunpack.c.l.bf16 %v3861_v1  ;;  %v3788_v6 = vunpack.c.h.bf16 %v3861_v1  ;;  %v3863_v7 = vld [vmem:[%s4298_s26 + $0x18] sm:$0xff]   ;;  %v3864_v8 = vld [vmem:[%s4298_s26 + $0x20] sm:$0xff]   ;;  %v3865_v9 = vld [vmem:[%s4298_s26 + $0x28] sm:$0xff]  }
  0x15   : > { %v3791_v10 = vunpack.c.l.bf16 %v3862_v2  ;;  %v3792_v11 = vunpack.c.h.bf16 %v3862_v2  ;;  %v3795_v12 = vunpack.c.l.bf16 %v3863_v7  ;;  %v3796_v13 = vunpack.c.h.bf16 %v3863_v7  ;;  %v3866_v14 = vld [vmem:[%s4298_s26 + $0x30] sm:$0xff]   ;;  %v3867_v15 = vld [vmem:[%s4298_s26 + $0x38] sm:$0xff]   ;;  %v3868_v16 = vld [vmem:[%s4298_s26 + $0x40] sm:$0xff]  }
  0x16   : > { %369 = vst.msk [vmem:[#allocation2] sm:$0xff] %vm368_vm0, %v3783_v3  ;;  %370 = vst.msk [vmem:[#allocation2 + $0x8] sm:$0xff] %vm368_vm0, %v3784_v4  ;;  %v3799_v17 = vunpack.c.l.bf16 %v3864_v8  ;;  %v3800_v18 = vunpack.c.h.bf16 %v3864_v8  ;;  %v3803_v19 = vunpack.c.l.bf16 %v3865_v9  ;;  %v3807_v20 = vunpack.c.l.bf16 %v3866_v14  ;;  %v3869_v21 = vld [vmem:[%s4298_s26 + $0x48] sm:$0xff]   ;;  %v3870_v22 = vld [vmem:[%s4298_s26 + $0x50] sm:$0xff]  }
  0x17   : > { %371 = vst.msk [vmem:[#allocation2 + $0x10] sm:$0xff] %vm368_vm0, %v3787_v5  ;;  %372 = vst.msk [vmem:[#allocation2 + $0x18] sm:$0xff] %vm368_vm0, %v3788_v6  ;;  %v3871_v23 = vld [vmem:[%s4298_s26 + $0x58] sm:$0xff]   ;;  %v3808_v24 = vunpack.c.h.bf16 %v3866_v14  ;;  %v3811_v25 = vunpack.c.l.bf16 %v3867_v15  ;;  %v3804_v26 = vunpack.c.h.bf16 %v3865_v9  ;;  %v3815_v27 = vunpack.c.l.bf16 %v3868_v16  ;;  %v3872_v28 = vld [vmem:[%s4298_s26 + $0x60] sm:$0xff]  }
  0x18   : > { %373 = vst.msk [vmem:[#allocation2 + $0x20] sm:$0xff] %vm368_vm0, %v3791_v10  ;;  %374 = vst.msk [vmem:[#allocation2 + $0x28] sm:$0xff] %vm368_vm0, %v3792_v11  ;;  %v3873_v29 = vld [vmem:[%s4298_s26 + $0x68] sm:$0xff]   ;;  %v3874_v30 = vld [vmem:[%s4298_s26 + $0x70] sm:$0xff]   ;;  %v3816_v31 = vunpack.c.h.bf16 %v3868_v16  ;;  %v3819_v32 = vunpack.c.l.bf16 %v3869_v21  ;;  %v3812_v33 = vunpack.c.h.bf16 %v3867_v15  ;;  %v3823_v34 = vunpack.c.l.bf16 %v3870_v22 }
  0x19   : > { %375 = vst.msk [vmem:[#allocation2 + $0x30] sm:$0xff] %vm368_vm0, %v3795_v12  ;;  %376 = vst.msk [vmem:[#allocation2 + $0x38] sm:$0xff] %vm368_vm0, %v3796_v13  ;;  %v3875_v35 = vld [vmem:[%s4298_s26 + $0x78] sm:$0xff]   ;;  %v3876_v36 = vld [vmem:[%s4298_s26 + $0x80] sm:$0xff]   ;;  %v3824_v38 = vunpack.c.h.bf16 %v3870_v22  ;;  %v3827_v39 = vunpack.c.l.bf16 %v3871_v23  ;;  %v3820_v40 = vunpack.c.h.bf16 %v3869_v21  ;;  %v3831_v41 = vunpack.c.l.bf16 %v3872_v28 }
  0x1a   : > { %377 = vst.msk [vmem:[#allocation2 + $0x40] sm:$0xff] %vm368_vm0, %v3799_v17  ;;  %378 = vst.msk [vmem:[#allocation2 + $0x48] sm:$0xff] %vm368_vm0, %v3800_v18  ;;  %v3877_v37 = vld [vmem:[%s4298_s26 + $0x88] sm:$0xff]   ;;  %v3878_v42 = vld [vmem:[%s4298_s26 + $0x90] sm:$0xff]   ;;  %v3832_v44 = vunpack.c.h.bf16 %v3872_v28  ;;  %v3835_v45 = vunpack.c.l.bf16 %v3873_v29  ;;  %v3828_v46 = vunpack.c.h.bf16 %v3871_v23  ;;  %v3839_v47 = vunpack.c.l.bf16 %v3874_v30 }
  0x1b   : > { %379 = vst.msk [vmem:[#allocation2 + $0x50] sm:$0xff] %vm368_vm0, %v3803_v19  ;;  %381 = vst.msk [vmem:[#allocation2 + $0x60] sm:$0xff] %vm368_vm0, %v3807_v20  ;;  %v3879_v43 = vld [vmem:[%s4298_s26 + $0x98] sm:$0xff]   ;;  %v3840_v48 = vunpack.c.h.bf16 %v3874_v30  ;;  %v3843_v49 = vunpack.c.l.bf16 %v3875_v35  ;;  %v3836_v50 = vunpack.c.h.bf16 %v3873_v29  ;;  %v3847_v51 = vunpack.c.l.bf16 %v3876_v36 }
  0x1c   : > { %382 = vst.msk [vmem:[#allocation2 + $0x68] sm:$0xff] %vm368_vm0, %v3808_v24  ;;  %383 = vst.msk [vmem:[#allocation2 + $0x70] sm:$0xff] %vm368_vm0, %v3811_v25  ;;  %v3848_v52 = vunpack.c.h.bf16 %v3876_v36  ;;  %v3851_v53 = vunpack.c.l.bf16 %v3877_v37  ;;  %v3844_v54 = vunpack.c.h.bf16 %v3875_v35  ;;  %v3852_v55 = vunpack.c.h.bf16 %v3877_v37 }
  0x1d   : > { %380 = vst.msk [vmem:[#allocation2 + $0x58] sm:$0xff] %vm368_vm0, %v3804_v26  ;;  %385 = vst.msk [vmem:[#allocation2 + $0x80] sm:$0xff] %vm368_vm0, %v3815_v27  ;;  %v483_v56 = vld [vmem:[#allocation2 + $0x1] sm:$0xff]  ;;  %v3855_v59 = vunpack.c.l.bf16 %v3878_v42  ;;  %v3856_v60 = vunpack.c.h.bf16 %v3878_v42  ;;  %v3859_v61 = vunpack.c.l.bf16 %v3879_v43  ;;  %v3860_v62 = vunpack.c.h.bf16 %v3879_v43 }
  0x1e   : > { %386 = vst.msk [vmem:[#allocation2 + $0x88] sm:$0xff] %vm368_vm0, %v3816_v31  ;;  %387 = vst.msk [vmem:[#allocation2 + $0x90] sm:$0xff] %vm368_vm0, %v3819_v32  ;;  %v484_v57 = vld [vmem:[#allocation2 + $0x9] sm:$0xff]  ;;  %v485_v58 = vld [vmem:[#allocation2 + $0x11] sm:$0xff] }
  0x1f   : > { %384 = vst.msk [vmem:[#allocation2 + $0x78] sm:$0xff] %vm368_vm0, %v3812_v33  ;;  %389 = vst.msk [vmem:[#allocation2 + $0xa0] sm:$0xff] %vm368_vm0, %v3823_v34  ;;  %v519_v63 = vpack.c.bf16 %v484_v57, %v483_v56  ;;  %v486_v0 = vld [vmem:[#allocation2 + $0x19] sm:$0xff]  ;;  %v487_v1 = vld [vmem:[#allocation2 + $0x21] sm:$0xff] }
  0x20   : > { %390 = vst.msk [vmem:[#allocation2 + $0xa8] sm:$0xff] %vm368_vm0, %v3824_v38  ;;  %391 = vst.msk [vmem:[#allocation2 + $0xb0] sm:$0xff] %vm368_vm0, %v3827_v39  ;;  %v488_v2 = vld [vmem:[#allocation2 + $0x29] sm:$0xff]  ;;  %v489_v4 = vld [vmem:[#allocation2 + $0x31] sm:$0xff]  ;;  %v520_v5 = vpack.c.bf16 %v486_v0, %v485_v58 }
  0x21   : > { %388 = vst.msk [vmem:[#allocation2 + $0x98] sm:$0xff] %vm368_vm0, %v3820_v40  ;;  %393 = vst.msk [vmem:[#allocation2 + $0xc0] sm:$0xff] %vm368_vm0, %v3831_v41  ;;  %v521_v3 = vpack.c.bf16 %v488_v2, %v487_v1  ;;  %555 = vrot.lane.b32.xlu0 %v519_v63, %s4238_s27  ;;  %v490_v6 = vld [vmem:[#allocation2 + $0x39] sm:$0xff]  ;;  %v491_v7 = vld [vmem:[#allocation2 + $0x41] sm:$0xff] }
  0x22   : > { %394 = vst.msk [vmem:[#allocation2 + $0xc8] sm:$0xff] %vm368_vm0, %v3832_v44  ;;  %395 = vst.msk [vmem:[#allocation2 + $0xd0] sm:$0xff] %vm368_vm0, %v3835_v45  ;;  %v492_v8 = vld [vmem:[#allocation2 + $0x49] sm:$0xff]  ;;  %v522_v9 = vpack.c.bf16 %v490_v6, %v489_v4  ;;  %v411_v43 = vld [vmem:[#allocation2] sm:$0xff] }
  0x23   : > { %392 = vst.msk [vmem:[#allocation2 + $0xb8] sm:$0xff] %vm368_vm0, %v3828_v46  ;;  %397 = vst.msk [vmem:[#allocation2 + $0xe0] sm:$0xff] %vm368_vm0, %v3839_v47  ;;  %559 = vrot.lane.b32.xlu1 %v521_v3, %s4238_s27  ;;  %v523_v12 = vpack.c.bf16 %v492_v8, %v491_v7  ;;  %v495_v13 = vld [vmem:[#allocation2 + $0x61] sm:$0xff]  ;;  %v496_v14 = vld [vmem:[#allocation2 + $0x69] sm:$0xff] }
  0x24   : > { %398 = vst.msk [vmem:[#allocation2 + $0xe8] sm:$0xff] %vm368_vm0, %v3840_v48  ;;  %399 = vst.msk [vmem:[#allocation2 + $0xf0] sm:$0xff] %vm368_vm0, %v3843_v49  ;;  %v493_v10 = vld [vmem:[#allocation2 + $0x51] sm:$0xff]  ;;  %v494_v11 = vld [vmem:[#allocation2 + $0x59] sm:$0xff]  ;;  %v525_v18 = vpack.c.bf16 %v496_v14, %v495_v13 }
  0x25   : > { %396 = vst.msk [vmem:[#allocation2 + $0xd8] sm:$0xff] %vm368_vm0, %v3836_v50  ;;  %401 = vst.msk [vmem:[#allocation2 + $0x100] sm:$0xff] %vm368_vm0, %v3847_v51  ;;  %557 = vrot.lane.b32.xlu0 %v520_v5, %s4238_s27  ;;  %v524_v15 = vpack.c.bf16 %v494_v11, %v493_v10  ;;  %v499_v19 = vld [vmem:[#allocation2 + $0x81] sm:$0xff]  ;;  %v500_v20 = vld [vmem:[#allocation2 + $0x89] sm:$0xff] }
  0x26   : > { %402 = vst.msk [vmem:[#allocation2 + $0x108] sm:$0xff] %vm368_vm0, %v3848_v52  ;;  %403 = vst.msk [vmem:[#allocation2 + $0x110] sm:$0xff] %vm368_vm0, %v3851_v53  ;;  %v497_v16 = vld [vmem:[#allocation2 + $0x71] sm:$0xff]  ;;  %v498_v17 = vld [vmem:[#allocation2 + $0x79] sm:$0xff]  ;;  %v527_v24 = vpack.c.bf16 %v500_v20, %v499_v19 }
  0x27   : > { %400 = vst.msk [vmem:[#allocation2 + $0xf8] sm:$0xff] %vm368_vm0, %v3844_v54  ;;  %404 = vst.msk [vmem:[#allocation2 + $0x118] sm:$0xff] %vm368_vm0, %v3852_v55  ;;  %561 = vrot.lane.b32.xlu1 %v522_v9, %s4238_s27  ;;  %v526_v21 = vpack.c.bf16 %v498_v17, %v497_v16  ;;  %v503_v25 = vld [vmem:[#allocation2 + $0xa1] sm:$0xff]  ;;  %v504_v26 = vld [vmem:[#allocation2 + $0xa9] sm:$0xff] }
  0x28   : > { %405 = vst.msk [vmem:[#allocation2 + $0x120] sm:$0xff] %vm368_vm0, %v3855_v59  ;;  %406 = vst.msk [vmem:[#allocation2 + $0x128] sm:$0xff] %vm368_vm0, %v3856_v60  ;;  %v501_v22 = vld [vmem:[#allocation2 + $0x91] sm:$0xff]  ;;  %v502_v23 = vld [vmem:[#allocation2 + $0x99] sm:$0xff]  ;;  %v529_v30 = vpack.c.bf16 %v504_v26, %v503_v25 }
  0x29   : > { %407 = vst.msk [vmem:[#allocation2 + $0x130] sm:$0xff] %vm368_vm0, %v3859_v61  ;;  %408 = vst.msk [vmem:[#allocation2 + $0x138] sm:$0xff] %vm368_vm0, %v3860_v62  ;;  %563 = vrot.lane.b32.xlu0 %v523_v12, %s4238_s27  ;;  %v528_v27 = vpack.c.bf16 %v502_v23, %v501_v22  ;;  %v507_v31 = vld [vmem:[#allocation2 + $0xc1] sm:$0xff]  ;;  %v508_v32 = vld [vmem:[#allocation2 + $0xc9] sm:$0xff] }
  0x2a   : > { %v505_v28 = vld [vmem:[#allocation2 + $0xb1] sm:$0xff]  ;;  %v506_v29 = vld [vmem:[#allocation2 + $0xb9] sm:$0xff]  ;;  %v531_v36 = vpack.c.bf16 %v508_v32, %v507_v31  ;;  %v412_v42 = vld [vmem:[#allocation2 + $0x8] sm:$0xff] }
  0x2b   : > { %565 = vrot.lane.b32.xlu1 %v524_v15, %s4238_s27  ;;  %v530_v33 = vpack.c.bf16 %v506_v29, %v505_v28  ;;  %v511_v37 = vld [vmem:[#allocation2 + $0xe1] sm:$0xff]  ;;  %v512_v38 = vld [vmem:[#allocation2 + $0xe9] sm:$0xff]  ;;  %v447_v46 = vpack.c.bf16 %v412_v42, %v411_v43  ;;  %v414_v50 = vld [vmem:[#allocation2 + $0x18] sm:$0xff] }
  0x2c   : > { %v509_v34 = vld [vmem:[#allocation2 + $0xd1] sm:$0xff]  ;;  %v510_v35 = vld [vmem:[#allocation2 + $0xd9] sm:$0xff]  ;;  %v533_v44 = vpack.c.bf16 %v512_v38, %v511_v37  ;;  %v416_v54 = vld [vmem:[#allocation2 + $0x28] sm:$0xff] }
  0x2d   : > { %567 = vrot.lane.b32.xlu0 %v525_v18, %s4238_s27  ;;  %v532_v39 = vpack.c.bf16 %v510_v35, %v509_v34  ;;  %v515_v45 = vld [vmem:[#allocation2 + $0x101] sm:$0xff]  ;;  %v516_v47 = vld [vmem:[#allocation2 + $0x109] sm:$0xff]  ;;  %465 = vst.msk [vmem:[#allocation3] sm:$0xff] %vm368_vm0, %v447_v46  ;;  %v630_v63 = vld [vmem:[#allocation2 + $0x12] sm:$0xff] }
  0x2e   : > { %v513_v40 = vld [vmem:[#allocation2 + $0xf1] sm:$0xff]  ;;  %v514_v41 = vld [vmem:[#allocation2 + $0xf9] sm:$0xff]  ;;  %v535_v57 = vpack.c.bf16 %v516_v47, %v515_v45  ;;  %v628_v58 = vld [vmem:[#allocation2 + $0x2] sm:$0xff] }
  0x2f   : > { %569 = vrot.lane.b32.xlu1 %v526_v21, %s4238_s27  ;;  %v534_v48 = vpack.c.bf16 %v514_v41, %v513_v40  ;;  %v413_v49 = vld [vmem:[#allocation2 + $0x10] sm:$0xff]  ;;  %v518_v52 = vld [vmem:[#allocation2 + $0x119] sm:$0xff]  ;;  %v420_v61 = vld [vmem:[#allocation2 + $0x48] sm:$0xff] }
  0x30   : > { %v517_v51 = vld [vmem:[#allocation2 + $0x111] sm:$0xff]  ;;  %v448_v53 = vpack.c.bf16 %v414_v50, %v413_v49  ;;  %v415_v55 = vld [vmem:[#allocation2 + $0x20] sm:$0xff]  ;;  %v424_v5 = vld [vmem:[#allocation2 + $0x68] sm:$0xff] }
  0x31   : > { %571 = vrot.lane.b32.xlu0 %v527_v24, %s4238_s27  ;;  %v419_v56 = vld [vmem:[#allocation2 + $0x40] sm:$0xff]  ;;  %v629_v59 = vld [vmem:[#allocation2 + $0xa] sm:$0xff]  ;;  %v449_v60 = vpack.c.bf16 %v416_v54, %v415_v55  ;;  %v536_v62 = vpack.c.bf16 %v518_v52, %v517_v51  ;;  %v418_v3 = vld [vmem:[#allocation2 + $0x38] sm:$0xff] }
  0x32   : > { %466 = vst.msk [vmem:[#allocation3 + $0x18] sm:$0xff] %vm368_vm0, %v448_v53  ;;  %v631_v0 = vld [vmem:[#allocation2 + $0x1a] sm:$0xff]  ;;  %v451_v1 = vpack.c.bf16 %v420_v61, %v419_v56  ;;  %v417_v2 = vld [vmem:[#allocation2 + $0x30] sm:$0xff]  ;;  %v664_v8 = vpack.c.bf16 %v629_v59, %v628_v58  ;;  %v632_v9 = vld [vmem:[#allocation2 + $0x22] sm:$0xff] }
  0x33   : > { %573 = vrot.lane.b32.xlu1 %v528_v27, %s4238_s27  ;;  %467 = vst.msk [vmem:[#allocation3 + $0x30] sm:$0xff] %vm368_vm0, %v449_v60  ;;  %v423_v4 = vld [vmem:[#allocation2 + $0x60] sm:$0xff]  ;;  %v450_v6 = vpack.c.bf16 %v418_v3, %v417_v2  ;;  %v421_v10 = vld [vmem:[#allocation2 + $0x50] sm:$0xff]  ;;  %v422_v11 = vld [vmem:[#allocation2 + $0x58] sm:$0xff]  ;;  %v4382_v13 = vpack.c.bf16 %v631_v0, %v630_v63 }
  0x34   : > { %469 = vst.msk [vmem:[#allocation3 + $0x60] sm:$0xff] %vm368_vm0, %v451_v1  ;;  %v453_v7 = vpack.c.bf16 %v424_v5, %v423_v4  ;;  %v633_v12 = vld [vmem:[#allocation2 + $0x2a] sm:$0xff]  ;;  %v452_v14 = vpack.c.bf16 %v422_v11, %v421_v10  ;;  %v427_v15 = vld [vmem:[#allocation2 + $0x80] sm:$0xff]  ;;  %v634_v17 = vld [vmem:[#allocation2 + $0x32] sm:$0xff] }
  0x35   : > { %575 = vrot.lane.b32.xlu0 %v529_v30, %s4238_s27  ;;  %468 = vst.msk [vmem:[#allocation3 + $0x48] sm:$0xff] %vm368_vm0, %v450_v6  ;;  %v428_v16 = vld [vmem:[#allocation2 + $0x88] sm:$0xff]  ;;  %v635_v18 = vld [vmem:[#allocation2 + $0x3a] sm:$0xff]  ;;  %v425_v20 = vld [vmem:[#allocation2 + $0x70] sm:$0xff]  ;;  %v4388_v23 = vpack.c.bf16 %v633_v12, %v632_v9 }
  0x36   : > { %471 = vst.msk [vmem:[#allocation3 + $0x90] sm:$0xff] %vm368_vm0, %v453_v7  ;;  %v455_v19 = vpack.c.bf16 %v428_v16, %v427_v15  ;;  %470 = vst.msk [vmem:[#allocation3 + $0x78] sm:$0xff] %vm368_vm0, %v452_v14  ;;  %v426_v21 = vld [vmem:[#allocation2 + $0x78] sm:$0xff]  ;;  %v431_v22 = vld [vmem:[#allocation2 + $0xa0] sm:$0xff]  ;;  %v4393_v28 = vpack.c.bf16 %v635_v18, %v634_v17 }
  0x37   : > { %577 = vrot.lane.b32.xlu1 %v530_v33, %s4238_s27  ;;  %v636_v24 = vld [vmem:[#allocation2 + $0x42] sm:$0xff]  ;;  %v637_v25 = vld [vmem:[#allocation2 + $0x4a] sm:$0xff]  ;;  %v454_v26 = vpack.c.bf16 %v426_v21, %v425_v20  ;;  %v638_v29 = vld [vmem:[#allocation2 + $0x52] sm:$0xff] }
  0x38   : > { %473 = vst.msk [vmem:[#allocation3 + $0xc0] sm:$0xff] %vm368_vm0, %v455_v19  ;;  %v432_v27 = vld [vmem:[#allocation2 + $0xa8] sm:$0xff]  ;;  %v639_v30 = vld [vmem:[#allocation2 + $0x5a] sm:$0xff]  ;;  %v429_v32 = vld [vmem:[#allocation2 + $0x90] sm:$0xff]  ;;  %v4399_v38 = vpack.c.bf16 %v637_v25, %v636_v24 }
  0x39   : > { %579 = vrot.lane.b32.xlu0 %v531_v36, %s4238_s27  ;;  %v457_v31 = vpack.c.bf16 %v432_v27, %v431_v22  ;;  %472 = vst.msk [vmem:[#allocation3 + $0xa8] sm:$0xff] %vm368_vm0, %v454_v26  ;;  %v430_v33 = vld [vmem:[#allocation2 + $0x98] sm:$0xff]  ;;  %v435_v34 = vld [vmem:[#allocation2 + $0xc0] sm:$0xff]  ;;  %v436_v35 = vld [vmem:[#allocation2 + $0xc8] sm:$0xff]  ;;  %v4403_v43 = vpack.c.bf16 %v639_v30, %v638_v29 }
  0x3a   : > { %v456_v36 = vpack.c.bf16 %v430_v33, %v429_v32  ;;  %v459_v37 = vpack.c.bf16 %v436_v35, %v435_v34  ;;  %v433_v40 = vld [vmem:[#allocation2 + $0xb0] sm:$0xff]  ;;  %v434_v41 = vld [vmem:[#allocation2 + $0xb8] sm:$0xff]  ;;  %v439_v45 = vld [vmem:[#allocation2 + $0xe0] sm:$0xff] }
  0x3b   : > { %581 = vrot.lane.b32.xlu1 %v532_v39, %s4238_s27  ;;  %475 = vst.msk [vmem:[#allocation3 + $0xf0] sm:$0xff] %vm368_vm0, %v457_v31  ;;  %v640_v39 = vld [vmem:[#allocation2 + $0x62] sm:$0xff]  ;;  %v641_v42 = vld [vmem:[#allocation2 + $0x6a] sm:$0xff]  ;;  %v642_v47 = vld [vmem:[#allocation2 + $0x72] sm:$0xff] }
  0x3c   : > { %474 = vst.msk [vmem:[#allocation3 + $0xd8] sm:$0xff] %vm368_vm0, %v456_v36  ;;  %477 = vst.msk [vmem:[#allocation3 + $0x120] sm:$0xff] %vm368_vm0, %v459_v37  ;;  %v440_v46 = vld [vmem:[#allocation2 + $0xe8] sm:$0xff]  ;;  %v437_v50 = vld [vmem:[#allocation2 + $0xd0] sm:$0xff]  ;;  %v4410_v53 = vpack.c.bf16 %v641_v42, %v640_v39 }
  0x3d   : > { %583 = vrot.lane.b32.xlu0 %v533_v44, %s4238_s27  ;;  %v458_v44 = vpack.c.bf16 %v434_v41, %v433_v40  ;;  %v461_v49 = vpack.c.bf16 %v440_v46, %v439_v45  ;;  %v438_v51 = vld [vmem:[#allocation2 + $0xd8] sm:$0xff]  ;;  %v443_v52 = vld [vmem:[#allocation2 + $0x100] sm:$0xff]  ;;  %v444_v55 = vld [vmem:[#allocation2 + $0x108] sm:$0xff] }
  0x3e   : > { %v460_v54 = vpack.c.bf16 %v438_v51, %v437_v50  ;;  %v644_v56 = vld [vmem:[#allocation2 + $0x82] sm:$0xff]  ;;  %v463_v59 = vpack.c.bf16 %v444_v55, %v443_v52  ;;  %v441_v60 = vld [vmem:[#allocation2 + $0xf0] sm:$0xff]  ;;  %v442_v63 = vld [vmem:[#allocation2 + $0xf8] sm:$0xff] }
  0x3f   : > { %585 = vrot.lane.b32.xlu1 %v534_v48, %s4238_s27  ;;  %v643_v48 = vld [vmem:[#allocation2 + $0x7a] sm:$0xff]  ;;  %476 = vst.msk [vmem:[#allocation3 + $0x108] sm:$0xff] %vm368_vm0, %v458_v44  ;;  %479 = vst.msk [vmem:[#allocation3 + $0x150] sm:$0xff] %vm368_vm0, %v461_v49  ;;  %v646_v61 = vld [vmem:[#allocation2 + $0x92] sm:$0xff]  ;;  %v462_v0 = vpack.c.bf16 %v442_v63, %v441_v60 }
  0x40   : > { %v4415_v58 = vpack.c.bf16 %v643_v48, %v642_v47  ;;  %478 = vst.msk [vmem:[#allocation3 + $0x138] sm:$0xff] %vm368_vm0, %v460_v54  ;;  %481 = vst.msk [vmem:[#allocation3 + $0x180] sm:$0xff] %vm368_vm0, %v463_v59  ;;  %v445_v1 = vld [vmem:[#allocation2 + $0x110] sm:$0xff]  ;;  %v446_v3 = vld [vmem:[#allocation2 + $0x118] sm:$0xff] }
  0x41   : > { %587 = vrot.lane.b32.xlu0 %v535_v57, %s4238_s27  ;;  %v645_v57 = vld [vmem:[#allocation2 + $0x8a] sm:$0xff]  ;;  %v648_v4 = vld [vmem:[#allocation2 + $0xa2] sm:$0xff]  ;;  %480 = vst.msk [vmem:[#allocation3 + $0x168] sm:$0xff] %vm368_vm0, %v462_v0  ;;  %v464_v7 = vpack.c.bf16 %v446_v3, %v445_v1  ;;  %v651_v9 = vld [vmem:[#allocation2 + $0xba] sm:$0xff] }
  0x42   : > { %v672_v2 = vpack.c.bf16 %v645_v57, %v644_v56  ;;  %v649_v5 = vld [vmem:[#allocation2 + $0xaa] sm:$0xff]  ;;  %v652_v11 = vld [vmem:[#allocation2 + $0xc2] sm:$0xff]  ;;  %v654_v15 = vld [vmem:[#allocation2 + $0xd2] sm:$0xff] }
  0x43   : > { %589 = vrot.lane.b32.xlu1 %v536_v62, %s4238_s27  ;;  %v647_v62 = vld [vmem:[#allocation2 + $0x9a] sm:$0xff]  ;;  %482 = vst.msk [vmem:[#allocation3 + $0x198] sm:$0xff] %vm368_vm0, %v464_v7  ;;  %v674_v10 = vpack.c.bf16 %v649_v5, %v648_v4  ;;  %v653_v12 = vld [vmem:[#allocation2 + $0xca] sm:$0xff]  ;;  %v656_v18 = vld [vmem:[#allocation2 + $0xe2] sm:$0xff]  ;;  %s5550_s27 = smul.u32 96, %s5995_s22 }
  0x44   : > { %v673_v6 = vpack.c.bf16 %v647_v62, %v646_v61  ;;  %v655_v16 = vld [vmem:[#allocation2 + $0xda] sm:$0xff]  ;;  %v676_v17 = vpack.c.bf16 %v653_v12, %v652_v11  ;;  %v657_v19 = vld [vmem:[#allocation2 + $0xea] sm:$0xff]  ;;  %v658_v21 = vld [vmem:[#allocation2 + $0xf2] sm:$0xff] }
  0x45   : > { %700 = vrot.lane.b32.xlu0 %v664_v8, %s4239_s28  ;;  %v650_v8 = vld [vmem:[#allocation2 + $0xb2] sm:$0xff]  ;;  %v677_v20 = vpack.c.bf16 %v655_v16, %v654_v15  ;;  %v659_v22 = vld [vmem:[#allocation2 + $0xfa] sm:$0xff]  ;;  %v660_v24 = vld [vmem:[#allocation2 + $0x102] sm:$0xff]  ;;  %v678_v26 = vpack.c.bf16 %v657_v19, %v656_v18  ;;  %s5884_s11 = scalar_lea.vmem %s5935_s5, %s5550_s27 }
  0x46   : > { %v675_v14 = vpack.c.bf16 %v651_v9, %v650_v8  ;;  %v661_v25 = vld [vmem:[#allocation2 + $0x10a] sm:$0xff]  ;;  %v662_v27 = vld [vmem:[#allocation2 + $0x112] sm:$0xff]  ;;  %v663_v29 = vld [vmem:[#allocation2 + $0x11a] sm:$0xff]  ;;  %v679_v30 = vpack.c.bf16 %v659_v22, %v658_v21 }
  0x47   : > { %702 = vrot.lane.b32.xlu1 %v4382_v13, %s4239_s28  ;;  %v680_v31 = vpack.c.bf16 %v661_v25, %v660_v24  ;;  %v681_v32 = vpack.c.bf16 %v663_v29, %v662_v27  ;;  %v326_v33 = vld [vmem:[%s4298_s26 + $0xa0] sm:$0x7]  ;;  %v939_v37 = vld [vmem:[#allocation2 + $0x23] sm:$0xff]  ;;  %v941_v40 = vld [vmem:[#allocation2 + $0x33] sm:$0xff] }
  0x48   : > { %v367_v34 = vunpack.c.l.bf16 %v326_v33  ;;  %v938_v35 = vld [vmem:[#allocation2 + $0x1b] sm:$0xff]  ;;  %v944_v44 = vld [vmem:[#allocation2 + $0x4b] sm:$0xff]  ;;  %v945_v46 = vld [vmem:[#allocation2 + $0x53] sm:$0xff] }
  0x49   : > { %704 = vrot.lane.b32.xlu0 %v4388_v23, %s4239_s28  ;;  %v942_v41 = vld [vmem:[#allocation2 + $0x3b] sm:$0xff]  ;;  %v947_v49 = vld [vmem:[#allocation2 + $0x63] sm:$0xff]  ;;  %v948_v50 = vld [vmem:[#allocation2 + $0x6b] sm:$0xff] }
  0x4a   : > { %410 = vst.msk [vmem:[#allocation2 + $0x140] sm:$0x3f] %vm409_vm1, %v367_v34  ;;  %v975_v45 = vpack.c.bf16 %v942_v41, %v941_v40  ;;  %v946_v47 = vld [vmem:[#allocation2 + $0x5b] sm:$0xff]  ;;  %v949_v52 = vld [vmem:[#allocation2 + $0x73] sm:$0xff]  ;;  %v978_v54 = vpack.c.bf16 %v948_v50, %v947_v49  ;;  %v951_v56 = vld [vmem:[#allocation2 + $0x83] sm:$0xff] }
  0x4b   : > { %706 = vrot.lane.b32.xlu1 %v4393_v28, %s4239_s28  ;;  %v977_v51 = vpack.c.bf16 %v946_v47, %v945_v46  ;;  %v952_v57 = vld [vmem:[#allocation2 + $0x8b] sm:$0xff]  ;;  %v953_v60 = vld [vmem:[#allocation2 + $0x93] sm:$0xff]  ;;  %v954_v61 = vld [vmem:[#allocation2 + $0x9b] sm:$0xff] }
  0x4c   : > { %v980_v62 = vpack.c.bf16 %v952_v57, %v951_v56  ;;  %v955_v0 = vld [vmem:[#allocation2 + $0xa3] sm:$0xff]  ;;  %v956_v1 = vld [vmem:[#allocation2 + $0xab] sm:$0xff]  ;;  %v981_v3 = vpack.c.bf16 %v954_v61, %v953_v60  ;;  %v957_v4 = vld [vmem:[#allocation2 + $0xb3] sm:$0xff]  ;;  %v4243_v61 = vmov 0  }
  0x4d   : > { %708 = vrot.lane.b32.xlu0 %v4399_v38, %s4239_s28  ;;  %v958_v5 = vld [vmem:[#allocation2 + $0xbb] sm:$0xff]  ;;  %v959_v8 = vld [vmem:[#allocation2 + $0xc3] sm:$0xff]  ;;  %v960_v9 = vld [vmem:[#allocation2 + $0xcb] sm:$0xff]  ;;  %1946 = vmatprep.subr.bf16.mxu0 %v4243_v61 }
  0x4e   : > { %v983_v11 = vpack.c.bf16 %v958_v5, %v957_v4  ;;  %v961_v12 = vld [vmem:[#allocation2 + $0xd3] sm:$0xff]  ;;  %v984_v15 = vpack.c.bf16 %v960_v9, %v959_v8  ;;  %v964_v18 = vld [vmem:[#allocation2 + $0xeb] sm:$0xff]  ;;  %v966_v22 = vld [vmem:[#allocation2 + $0xfb] sm:$0xff]  ;;  %3958 = vmatprep.subr.bf16.mxu1 %v4243_v61  ;;  %4013 = vset.pattern.permute.xlu0 %v4243_v61 }
  0x4f   : > { %710 = vrot.lane.b32.xlu1 %v4403_v43, %s4239_s28  ;;  %v965_v21 = vld [vmem:[#allocation2 + $0xf3] sm:$0xff]  ;;  %v968_v27 = vld [vmem:[#allocation2 + $0x10b] sm:$0xff]  ;;  %v1099_v8 = vld [vmem:[#allocation2 + $0x9c] sm:$0xff] }
  0x50   : > { %v1084_v40 = vld [vmem:[#allocation2 + $0x24] sm:$0xff]  ;;  %v1085_v41 = vld [vmem:[#allocation2 + $0x2c] sm:$0xff]  ;;  %4012 = vset.pattern.permute.xlu1 %v4243_v61 }
  0x51   : > { %712 = vrot.lane.b32.xlu0 %v4410_v53, %s4239_s28  ;;  %v4475_v46 = vpack.c.bf16 %v1085_v41, %v1084_v40  ;;  %v1089_v49 = vld [vmem:[#allocation2 + $0x4c] sm:$0xff]  ;;  %v1092_v56 = vld [vmem:[#allocation2 + $0x64] sm:$0xff] }
  0x52   : > { %v1093_v57 = vld [vmem:[#allocation2 + $0x6c] sm:$0xff] }
  0x53   : > { %714 = vrot.lane.b32.xlu1 %v4415_v58, %s4239_s28  ;;  %v4015_v5 = vld [vmem:[%s5933_s3 + $0x8] sm:$0xff]  }
  0x54   : > { %v4019_v41 = vld [vmem:[%s5933_s3 + $0x28] sm:$0xff]  }
  0x55   : > { %716 = vrot.lane.b32.xlu0 %v672_v2, %s4239_s28 }
  0x57   : > { %718 = vrot.lane.b32.xlu1 %v673_v6, %s4239_s28 }
  0x59   : > { %720 = vrot.lane.b32.xlu0 %v674_v10, %s4239_s28 }
  0x5b   : > { %722 = vrot.lane.b32.xlu1 %v675_v14, %s4239_s28 }
  0x5d   : > { %724 = vrot.lane.b32.xlu0 %v676_v17, %s4239_s28 }
  0x5f   : > { %726 = vrot.lane.b32.xlu1 %v677_v20, %s4239_s28 }
  0x61   : > { %728 = vrot.lane.b32.xlu0 %v678_v26, %s4239_s28 }
  0x63   : > { %730 = vrot.lane.b32.xlu1 %v679_v30, %s4239_s28 }
  0x65   : > { %732 = vrot.lane.b32.xlu0 %v680_v31, %s4239_s28 }
  0x67   : > { %734 = vrot.lane.b32.xlu1 %v681_v32, %s4239_s28  ;;  %s4244_s28 = smov 88  }
  0x69   : > { %845 = vrot.lane.b32.xlu0 %v4382_v13, %s4240_s29  ;;  %v807_v13 = vld [vmem:[#allocation2 + $0x122] sm:$0xff] }
  0x6b   : > { %847 = vrot.lane.b32.xlu1 %v4388_v23, %s4240_s29  ;;  %v808_v23 = vld [vmem:[#allocation2 + $0x12a] sm:$0xff] }
  0x6c   : > { %v826_v36 = vpack.c.bf16 %v808_v23, %v807_v13  ;;  %v971_v13 = vld [vmem:[#allocation2 + $0x123] sm:$0xff]  ;;  %v972_v23 = vld [vmem:[#allocation2 + $0x12b] sm:$0xff] }
  0x6d   : > { %849 = vrot.lane.b32.xlu0 %v4393_v28, %s4240_s29  ;;  %v937_v28 = vld [vmem:[#allocation2 + $0x13] sm:$0xff] }
  0x6e   : > { %v973_v39 = vpack.c.bf16 %v938_v35, %v937_v28 }
  0x6f   : > { %851 = vrot.lane.b32.xlu1 %v4399_v38, %s4240_s29  ;;  %v940_v38 = vld [vmem:[#allocation2 + $0x2b] sm:$0xff] }
  0x70   : > { %v974_v42 = vpack.c.bf16 %v940_v38, %v939_v37  ;;  %v1083_v37 = vld [vmem:[#allocation2 + $0x1c] sm:$0xff]  ;;  %v990_v38 = vpack.c.bf16 %v972_v23, %v971_v13 }
  0x71   : > { %853 = vrot.lane.b32.xlu0 %v4403_v43, %s4240_s29  ;;  %v943_v43 = vld [vmem:[#allocation2 + $0x43] sm:$0xff] }
  0x72   : > { %v976_v48 = vpack.c.bf16 %v944_v44, %v943_v43  ;;  %v1086_v44 = vld [vmem:[#allocation2 + $0x34] sm:$0xff]  ;;  %v4018_v13 = vld [vmem:[%s5933_s3 + $0x20] sm:$0xff]  }
  0x73   : > { %855 = vrot.lane.b32.xlu1 %v4410_v53, %s4240_s29  ;;  %v950_v53 = vld [vmem:[#allocation2 + $0x7b] sm:$0xff] }
  0x74   : > { %v979_v59 = vpack.c.bf16 %v950_v53, %v949_v52  ;;  %v1090_v52 = vld [vmem:[#allocation2 + $0x54] sm:$0xff]  ;;  %v1091_v53 = vld [vmem:[#allocation2 + $0x5c] sm:$0xff] }
  0x75   : > { %857 = vrot.lane.b32.xlu0 %v4415_v58, %s4240_s29  ;;  %v4492_v60 = vpack.c.bf16 %v1091_v53, %v1090_v52  ;;  %v4020_v52 = vld [vmem:[%s5933_s3 + $0x30] sm:$0xff]  }
  0x77   : > { %859 = vrot.lane.b32.xlu1 %v672_v2, %s4240_s29 }
  0x79   : > { %861 = vrot.lane.b32.xlu0 %v673_v6, %s4240_s29  ;;  %v982_v6 = vpack.c.bf16 %v956_v1, %v955_v0  ;;  %v4498_v0 = vpack.c.bf16 %v1093_v57, %v1092_v56 }
  0x7b   : > { %863 = vrot.lane.b32.xlu1 %v674_v10, %s4240_s29 }
  0x7d   : > { %865 = vrot.lane.b32.xlu0 %v675_v14, %s4240_s29  ;;  %v962_v14 = vld [vmem:[#allocation2 + $0xdb] sm:$0xff] }
  0x7f   : > { %867 = vrot.lane.b32.xlu1 %v676_v17, %s4240_s29  ;;  %v963_v17 = vld [vmem:[#allocation2 + $0xe3] sm:$0xff] }
  0x80   : > { %v986_v24 = vpack.c.bf16 %v964_v18, %v963_v17  ;;  %v1102_v17 = vld [vmem:[#allocation2 + $0xb4] sm:$0xff]  ;;  %v1103_v18 = vld [vmem:[#allocation2 + $0xbc] sm:$0xff] }
  0x81   : > { %869 = vrot.lane.b32.xlu0 %v677_v20, %s4240_s29  ;;  %v985_v20 = vpack.c.bf16 %v962_v14, %v961_v12  ;;  %v1101_v12 = vld [vmem:[#allocation2 + $0xac] sm:$0xff] }
  0x83   : > { %871 = vrot.lane.b32.xlu1 %v678_v26, %s4240_s29  ;;  %v967_v26 = vld [vmem:[#allocation2 + $0x103] sm:$0xff] }
  0x84   : > { %v988_v33 = vpack.c.bf16 %v968_v27, %v967_v26  ;;  %v4540_v26 = vpack.c.bf16 %v1103_v18, %v1102_v17  ;;  %v1106_v27 = vld [vmem:[#allocation2 + $0xd4] sm:$0xff]  ;;  %v1262_v17 = vld [vmem:[#allocation2 + $0x13c] sm:$0xff] }
  0x85   : > { %873 = vrot.lane.b32.xlu0 %v679_v30, %s4240_s29  ;;  %v987_v30 = vpack.c.bf16 %v966_v22, %v965_v21  ;;  %v1104_v21 = vld [vmem:[#allocation2 + $0xc4] sm:$0xff]  ;;  %v1105_v22 = vld [vmem:[#allocation2 + $0xcc] sm:$0xff] }
  0x87   : > { %875 = vrot.lane.b32.xlu1 %v680_v31, %s4240_s29  ;;  %v969_v31 = vld [vmem:[#allocation2 + $0x113] sm:$0xff] }
  0x89   : > { %877 = vrot.lane.b32.xlu0 %v681_v32, %s4240_s29  ;;  %v970_v32 = vld [vmem:[#allocation2 + $0x11b] sm:$0xff] }
  0x8a   : > { %v989_v35 = vpack.c.bf16 %v970_v32, %v969_v31  ;;  %v1108_v32 = vld [vmem:[#allocation2 + $0xe4] sm:$0xff] }
  0x8b   : > { %879 = vrot.lane.b32.xlu1 %v826_v36, %s4240_s29  ;;  %v1082_v36 = vld [vmem:[#allocation2 + $0x14] sm:$0xff] }
  0x8c   : > { %v1118_v43 = vpack.c.bf16 %v1083_v37, %v1082_v36 }
  0x8d   : > { %1009 = vrot.lane.b32.xlu0 %v973_v39, %s4241_s30 }
  0x8f   : > { %1011 = vrot.lane.b32.xlu1 %v974_v42, %s4241_s30 }
  0x91   : > { %1013 = vrot.lane.b32.xlu0 %v975_v45, %s4241_s30  ;;  %v1087_v45 = vld [vmem:[#allocation2 + $0x3c] sm:$0xff] }
  0x93   : > { %1015 = vrot.lane.b32.xlu1 %v976_v48, %s4241_s30  ;;  %v556_v55 = vpop.permute.xlu0 %555  ;;  %v1088_v48 = vld [vmem:[#allocation2 + $0x44] sm:$0xff] }
  0x94   : > { %610 = vst.msk [vmem:[#allocation3] sm:$0xff] %vm609_vm2, %v556_v55 }
  0x95   : > { %v560_v58 = vpop.permute.xlu1 %559  ;;  %1017 = vrot.lane.b32.xlu0 %v977_v51, %s4241_s30  ;;  %v4479_v51 = vpack.c.bf16 %v1087_v45, %v1086_v44  ;;  %v1115_v44 = vld [vmem:[#allocation2 + $0x11c] sm:$0xff] }
  0x96   : > { %612 = vst.msk [vmem:[#allocation3 + $0x30] sm:$0xff] %vm609_vm2, %v560_v58 }
  0x97   : > { %1019 = vrot.lane.b32.xlu1 %v978_v54, %s4241_s30  ;;  %v558_v63 = vpop.permute.xlu0 %557  ;;  %v4484_v54 = vpack.c.bf16 %v1089_v49, %v1088_v48  ;;  %v1116_v48 = vld [vmem:[#allocation2 + $0x124] sm:$0xff]  ;;  %v1117_v49 = vld [vmem:[#allocation2 + $0x12c] sm:$0xff] }
  0x98   : > { %611 = vst.msk [vmem:[#allocation3 + $0x18] sm:$0xff] %vm609_vm2, %v558_v63  ;;  %v1095_v63 = vld [vmem:[#allocation2 + $0x7c] sm:$0xff] }
  0x99   : > { %v562_v2 = vpop.permute.xlu1 %561  ;;  %1021 = vrot.lane.b32.xlu0 %v979_v59, %s4241_s30  ;;  %v4014_v59 = vld [vmem:[%s5933_s3] sm:$0xff]  }
  0x9a   : > { %613 = vst.msk [vmem:[#allocation3 + $0x48] sm:$0xff] %vm609_vm2, %v562_v2  ;;  %1947 = vmatpush1.bf16.msra.mxu0 %v4014_v59  ;;  %v1096_v2 = vld [vmem:[#allocation2 + $0x84] sm:$0xff]  ;;  %3974 = vmatpush1.bf16.msra.mxu1 %v4014_v59 }
  0x9b   : > { %1023 = vrot.lane.b32.xlu1 %v980_v62, %s4241_s30  ;;  %v564_v7 = vpop.permute.xlu0 %563  ;;  %v1094_v62 = vld [vmem:[#allocation2 + $0x74] sm:$0xff]  ;;  %1948 = vmatprep.subr.bf16.mxu0 %v4243_v61 }
  0x9c   : > { %614 = vst.msk [vmem:[#allocation3 + $0x60] sm:$0xff] %vm609_vm2, %v564_v7  ;;  %3959 = vmatprep.subr.bf16.mxu1 %v4243_v61  ;;  %v1098_v7 = vld [vmem:[#allocation2 + $0x94] sm:$0xff] }
  0x9d   : > { %v566_v10 = vpop.permute.xlu1 %565  ;;  %1025 = vrot.lane.b32.xlu0 %v981_v3, %s4241_s30  ;;  %v1097_v3 = vld [vmem:[#allocation2 + $0x8c] sm:$0xff] }
  0x9e   : > { %615 = vst.msk [vmem:[#allocation3 + $0x78] sm:$0xff] %vm609_vm2, %v566_v10  ;;  %v4515_v9 = vpack.c.bf16 %v1097_v3, %v1096_v2  ;;  %1949 = vmatpush1.bf16.msra.mxu0 %v4015_v5  ;;  %3975 = vmatpush1.bf16.msra.mxu1 %v4015_v5  ;;  %v4023_v3 = vld [vmem:[%s5933_s3 + $0x48] sm:$0xff]  }
  0x9f   : > { %1027 = vrot.lane.b32.xlu1 %v982_v6, %s4241_s30  ;;  %v568_v16 = vpop.permute.xlu0 %567  ;;  %v4509_v6 = vpack.c.bf16 %v1095_v63, %v1094_v62  ;;  %1950 = vmatprep.subr.bf16.mxu0 %v4243_v61  ;;  %v4022_v63 = vld [vmem:[%s5933_s3 + $0x40] sm:$0xff]  }
  0xa0   : > { %616 = vst.msk [vmem:[#allocation3 + $0x90] sm:$0xff] %vm609_vm2, %v568_v16  ;;  %v4525_v16 = vpack.c.bf16 %v1099_v8, %v1098_v7  ;;  %3960 = vmatprep.subr.bf16.mxu1 %v4243_v61  ;;  %v4026_v7 = vld [vmem:[%s5933_s3 + $0x60] sm:$0xff]  }
  0xa1   : > { %v570_v19 = vpop.permute.xlu1 %569  ;;  %1029 = vrot.lane.b32.xlu0 %v983_v11, %s4241_s30  ;;  %v1100_v11 = vld [vmem:[#allocation2 + $0xa4] sm:$0xff] }
  0xa2   : > { %617 = vst.msk [vmem:[#allocation3 + $0xa8] sm:$0xff] %vm609_vm2, %v570_v19  ;;  %v4531_v19 = vpack.c.bf16 %v1101_v12, %v1100_v11 }
  0xa3   : > { %1031 = vrot.lane.b32.xlu1 %v984_v15, %s4241_s30  ;;  %v572_v25 = vpop.permute.xlu0 %571  ;;  %v4016_v15 = vld [vmem:[%s5933_s3 + $0x10] sm:$0xff]  }
  0xa4   : > { %618 = vst.msk [vmem:[#allocation3 + $0xc0] sm:$0xff] %vm609_vm2, %v572_v25  ;;  %1951 = vmatpush1.bf16.msra.mxu0 %v4016_v15  ;;  %v4017_v25 = vld [vmem:[%s5933_s3 + $0x18] sm:$0xff]   ;;  %3976 = vmatpush1.bf16.msra.mxu1 %v4016_v15 }
  0xa5   : > { %v574_v29 = vpop.permute.xlu1 %573  ;;  %1033 = vrot.lane.b32.xlu0 %v985_v20, %s4241_s30  ;;  %1952 = vmatprep.subr.bf16.mxu0 %v4243_v61 }
  0xa6   : > { %619 = vst.msk [vmem:[#allocation3 + $0xd8] sm:$0xff] %vm609_vm2, %v574_v29  ;;  %3961 = vmatprep.subr.bf16.mxu1 %v4243_v61  ;;  %v1107_v29 = vld [vmem:[#allocation2 + $0xdc] sm:$0xff] }
  0xa7   : > { %1035 = vrot.lane.b32.xlu1 %v986_v24, %s4241_s30  ;;  %v576_v34 = vpop.permute.xlu0 %575  ;;  %v4555_v23 = vpack.c.bf16 %v1107_v29, %v1106_v27 }
  0xa8   : > { %620 = vst.msk [vmem:[#allocation3 + $0xf0] sm:$0xff] %vm609_vm2, %v576_v34  ;;  %1953 = vmatpush1.bf16.msra.mxu0 %v4017_v25  ;;  %3977 = vmatpush1.bf16.msra.mxu1 %v4017_v25  ;;  %v1374_v25 = vld [vmem:[#allocation2 + $0x35] sm:$0xff] }
  0xa9   : > { %v578_v28 = vpop.permute.xlu1 %577  ;;  %1037 = vrot.lane.b32.xlu0 %v987_v30, %s4241_s30  ;;  %v4546_v30 = vpack.c.bf16 %v1105_v22, %v1104_v21  ;;  %1954 = vmatprep.subr.bf16.mxu0 %v4243_v61  ;;  %v1373_v21 = vld [vmem:[#allocation2 + $0x2d] sm:$0xff] }
  0xaa   : > { %621 = vst.msk [vmem:[#allocation3 + $0x108] sm:$0xff] %vm609_vm2, %v578_v28  ;;  %3962 = vmatprep.subr.bf16.mxu1 %v4243_v61  ;;  %v1110_v28 = vld [vmem:[#allocation2 + $0xf4] sm:$0xff] }
  0xab   : > { %1039 = vrot.lane.b32.xlu1 %v988_v33, %s4241_s30  ;;  %v580_v39 = vpop.permute.xlu0 %579  ;;  %v1109_v33 = vld [vmem:[#allocation2 + $0xec] sm:$0xff] }
  0xac   : > { %622 = vst.msk [vmem:[#allocation3 + $0x120] sm:$0xff] %vm609_vm2, %v580_v39  ;;  %v4561_v36 = vpack.c.bf16 %v1109_v33, %v1108_v32  ;;  %1955 = vmatpush1.bf16.msra.mxu0 %v4018_v13  ;;  %v1113_v39 = vld [vmem:[#allocation2 + $0x10c] sm:$0xff]  ;;  %3978 = vmatpush1.bf16.msra.mxu1 %v4018_v13  ;;  %v1379_v13 = vld [vmem:[#allocation2 + $0x5d] sm:$0xff] }
  0xad   : > { %v582_v42 = vpop.permute.xlu1 %581  ;;  %1041 = vrot.lane.b32.xlu0 %v989_v35, %s4241_s30  ;;  %v1111_v35 = vld [vmem:[#allocation2 + $0xfc] sm:$0xff]  ;;  %1956 = vmatprep.subr.bf16.mxu0 %v4243_v61 }
  0xae   : > { %623 = vst.msk [vmem:[#allocation3 + $0x138] sm:$0xff] %vm609_vm2, %v582_v42  ;;  %v4570_v42 = vpack.c.bf16 %v1111_v35, %v1110_v28  ;;  %3963 = vmatprep.subr.bf16.mxu1 %v4243_v61  ;;  %v1380_v35 = vld [vmem:[#allocation2 + $0x65] sm:$0xff] }
  0xaf   : > { %1043 = vrot.lane.b32.xlu1 %v990_v38, %s4241_s30  ;;  %v584_v47 = vpop.permute.xlu0 %583  ;;  %v1112_v38 = vld [vmem:[#allocation2 + $0x104] sm:$0xff]  ;;  %s5560_s30 = scalar_lea.vmem %s5931_s1, %s5550_s27 }
  0xb0   : > { %624 = vst.msk [vmem:[#allocation3 + $0x150] sm:$0xff] %vm609_vm2, %v584_v47  ;;  %v4576_v45 = vpack.c.bf16 %v1113_v39, %v1112_v38  ;;  %1957 = vmatpush1.bf16.msra.mxu0 %v4019_v41  ;;  %3979 = vmatpush1.bf16.msra.mxu1 %v4019_v41  ;;  %v1382_v39 = vld [vmem:[#allocation2 + $0x75] sm:$0xff] }
  0xb1   : > { %v586_v50 = vpop.permute.xlu1 %585  ;;  %1154 = vrot.lane.b32.xlu0 %v1118_v43, %s4242_s7  ;;  %v1114_v43 = vld [vmem:[#allocation2 + $0x114] sm:$0xff]  ;;  %1958 = vmatprep.subr.bf16.mxu0 %v4243_v61 }
  0xb2   : > { %625 = vst.msk [vmem:[#allocation3 + $0x168] sm:$0xff] %vm609_vm2, %v586_v50  ;;  %v4585_v53 = vpack.c.bf16 %v1115_v44, %v1114_v43  ;;  %3964 = vmatprep.subr.bf16.mxu1 %v4243_v61  ;;  %v1384_v43 = vld [vmem:[#allocation2 + $0x85] sm:$0xff]  ;;  %v1385_v44 = vld [vmem:[#allocation2 + $0x8d] sm:$0xff] }
  0xb3   : > { %1156 = vrot.lane.b32.xlu1 %v4475_v46, %s4242_s7  ;;  %v588_v55 = vpop.permute.xlu0 %587 }
  0xb4   : > { %626 = vst.msk [vmem:[#allocation3 + $0x180] sm:$0xff] %vm609_vm2, %v588_v55  ;;  %v4591_v55 = vpack.c.bf16 %v1117_v49, %v1116_v48  ;;  %1959 = vmatpush1.bf16.msra.mxu0 %v4020_v52  ;;  %3980 = vmatpush1.bf16.msra.mxu1 %v4020_v52  ;;  %v1386_v48 = vld [vmem:[#allocation2 + $0x95] sm:$0xff]  ;;  %v1387_v49 = vld [vmem:[#allocation2 + $0x9d] sm:$0xff]  ;;  %v1414_v52 = vpack.c.bf16 %v1385_v44, %v1384_v43 }
  0xb5   : > { %v590_v58 = vpop.permute.xlu1 %589  ;;  %1158 = vrot.lane.b32.xlu0 %v4479_v51, %s4242_s7  ;;  %1960 = vmatprep.subr.bf16.mxu0 %v4243_v61 }
  0xb6   : > { %627 = vst.msk [vmem:[#allocation3 + $0x198] sm:$0xff] %vm609_vm2, %v590_v58  ;;  %v4021_v58 = vld [vmem:[%s5933_s3 + $0x38] sm:$0xff]   ;;  %3965 = vmatprep.subr.bf16.mxu1 %v4243_v61 }
  0xb7   : > { %1160 = vrot.lane.b32.xlu1 %v4484_v54, %s4242_s7  ;;  %v701_v1 = vpop.permute.xlu0 %700 }
  0xb8   : > { %755 = vst.msk [vmem:[#allocation3] sm:$0xff] %vm754_vm3, %v701_v1  ;;  %1961 = vmatpush1.bf16.msra.mxu0 %v4021_v58  ;;  %3981 = vmatpush1.bf16.msra.mxu1 %v4021_v58  ;;  %v1390_v58 = vld [vmem:[#allocation2 + $0xb5] sm:$0xff] }
  0xb9   : > { %v703_v4 = vpop.permute.xlu1 %702  ;;  %1162 = vrot.lane.b32.xlu0 %v4492_v60, %s4242_s7  ;;  %1962 = vmatprep.subr.bf16.mxu0 %v4243_v61 }
  0xba   : > { %756 = vst.msk [vmem:[#allocation3 + $0x18] sm:$0xff] %vm754_vm3, %v703_v4  ;;  %3966 = vmatprep.subr.bf16.mxu1 %v4243_v61 }
  0xbb   : > { %1164 = vrot.lane.b32.xlu1 %v4498_v0, %s4242_s7  ;;  %v705_v10 = vpop.permute.xlu0 %704 }
  0xbc   : > { %757 = vst.msk [vmem:[#allocation3 + $0x30] sm:$0xff] %vm754_vm3, %v705_v10  ;;  %1963 = vmatpush1.bf16.msra.mxu0 %v4022_v63  ;;  %3982 = vmatpush1.bf16.msra.mxu1 %v4022_v63  ;;  %v4027_v10 = vld [vmem:[%s5933_s3 + $0x68] sm:$0xff]  }
  0xbd   : > { %v707_v14 = vpop.permute.xlu1 %706  ;;  %1166 = vrot.lane.b32.xlu0 %v4509_v6, %s4242_s7  ;;  %1964 = vmatprep.subr.bf16.mxu0 %v4243_v61 }
  0xbe   : > { %758 = vst.msk [vmem:[#allocation3 + $0x48] sm:$0xff] %vm754_vm3, %v707_v14  ;;  %3967 = vmatprep.subr.bf16.mxu1 %v4243_v61  ;;  %v4028_v14 = vld [vmem:[%s5933_s3 + $0x70] sm:$0xff]  }
  0xbf   : > { %1168 = vrot.lane.b32.xlu1 %v4515_v9, %s4242_s7  ;;  %v709_v20 = vpop.permute.xlu0 %708 }
  0xc0   : > { %759 = vst.msk [vmem:[#allocation3 + $0x60] sm:$0xff] %vm754_vm3, %v709_v20  ;;  %1965 = vmatpush1.bf16.msra.mxu0 %v4023_v3  ;;  %3983 = vmatpush1.bf16.msra.mxu1 %v4023_v3  ;;  %v1372_v20 = vld [vmem:[#allocation2 + $0x25] sm:$0xff] }
  0xc1   : > { %v711_v24 = vpop.permute.xlu1 %710  ;;  %1170 = vrot.lane.b32.xlu0 %v4525_v16, %s4242_s7  ;;  %1966 = vmatprep.subr.bf16.mxu0 %v4243_v61  ;;  %v1408_v29 = vpack.c.bf16 %v1373_v21, %v1372_v20 }
  0xc2   : > { %760 = vst.msk [vmem:[#allocation3 + $0x78] sm:$0xff] %vm754_vm3, %v711_v24  ;;  %3968 = vmatprep.subr.bf16.mxu1 %v4243_v61 }
  0xc3   : > { %1172 = vrot.lane.b32.xlu1 %v4531_v19, %s4242_s7  ;;  %v713_v31 = vpop.permute.xlu0 %712 }
  0xc4   : > { %761 = vst.msk [vmem:[#allocation3 + $0x90] sm:$0xff] %vm754_vm3, %v713_v31  ;;  %v1377_v31 = vld [vmem:[#allocation2 + $0x4d] sm:$0xff] }
  0xc5   : > { %v715_v34 = vpop.permute.xlu1 %714  ;;  %1174 = vrot.lane.b32.xlu0 %v4540_v26, %s4242_s7 }
  0xc6   : > { %762 = vst.msk [vmem:[#allocation3 + $0xa8] sm:$0xff] %vm754_vm3, %v715_v34  ;;  %v1378_v34 = vld [vmem:[#allocation2 + $0x55] sm:$0xff] }
  0xc7   : > { %1176 = vrot.lane.b32.xlu1 %v4546_v30, %s4242_s7  ;;  %v717_v37 = vpop.permute.xlu0 %716 }
  0xc8   : > { %763 = vst.msk [vmem:[#allocation3 + $0xc0] sm:$0xff] %vm754_vm3, %v717_v37  ;;  %v1411_v37 = vpack.c.bf16 %v1379_v13, %v1378_v34  ;;  %v1537_v34 = vld [vmem:[#allocation2 + $0x2e] sm:$0xff] }
  0xc9   : > { %v719_v40 = vpop.permute.xlu1 %718  ;;  %1178 = vrot.lane.b32.xlu0 %v4555_v23, %s4242_s7 }
  0xca   : > { %764 = vst.msk [vmem:[#allocation3 + $0xd8] sm:$0xff] %vm754_vm3, %v719_v40  ;;  %v1383_v40 = vld [vmem:[#allocation2 + $0x7d] sm:$0xff] }
  0xcb   : > { %1180 = vrot.lane.b32.xlu1 %v4561_v36, %s4242_s7  ;;  %v721_v47 = vpop.permute.xlu0 %720 }
  0xcc   : > { %765 = vst.msk [vmem:[#allocation3 + $0xf0] sm:$0xff] %vm754_vm3, %v721_v47 }
  0xcd   : > { %v723_v50 = vpop.permute.xlu1 %722  ;;  %1182 = vrot.lane.b32.xlu0 %v4570_v42, %s4242_s7 }
  0xce   : > { %766 = vst.msk [vmem:[#allocation3 + $0x108] sm:$0xff] %vm754_vm3, %v723_v50 }
  0xcf   : > { %1184 = vrot.lane.b32.xlu1 %v4576_v45, %s4242_s7  ;;  %v725_v56 = vpop.permute.xlu0 %724 }
  0xd0   : > { %767 = vst.msk [vmem:[#allocation3 + $0x120] sm:$0xff] %vm754_vm3, %v725_v56  ;;  %v1415_v56 = vpack.c.bf16 %v1387_v49, %v1386_v48  ;;  %v1545_v48 = vld [vmem:[#allocation2 + $0x6e] sm:$0xff] }
  0xd1   : > { %v727_v57 = vpop.permute.xlu1 %726  ;;  %1186 = vrot.lane.b32.xlu0 %v4585_v53, %s4242_s7 }
  0xd2   : > { %768 = vst.msk [vmem:[#allocation3 + $0x138] sm:$0xff] %vm754_vm3, %v727_v57 }
  0xd3   : > { %1188 = vrot.lane.b32.xlu1 %v4591_v55, %s4242_s7  ;;  %v729_v59 = vpop.permute.xlu0 %728 }
  0xd4   : > { %769 = vst.msk [vmem:[#allocation3 + $0x150] sm:$0xff] %vm754_vm3, %v729_v59  ;;  %v1391_v59 = vld [vmem:[#allocation2 + $0xbd] sm:$0xff] }
  0xd5   : > { %v731_v62 = vpop.permute.xlu1 %730  ;;  %1299 = vrot.lane.b32.xlu0 %v4475_v46, %s4244_s28  ;;  %v1417_v3 = vpack.c.bf16 %v1391_v59, %v1390_v58  ;;  %v1549_v58 = vld [vmem:[#allocation2 + $0x8e] sm:$0xff] }
  0xd6   : > { %770 = vst.msk [vmem:[#allocation3 + $0x168] sm:$0xff] %vm754_vm3, %v731_v62 }
  0xd7   : > { %1301 = vrot.lane.b32.xlu1 %v4479_v51, %s4244_s28  ;;  %v733_v1 = vpop.permute.xlu0 %732 }
  0xd8   : > { %771 = vst.msk [vmem:[#allocation3 + $0x180] sm:$0xff] %vm754_vm3, %v733_v1  ;;  %v1392_v1 = vld [vmem:[#allocation2 + $0xc5] sm:$0xff] }
  0xd9   : > { %v735_v2 = vpop.permute.xlu1 %734  ;;  %1303 = vrot.lane.b32.xlu0 %v4484_v54, %s4244_s28  ;;  %v4024_v54 = vld [vmem:[%s5933_s3 + $0x50] sm:$0xff]  }
  0xda   : > { %772 = vst.msk [vmem:[#allocation3 + $0x198] sm:$0xff] %vm754_vm3, %v735_v2  ;;  %1967 = vmatpush1.bf16.msra.mxu0 %v4024_v54  ;;  %3984 = vmatpush1.bf16.msra.mxu1 %v4024_v54  ;;  %v1393_v2 = vld [vmem:[#allocation2 + $0xcd] sm:$0xff]  ;;  %v1395_v54 = vld [vmem:[#allocation2 + $0xdd] sm:$0xff] }
  0xdb   : > { %1305 = vrot.lane.b32.xlu1 %v4492_v60, %s4244_s28  ;;  %v846_v46 = vpop.permute.xlu0 %845  ;;  %1968 = vmatprep.subr.bf16.mxu0 %v4243_v61 }
  0xdc   : > { %900 = vst.msk [vmem:[#allocation3] sm:$0xff] %vm899_vm4, %v846_v46  ;;  %3969 = vmatprep.subr.bf16.mxu1 %v4243_v61 }
  0xdd   : > { %902 = vst.msk [vmem:[#allocation3 + $0x8] sm:$0xff] %vm901_vm5, %v846_v46  ;;  %v848_v51 = vpop.permute.xlu1 %847  ;;  %1307 = vrot.lane.b32.xlu0 %v4498_v0, %s4244_s28  ;;  %v4025_v0 = vld [vmem:[%s5933_s3 + $0x58] sm:$0xff]  }
  0xde   : > { %903 = vst.msk [vmem:[#allocation3 + $0x18] sm:$0xff] %vm899_vm4, %v848_v51  ;;  %1969 = vmatpush1.bf16.msra.mxu0 %v4025_v0  ;;  %3985 = vmatpush1.bf16.msra.mxu1 %v4025_v0  ;;  %v1396_v0 = vld [vmem:[#allocation2 + $0xe5] sm:$0xff] }
  0xdf   : > { %904 = vst.msk [vmem:[#allocation3 + $0x20] sm:$0xff] %vm901_vm5, %v848_v51  ;;  %1309 = vrot.lane.b32.xlu1 %v4509_v6, %s4244_s28  ;;  %v850_v60 = vpop.permute.xlu0 %849  ;;  %1970 = vmatprep.subr.bf16.mxu0 %v4243_v61  ;;  %v1394_v51 = vld [vmem:[#allocation2 + $0xd5] sm:$0xff] }
  0xe0   : > { %905 = vst.msk [vmem:[#allocation3 + $0x30] sm:$0xff] %vm899_vm4, %v850_v60  ;;  %3970 = vmatprep.subr.bf16.mxu1 %v4243_v61 }
  0xe1   : > { %906 = vst.msk [vmem:[#allocation3 + $0x38] sm:$0xff] %vm901_vm5, %v850_v60  ;;  %v852_v4 = vpop.permute.xlu1 %851  ;;  %1311 = vrot.lane.b32.xlu0 %v4515_v9, %s4244_s28 }
  0xe2   : > { %907 = vst.msk [vmem:[#allocation3 + $0x48] sm:$0xff] %vm899_vm4, %v852_v4  ;;  %1971 = vmatpush1.bf16.msra.mxu0 %v4026_v7  ;;  %3986 = vmatpush1.bf16.msra.mxu1 %v4026_v7 }
  0xe3   : > { %908 = vst.msk [vmem:[#allocation3 + $0x50] sm:$0xff] %vm901_vm5, %v852_v4  ;;  %1313 = vrot.lane.b32.xlu1 %v4525_v16, %s4244_s28  ;;  %v854_v5 = vpop.permute.xlu0 %853  ;;  %1972 = vmatprep.subr.bf16.mxu0 %v4243_v61  ;;  %v1261_v16 = vld [vmem:[#allocation2 + $0x134] sm:$0xff]  ;;  %v1418_v4 = vpack.c.bf16 %v1393_v2, %v1392_v1 }
  0xe4   : > { %909 = vst.msk [vmem:[#allocation3 + $0x60] sm:$0xff] %vm899_vm4, %v854_v5  ;;  %3971 = vmatprep.subr.bf16.mxu1 %v4243_v61  ;;  %v1280_v22 = vpack.c.bf16 %v1262_v17, %v1261_v16  ;;  %v1402_v17 = vld [vmem:[#allocation2 + $0x115] sm:$0xff] }
  0xe5   : > { %910 = vst.msk [vmem:[#allocation3 + $0x68] sm:$0xff] %vm901_vm5, %v854_v5  ;;  %v856_v6 = vpop.permute.xlu1 %855  ;;  %1315 = vrot.lane.b32.xlu0 %v4531_v19, %s4244_s28  ;;  %v4029_v19 = vld [vmem:[%s5933_s3 + $0x78] sm:$0xff]   ;;  %v1397_v5 = vld [vmem:[#allocation2 + $0xed] sm:$0xff] }
  0xe6   : > { %911 = vst.msk [vmem:[#allocation3 + $0x78] sm:$0xff] %vm899_vm4, %v856_v6  ;;  %1973 = vmatpush1.bf16.msra.mxu0 %v4027_v10  ;;  %3987 = vmatpush1.bf16.msra.mxu1 %v4027_v10 }
  0xe7   : > { %912 = vst.msk [vmem:[#allocation3 + $0x80] sm:$0xff] %vm901_vm5, %v856_v6  ;;  %1317 = vrot.lane.b32.xlu1 %v4540_v26, %s4244_s28  ;;  %v858_v8 = vpop.permute.xlu0 %857  ;;  %1974 = vmatprep.subr.bf16.mxu0 %v4243_v61  ;;  %v1375_v26 = vld [vmem:[#allocation2 + $0x3d] sm:$0xff]  ;;  %v1419_v6 = vpack.c.bf16 %v1395_v54, %v1394_v51  ;;  %v1553_v51 = vld [vmem:[#allocation2 + $0xae] sm:$0xff] }
  0xe8   : > { %913 = vst.msk [vmem:[#allocation3 + $0x90] sm:$0xff] %vm899_vm4, %v858_v8  ;;  %3972 = vmatprep.subr.bf16.mxu1 %v4243_v61  ;;  %v1409_v32 = vpack.c.bf16 %v1375_v26, %v1374_v25  ;;  %v1405_v25 = vld [vmem:[#allocation2 + $0x12d] sm:$0xff] }
  0xe9   : > { %914 = vst.msk [vmem:[#allocation3 + $0x98] sm:$0xff] %vm901_vm5, %v858_v8  ;;  %v860_v9 = vpop.permute.xlu1 %859  ;;  %1319 = vrot.lane.b32.xlu0 %v4546_v30, %s4244_s28  ;;  %v1376_v30 = vld [vmem:[#allocation2 + $0x45] sm:$0xff]  ;;  %v1398_v8 = vld [vmem:[#allocation2 + $0xf5] sm:$0xff] }
  0xea   : > { %915 = vst.msk [vmem:[#allocation3 + $0xa8] sm:$0xff] %vm899_vm4, %v860_v9  ;;  %1975 = vmatpush1.bf16.msra.mxu0 %v4028_v14  ;;  %3988 = vmatpush1.bf16.msra.mxu1 %v4028_v14  ;;  %v1410_v28 = vpack.c.bf16 %v1377_v31, %v1376_v30  ;;  %v1401_v14 = vld [vmem:[#allocation2 + $0x10d] sm:$0xff] }
  0xeb   : > { %916 = vst.msk [vmem:[#allocation3 + $0xb0] sm:$0xff] %vm901_vm5, %v860_v9  ;;  %1321 = vrot.lane.b32.xlu1 %v4555_v23, %s4244_s28  ;;  %v862_v11 = vpop.permute.xlu0 %861  ;;  %1976 = vmatprep.subr.bf16.mxu0 %v4243_v61  ;;  %v1399_v9 = vld [vmem:[#allocation2 + $0xfd] sm:$0xff] }
  0xec   : > { %917 = vst.msk [vmem:[#allocation3 + $0xc0] sm:$0xff] %vm899_vm4, %v862_v11  ;;  %3973 = vmatprep.subr.bf16.mxu1 %v4243_v61 }
  0xed   : > { %918 = vst.msk [vmem:[#allocation3 + $0xc8] sm:$0xff] %vm901_vm5, %v862_v11  ;;  %v864_v12 = vpop.permute.xlu1 %863  ;;  %1323 = vrot.lane.b32.xlu0 %v4561_v36, %s4244_s28  ;;  %v1381_v36 = vld [vmem:[#allocation2 + $0x6d] sm:$0xff]  ;;  %v1420_v11 = vpack.c.bf16 %v1397_v5, %v1396_v0 }
  0xee   : > { %919 = vst.msk [vmem:[#allocation3 + $0xd8] sm:$0xff] %vm899_vm4, %v864_v12  ;;  %1977 = vmatpush1.bf16.msra.mxu0 %v4029_v19  ;;  %3989 = vmatpush1.bf16.msra.mxu1 %v4029_v19  ;;  %v4742_v19 = vld [vmem:[%s5933_s3 + $0x80] sm:$0xff]  }
  0xef   : > { %920 = vst.msk [vmem:[#allocation3 + $0xe0] sm:$0xff] %vm901_vm5, %v864_v12  ;;  %1325 = vrot.lane.b32.xlu1 %v4570_v42, %s4244_s28  ;;  %v866_v15 = vpop.permute.xlu0 %865  ;;  %v1412_v42 = vpack.c.bf16 %v1381_v36, %v1380_v35  ;;  %v1400_v12 = vld [vmem:[#allocation2 + $0x105] sm:$0xff]  ;;  %3906 = vmatprep.subr.bf16.mxu1 %v4742_v19 }
  0xf0   : > { %921 = vst.msk [vmem:[#allocation3 + $0xf0] sm:$0xff] %vm899_vm4, %v866_v15  ;;  %v1422_v21 = vpack.c.bf16 %v1401_v14, %v1400_v12 }
  0xf1   : > { %922 = vst.msk [vmem:[#allocation3 + $0xf8] sm:$0xff] %vm901_vm5, %v866_v15  ;;  %v868_v18 = vpop.permute.xlu1 %867  ;;  %1327 = vrot.lane.b32.xlu0 %v4576_v45, %s4244_s28  ;;  %v1413_v45 = vpack.c.bf16 %v1383_v40, %v1382_v39  ;;  %v1421_v15 = vpack.c.bf16 %v1399_v9, %v1398_v8  ;;  %v1541_v39 = vld [vmem:[#allocation2 + $0x4e] sm:$0xff] }
  0xf2   : > { %923 = vst.msk [vmem:[#allocation3 + $0x108] sm:$0xff] %vm899_vm4, %v868_v18  ;;  %v1557_v8 = vld [vmem:[#allocation2 + $0xce] sm:$0xff] }
  0xf3   : > { %924 = vst.msk [vmem:[#allocation3 + $0x110] sm:$0xff] %vm901_vm5, %v868_v18  ;;  %1329 = vrot.lane.b32.xlu1 %v4585_v53, %s4244_s28  ;;  %v870_v24 = vpop.permute.xlu0 %869  ;;  %v1388_v53 = vld [vmem:[#allocation2 + $0xa5] sm:$0xff]  ;;  %v1403_v18 = vld [vmem:[#allocation2 + $0x11d] sm:$0xff] }
  0xf4   : > { %925 = vst.msk [vmem:[#allocation3 + $0x120] sm:$0xff] %vm899_vm4, %v870_v24 }
  0xf5   : > { %926 = vst.msk [vmem:[#allocation3 + $0x128] sm:$0xff] %vm901_vm5, %v870_v24  ;;  %v872_v27 = vpop.permute.xlu1 %871  ;;  %1331 = vrot.lane.b32.xlu0 %v4591_v55, %s4244_s28  ;;  %v1389_v55 = vld [vmem:[#allocation2 + $0xad] sm:$0xff]  ;;  %v1404_v24 = vld [vmem:[#allocation2 + $0x125] sm:$0xff] }
  0xf6   : > { %927 = vst.msk [vmem:[#allocation3 + $0x138] sm:$0xff] %vm899_vm4, %v872_v27  ;;  %v1416_v63 = vpack.c.bf16 %v1389_v55, %v1388_v53  ;;  %v1424_v31 = vpack.c.bf16 %v1405_v25, %v1404_v24 }
  0xf7   : > { %928 = vst.msk [vmem:[#allocation3 + $0x140] sm:$0xff] %vm901_vm5, %v872_v27  ;;  %1333 = vrot.lane.b32.xlu1 %v1280_v22, %s4244_s28  ;;  %v874_v33 = vpop.permute.xlu0 %873  ;;  %v1423_v22 = vpack.c.bf16 %v1403_v18, %v1402_v17  ;;  %v1406_v27 = vld [vmem:[#allocation2 + $0x135] sm:$0xff] }
  0xf8   : > { %929 = vst.msk [vmem:[#allocation3 + $0x150] sm:$0xff] %vm899_vm4, %v874_v33  ;;  %v1561_v17 = vld [vmem:[#allocation2 + $0xee] sm:$0xff] }
  0xf9   : > { %930 = vst.msk [vmem:[#allocation3 + $0x158] sm:$0xff] %vm901_vm5, %v874_v33  ;;  %v876_v23 = vpop.permute.xlu1 %875  ;;  %1444 = vrot.lane.b32.xlu0 %v1408_v29, %s4245_s19  ;;  %v1407_v29 = vld [vmem:[#allocation2 + $0x13d] sm:$0xff]  ;;  %v1536_v33 = vld [vmem:[#allocation2 + $0x26] sm:$0xff] }
  0xfa   : > { %931 = vst.msk [vmem:[#allocation3 + $0x168] sm:$0xff] %vm899_vm4, %v876_v23  ;;  %v1572_v36 = vpack.c.bf16 %v1537_v34, %v1536_v33 }
  0xfb   : > { %932 = vst.msk [vmem:[#allocation3 + $0x170] sm:$0xff] %vm901_vm5, %v876_v23  ;;  %1446 = vrot.lane.b32.xlu1 %v1409_v32, %s4245_s19  ;;  %v878_v38 = vpop.permute.xlu0 %877  ;;  %v1425_v32 = vpack.c.bf16 %v1407_v29, %v1406_v27  ;;  %v1538_v23 = vld [vmem:[#allocation2 + $0x36] sm:$0xff]  ;;  %v1565_v27 = vld [vmem:[#allocation2 + $0x10e] sm:$0xff] }
  0xfc   : > { %933 = vst.msk [vmem:[#allocation3 + $0x180] sm:$0xff] %vm899_vm4, %v878_v38 }
  0xfd   : > { %934 = vst.msk [vmem:[#allocation3 + $0x188] sm:$0xff] %vm901_vm5, %v878_v38  ;;  %v880_v41 = vpop.permute.xlu1 %879  ;;  %1448 = vrot.lane.b32.xlu0 %v1410_v28, %s4245_s19  ;;  %v1539_v28 = vld [vmem:[#allocation2 + $0x3e] sm:$0xff]  ;;  %v1540_v38 = vld [vmem:[#allocation2 + $0x46] sm:$0xff] }
  0xfe   : > { %935 = vst.msk [vmem:[#allocation3 + $0x198] sm:$0xff] %vm899_vm4, %v880_v41  ;;  %v1574_v44 = vpack.c.bf16 %v1541_v39, %v1540_v38 }
  0xff   : > { %936 = vst.msk [vmem:[#allocation3 + $0x1a0] sm:$0xff] %vm901_vm5, %v880_v41  ;;  %1450 = vrot.lane.b32.xlu1 %v1411_v37, %s4245_s19  ;;  %v1010_v47 = vpop.permute.xlu0 %1009  ;;  %v1573_v37 = vpack.c.bf16 %v1539_v28, %v1538_v23  ;;  %v1542_v41 = vld [vmem:[#allocation2 + $0x56] sm:$0xff]  ;;  %v1569_v23 = vld [vmem:[#allocation2 + $0x12e] sm:$0xff] }
 0x100   : > { %1064 = vst.msk [vmem:[#allocation3 + $0x8] sm:$0xff] %vm1063_vm6, %v1010_v47  ;;  %v1544_v47 = vld [vmem:[#allocation2 + $0x66] sm:$0xff] }
 0x101   : > { %v1012_v50 = vpop.permute.xlu1 %1011  ;;  %1452 = vrot.lane.b32.xlu0 %v1412_v42, %s4245_s19  ;;  %v1543_v42 = vld [vmem:[#allocation2 + $0x5e] sm:$0xff]  ;;  %v1576_v55 = vpack.c.bf16 %v1545_v48, %v1544_v47 }
 0x102   : > { %1065 = vst.msk [vmem:[#allocation3 + $0x20] sm:$0xff] %vm1063_vm6, %v1012_v50  ;;  %v1546_v50 = vld [vmem:[#allocation2 + $0x76] sm:$0xff] }
 0x103   : > { %1454 = vrot.lane.b32.xlu1 %v1413_v45, %s4245_s19  ;;  %v1014_v57 = vpop.permute.xlu0 %1013  ;;  %v1575_v45 = vpack.c.bf16 %v1543_v42, %v1542_v41 }
 0x104   : > { %1066 = vst.msk [vmem:[#allocation3 + $0x38] sm:$0xff] %vm1063_vm6, %v1014_v57  ;;  %v1548_v57 = vld [vmem:[#allocation2 + $0x86] sm:$0xff] }
 0x105   : > { %v1016_v62 = vpop.permute.xlu1 %1015  ;;  %1456 = vrot.lane.b32.xlu0 %v1414_v52, %s4245_s19  ;;  %v1547_v52 = vld [vmem:[#allocation2 + $0x7e] sm:$0xff]  ;;  %v1578_v2 = vpack.c.bf16 %v1549_v58, %v1548_v57 }
 0x106   : > { %1067 = vst.msk [vmem:[#allocation3 + $0x50] sm:$0xff] %vm1063_vm6, %v1016_v62  ;;  %v1550_v62 = vld [vmem:[#allocation2 + $0x96] sm:$0xff] }
 0x107   : > { %1458 = vrot.lane.b32.xlu1 %v1415_v56, %s4245_s19  ;;  %v1018_v46 = vpop.permute.xlu0 %1017  ;;  %v1577_v56 = vpack.c.bf16 %v1547_v52, %v1546_v50 }
 0x108   : > { %1068 = vst.msk [vmem:[#allocation3 + $0x68] sm:$0xff] %vm1063_vm6, %v1018_v46  ;;  %v1552_v46 = vld [vmem:[#allocation2 + $0xa6] sm:$0xff] }
 0x109   : > { %v1020_v60 = vpop.permute.xlu1 %1019  ;;  %1460 = vrot.lane.b32.xlu0 %v1416_v63, %s4245_s19  ;;  %v1551_v63 = vld [vmem:[#allocation2 + $0x9e] sm:$0xff]  ;;  %v1580_v5 = vpack.c.bf16 %v1553_v51, %v1552_v46 }
 0x10a   : > { %1069 = vst.msk [vmem:[#allocation3 + $0x80] sm:$0xff] %vm1063_vm6, %v1020_v60  ;;  %v1554_v60 = vld [vmem:[#allocation2 + $0xb6] sm:$0xff] }
 0x10b   : > { %1462 = vrot.lane.b32.xlu1 %v1417_v3, %s4245_s19  ;;  %v1022_v7 = vpop.permute.xlu0 %1021  ;;  %v1579_v3 = vpack.c.bf16 %v1551_v63, %v1550_v62 }
 0x10c   : > { %1070 = vst.msk [vmem:[#allocation3 + $0x98] sm:$0xff] %vm1063_vm6, %v1022_v7  ;;  %v1556_v7 = vld [vmem:[#allocation2 + $0xc6] sm:$0xff] }
 0x10d   : > { %v1024_v10 = vpop.permute.xlu1 %1023  ;;  %1464 = vrot.lane.b32.xlu0 %v1418_v4, %s4245_s19  ;;  %v1555_v4 = vld [vmem:[#allocation2 + $0xbe] sm:$0xff]  ;;  %v1582_v14 = vpack.c.bf16 %v1557_v8, %v1556_v7  ;;  %v1700_v7 = vld [vmem:[#allocation3] sm:$0xff] }
 0x10e   : > { %1071 = vst.msk [vmem:[#allocation3 + $0xb0] sm:$0xff] %vm1063_vm6, %v1024_v10  ;;  %v1558_v10 = vld [vmem:[#allocation2 + $0xd6] sm:$0xff] }
 0x10f   : > { %1466 = vrot.lane.b32.xlu1 %v1419_v6, %s4245_s19  ;;  %v1026_v16 = vpop.permute.xlu0 %1025  ;;  %v1581_v6 = vpack.c.bf16 %v1555_v4, %v1554_v60 }
 0x110   : > { %1072 = vst.msk [vmem:[#allocation3 + $0xc8] sm:$0xff] %vm1063_vm6, %v1026_v16  ;;  %v1560_v16 = vld [vmem:[#allocation2 + $0xe6] sm:$0xff] }
 0x111   : > { %v1028_v20 = vpop.permute.xlu1 %1027  ;;  %1468 = vrot.lane.b32.xlu0 %v1420_v11, %s4245_s19  ;;  %v1559_v11 = vld [vmem:[#allocation2 + $0xde] sm:$0xff]  ;;  %v1584_v24 = vpack.c.bf16 %v1561_v17, %v1560_v16 }
 0x112   : > { %1073 = vst.msk [vmem:[#allocation3 + $0xe0] sm:$0xff] %vm1063_vm6, %v1028_v20  ;;  %v1562_v20 = vld [vmem:[#allocation2 + $0xf6] sm:$0xff] }
 0x113   : > { %1470 = vrot.lane.b32.xlu1 %v1421_v15, %s4245_s19  ;;  %v1030_v26 = vpop.permute.xlu0 %1029  ;;  %v1583_v15 = vpack.c.bf16 %v1559_v11, %v1558_v10 }
 0x114   : > { %1074 = vst.msk [vmem:[#allocation3 + $0xf8] sm:$0xff] %vm1063_vm6, %v1030_v26  ;;  %v1564_v26 = vld [vmem:[#allocation2 + $0x106] sm:$0xff] }
 0x115   : > { %v1032_v30 = vpop.permute.xlu1 %1031  ;;  %1472 = vrot.lane.b32.xlu0 %v1422_v21, %s4245_s19  ;;  %v1563_v21 = vld [vmem:[#allocation2 + $0xfe] sm:$0xff]  ;;  %v1586_v33 = vpack.c.bf16 %v1565_v27, %v1564_v26 }
 0x116   : > { %1075 = vst.msk [vmem:[#allocation3 + $0x110] sm:$0xff] %vm1063_vm6, %v1032_v30  ;;  %v1585_v25 = vpack.c.bf16 %v1563_v21, %v1562_v20  ;;  %v1566_v30 = vld [vmem:[#allocation2 + $0x116] sm:$0xff] }
 0x117   : > { %1474 = vrot.lane.b32.xlu1 %v1423_v22, %s4245_s19  ;;  %v1034_v13 = vpop.permute.xlu0 %1033  ;;  %v1706_v21 = vld [vmem:[#allocation3 + $0x30] sm:$0xff] }
 0x118   : > { %1076 = vst.msk [vmem:[#allocation3 + $0x128] sm:$0xff] %vm1063_vm6, %v1034_v13  ;;  %v1568_v13 = vld [vmem:[#allocation2 + $0x126] sm:$0xff] }
 0x119   : > { %v1036_v35 = vpop.permute.xlu1 %1035  ;;  %1476 = vrot.lane.b32.xlu0 %v1424_v31, %s4245_s19  ;;  %v1567_v31 = vld [vmem:[#allocation2 + $0x11e] sm:$0xff]  ;;  %v1588_v38 = vpack.c.bf16 %v1569_v23, %v1568_v13 }
 0x11a   : > { %1077 = vst.msk [vmem:[#allocation3 + $0x140] sm:$0xff] %vm1063_vm6, %v1036_v35  ;;  %v1587_v34 = vpack.c.bf16 %v1567_v31, %v1566_v30  ;;  %v1570_v35 = vld [vmem:[#allocation2 + $0x136] sm:$0xff] }
 0x11b   : > { %1478 = vrot.lane.b32.xlu1 %v1425_v32, %s4245_s19  ;;  %v1038_v40 = vpop.permute.xlu0 %1037  ;;  %v1742_v13 = vld [vmem:[#allocation3 + $0x150] sm:$0xff]  ;;  %s5705_s19 = scalar_lea.vmem %s5936_s6, %s5550_s27 }
 0x11c   : > { %1078 = vst.msk [vmem:[#allocation3 + $0x158] sm:$0xff] %vm1063_vm6, %v1038_v40 }
 0x11d   : > { %v1040_v43 = vpop.permute.xlu1 %1039  ;;  %1608 = vrot.lane.b32.xlu0 %v1572_v36, %s4246_s24  ;;  %v1571_v36 = vld [vmem:[#allocation2 + $0x13e] sm:$0xff] }
 0x11e   : > { %1079 = vst.msk [vmem:[#allocation3 + $0x170] sm:$0xff] %vm1063_vm6, %v1040_v43  ;;  %v1589_v39 = vpack.c.bf16 %v1571_v36, %v1570_v35  ;;  %v4032_v35 = vld [vmem:[%s5933_s3 + $0x90] sm:$0xff]  }
 0x11f   : > { %1610 = vrot.lane.b32.xlu1 %v1573_v37, %s4246_s24  ;;  %v1042_v49 = vpop.permute.xlu0 %1041 }
 0x120   : > { %1080 = vst.msk [vmem:[#allocation3 + $0x188] sm:$0xff] %vm1063_vm6, %v1042_v49 }
 0x121   : > { %v1044_v53 = vpop.permute.xlu1 %1043  ;;  %1612 = vrot.lane.b32.xlu0 %v1574_v44, %s4246_s24 }
 0x122   : > { %1081 = vst.msk [vmem:[#allocation3 + $0x1a0] sm:$0xff] %vm1063_vm6, %v1044_v53 }
 0x123   : > { %1614 = vrot.lane.b32.xlu1 %v1575_v45, %s4246_s24  ;;  %v1155_v59 = vpop.permute.xlu0 %1154 }
 0x124   : > { %1209 = vst.msk [vmem:[#allocation3 + $0x8] sm:$0xff] %vm1208_vm7, %v1155_v59 }
 0x125   : > { %v1157_v1 = vpop.permute.xlu1 %1156  ;;  %1616 = vrot.lane.b32.xlu0 %v1576_v55, %s4246_s24 }
 0x126   : > { %1210 = vst.msk [vmem:[#allocation3 + $0x20] sm:$0xff] %vm1208_vm7, %v1157_v1 }
 0x127   : > { %1618 = vrot.lane.b32.xlu1 %v1577_v56, %s4246_s24  ;;  %v1159_v54 = vpop.permute.xlu0 %1158 }
 0x128   : > { %1211 = vst.msk [vmem:[#allocation3 + $0x38] sm:$0xff] %vm1208_vm7, %v1159_v54 }
 0x129   : > { %v1161_v0 = vpop.permute.xlu1 %1160  ;;  %1620 = vrot.lane.b32.xlu0 %v1578_v2, %s4246_s24 }
 0x12a   : > { %1212 = vst.msk [vmem:[#allocation3 + $0x50] sm:$0xff] %vm1208_vm7, %v1161_v0 }
 0x12b   : > { %1622 = vrot.lane.b32.xlu1 %v1579_v3, %s4246_s24  ;;  %v1163_v9 = vpop.permute.xlu0 %1162 }
 0x12c   : > { %1213 = vst.msk [vmem:[#allocation3 + $0x68] sm:$0xff] %vm1208_vm7, %v1163_v9 }
 0x12d   : > { %v1165_v12 = vpop.permute.xlu1 %1164  ;;  %1624 = vrot.lane.b32.xlu0 %v1580_v5, %s4246_s24 }
 0x12e   : > { %1214 = vst.msk [vmem:[#allocation3 + $0x80] sm:$0xff] %vm1208_vm7, %v1165_v12 }
 0x12f   : > { %1626 = vrot.lane.b32.xlu1 %v1581_v6, %s4246_s24  ;;  %v1167_v18 = vpop.permute.xlu0 %1166 }
 0x130   : > { %1215 = vst.msk [vmem:[#allocation3 + $0x98] sm:$0xff] %vm1208_vm7, %v1167_v18 }
 0x131   : > { %v1169_v22 = vpop.permute.xlu1 %1168  ;;  %1628 = vrot.lane.b32.xlu0 %v1582_v14, %s4246_s24  ;;  %v1703_v14 = vld [vmem:[#allocation3 + $0x18] sm:$0xff] }
 0x132   : > { %1216 = vst.msk [vmem:[#allocation3 + $0xb0] sm:$0xff] %vm1208_vm7, %v1169_v22 }
 0x133   : > { %1630 = vrot.lane.b32.xlu1 %v1583_v15, %s4246_s24  ;;  %v1171_v29 = vpop.permute.xlu0 %1170 }
 0x134   : > { %1217 = vst.msk [vmem:[#allocation3 + $0xc8] sm:$0xff] %vm1208_vm7, %v1171_v29  ;;  %v1709_v29 = vld [vmem:[#allocation3 + $0x48] sm:$0xff] }
 0x135   : > { %v1173_v32 = vpop.permute.xlu1 %1172  ;;  %1632 = vrot.lane.b32.xlu0 %v1584_v24, %s4246_s24 }
 0x136   : > { %1218 = vst.msk [vmem:[#allocation3 + $0xe0] sm:$0xff] %vm1208_vm7, %v1173_v32 }
 0x137   : > { %1634 = vrot.lane.b32.xlu1 %v1585_v25, %s4246_s24  ;;  %v1175_v28 = vpop.permute.xlu0 %1174 }
 0x138   : > { %1219 = vst.msk [vmem:[#allocation3 + $0xf8] sm:$0xff] %vm1208_vm7, %v1175_v28 }
 0x139   : > { %v1177_v37 = vpop.permute.xlu1 %1176  ;;  %1636 = vrot.lane.b32.xlu0 %v1586_v33, %s4246_s24  ;;  %v4031_v33 = vld [vmem:[%s5933_s3 + $0x88] sm:$0xff]  }
 0x13a   : > { %1220 = vst.msk [vmem:[#allocation3 + $0x110] sm:$0xff] %vm1208_vm7, %v1177_v37  ;;  %v1712_v37 = vld [vmem:[#allocation3 + $0x60] sm:$0xff] }
 0x13b   : > { %1638 = vrot.lane.b32.xlu1 %v1587_v34, %s4246_s24  ;;  %v1179_v40 = vpop.permute.xlu0 %1178 }
 0x13c   : > { %1221 = vst.msk [vmem:[#allocation3 + $0x128] sm:$0xff] %vm1208_vm7, %v1179_v40 }
 0x13d   : > { %v1181_v41 = vpop.permute.xlu1 %1180  ;;  %1640 = vrot.lane.b32.xlu0 %v1588_v38, %s4246_s24 }
 0x13e   : > { %1222 = vst.msk [vmem:[#allocation3 + $0x140] sm:$0xff] %vm1208_vm7, %v1181_v41 }
 0x13f   : > { %1642 = vrot.lane.b32.xlu1 %v1589_v39, %s4246_s24  ;;  %v1183_v42 = vpop.permute.xlu0 %1182 }
 0x140   : > { %1223 = vst.msk [vmem:[#allocation3 + $0x158] sm:$0xff] %vm1208_vm7, %v1183_v42  ;;  %v1745_v42 = vld [vmem:[#allocation3 + $0x168] sm:$0xff] }
 0x141   : > { %v1185_v43 = vpop.permute.xlu1 %1184 }
 0x142   : > { %1224 = vst.msk [vmem:[#allocation3 + $0x170] sm:$0xff] %vm1208_vm7, %v1185_v43 }
 0x143   : > { %v1187_v44 = vpop.permute.xlu0 %1186 }
 0x144   : > { %1225 = vst.msk [vmem:[#allocation3 + $0x188] sm:$0xff] %vm1208_vm7, %v1187_v44  ;;  %v4034_v44 = vld [vmem:[%s5933_s3 + $0xa0] sm:$0xff]  }
 0x145   : > { %v1189_v45 = vpop.permute.xlu1 %1188 }
 0x146   : > { %1226 = vst.msk [vmem:[#allocation3 + $0x1a0] sm:$0xff] %vm1208_vm7, %v1189_v45 }
 0x147   : > { %v1300_v47 = vpop.permute.xlu0 %1299 }
 0x148   : > { %1354 = vst.msk [vmem:[#allocation3 + $0x8] sm:$0xff] %vm1353_vm8, %v1300_v47  ;;  %v1715_v47 = vld [vmem:[#allocation3 + $0x78] sm:$0xff] }
 0x149   : > { %v1302_v48 = vpop.permute.xlu1 %1301 }
 0x14a   : > { %1355 = vst.msk [vmem:[#allocation3 + $0x20] sm:$0xff] %vm1353_vm8, %v1302_v48 }
 0x14b   : > { %v1304_v49 = vpop.permute.xlu0 %1303 }
 0x14c   : > { %1356 = vst.msk [vmem:[#allocation3 + $0x38] sm:$0xff] %vm1353_vm8, %v1304_v49 }
 0x14d   : > { %v1306_v50 = vpop.permute.xlu1 %1305 }
 0x14e   : > { %1357 = vst.msk [vmem:[#allocation3 + $0x50] sm:$0xff] %vm1353_vm8, %v1306_v50  ;;  %v4035_v50 = vld [vmem:[%s5933_s3 + $0xa8] sm:$0xff]  }
 0x14f   : > { %v1308_v52 = vpop.permute.xlu0 %1307 }
 0x150   : > { %1358 = vst.msk [vmem:[#allocation3 + $0x68] sm:$0xff] %vm1353_vm8, %v1308_v52 }
 0x151   : > { %v1310_v53 = vpop.permute.xlu1 %1309 }
 0x152   : > { %1359 = vst.msk [vmem:[#allocation3 + $0x80] sm:$0xff] %vm1353_vm8, %v1310_v53 }
 0x153   : > { %v1312_v55 = vpop.permute.xlu0 %1311 }
 0x154   : > { %1360 = vst.msk [vmem:[#allocation3 + $0x98] sm:$0xff] %vm1353_vm8, %v1312_v55  ;;  %v1748_v55 = vld [vmem:[#allocation3 + $0x180] sm:$0xff] }
 0x155   : > { %v1314_v56 = vpop.permute.xlu1 %1313 }
 0x156   : > { %1361 = vst.msk [vmem:[#allocation3 + $0xb0] sm:$0xff] %vm1353_vm8, %v1314_v56 }
 0x157   : > { %v1316_v57 = vpop.permute.xlu0 %1315 }
 0x158   : > { %1362 = vst.msk [vmem:[#allocation3 + $0xc8] sm:$0xff] %vm1353_vm8, %v1316_v57  ;;  %v4036_v57 = vld [vmem:[%s5933_s3 + $0xb0] sm:$0xff]  }
 0x159   : > { %v1318_v58 = vpop.permute.xlu1 %1317 }
 0x15a   : > { %1363 = vst.msk [vmem:[#allocation3 + $0xe0] sm:$0xff] %vm1353_vm8, %v1318_v58 }
 0x15b   : > { %v1320_v59 = vpop.permute.xlu0 %1319 }
 0x15c   : > { %1364 = vst.msk [vmem:[#allocation3 + $0xf8] sm:$0xff] %vm1353_vm8, %v1320_v59  ;;  %v1718_v59 = vld [vmem:[#allocation3 + $0x90] sm:$0xff] }
 0x15d   : > { %v1322_v62 = vpop.permute.xlu1 %1321 }
 0x15e   : > { %1365 = vst.msk [vmem:[#allocation3 + $0x110] sm:$0xff] %vm1353_vm8, %v1322_v62 }
 0x15f   : > { %v1324_v63 = vpop.permute.xlu0 %1323 }
 0x160   : > { %1366 = vst.msk [vmem:[#allocation3 + $0x128] sm:$0xff] %vm1353_vm8, %v1324_v63 }
 0x161   : > { %v1326_v1 = vpop.permute.xlu1 %1325 }
 0x162   : > { %1367 = vst.msk [vmem:[#allocation3 + $0x140] sm:$0xff] %vm1353_vm8, %v1326_v1  ;;  %v4037_v1 = vld [vmem:[%s5933_s3 + $0xb8] sm:$0xff]  }
 0x163   : > { %v1328_v2 = vpop.permute.xlu0 %1327 }
 0x164   : > { %1368 = vst.msk [vmem:[#allocation3 + $0x158] sm:$0xff] %vm1353_vm8, %v1328_v2 }
 0x165   : > { %v1330_v3 = vpop.permute.xlu1 %1329 }
 0x166   : > { %1369 = vst.msk [vmem:[#allocation3 + $0x170] sm:$0xff] %vm1353_vm8, %v1330_v3 }
 0x167   : > { %v1332_v46 = vpop.permute.xlu0 %1331 }
 0x168   : > { %1370 = vst.msk [vmem:[#allocation3 + $0x188] sm:$0xff] %vm1353_vm8, %v1332_v46  ;;  %v1751_v46 = vld [vmem:[#allocation3 + $0x198] sm:$0xff] }
 0x169   : > { %v1334_v51 = vpop.permute.xlu1 %1333 }
 0x16a   : > { %1371 = vst.msk [vmem:[#allocation3 + $0x1a0] sm:$0xff] %vm1353_vm8, %v1334_v51 }
 0x16b   : > { %v1445_v54 = vpop.permute.xlu0 %1444 }
 0x16c   : > { %1499 = vst.msk [vmem:[#allocation3 + $0x8] sm:$0xff] %vm1498_vm9, %v1445_v54 }
 0x16d   : > { %1501 = vst.msk [vmem:[#allocation3 + $0x10] sm:$0xff] %vm1500_vm10, %v1445_v54  ;;  %v1447_v60 = vpop.permute.xlu1 %1446 }
 0x16e   : > { %1502 = vst.msk [vmem:[#allocation3 + $0x20] sm:$0xff] %vm1498_vm9, %v1447_v60 }
 0x16f   : > { %1503 = vst.msk [vmem:[#allocation3 + $0x28] sm:$0xff] %vm1500_vm10, %v1447_v60  ;;  %v1449_v4 = vpop.permute.xlu0 %1448  ;;  %v1721_v60 = vld [vmem:[#allocation3 + $0xa8] sm:$0xff] }
 0x170   : > { %1504 = vst.msk [vmem:[#allocation3 + $0x38] sm:$0xff] %vm1498_vm9, %v1449_v4 }
 0x171   : > { %1505 = vst.msk [vmem:[#allocation3 + $0x40] sm:$0xff] %vm1500_vm10, %v1449_v4  ;;  %v1451_v0 = vpop.permute.xlu1 %1450 }
 0x172   : > { %1506 = vst.msk [vmem:[#allocation3 + $0x50] sm:$0xff] %vm1498_vm9, %v1451_v0 }
 0x173   : > { %1507 = vst.msk [vmem:[#allocation3 + $0x58] sm:$0xff] %vm1500_vm10, %v1451_v0  ;;  %v1453_v5 = vpop.permute.xlu0 %1452  ;;  %v1701_v6 = vld [vmem:[#allocation3 + $0x8] sm:$0xff] }
 0x174   : > { %1508 = vst.msk [vmem:[#allocation3 + $0x68] sm:$0xff] %vm1498_vm9, %v1453_v5  ;;  %1978 = vmatprep.mubr.bf16.mxu0 %v1701_v6 }
 0x175   : > { %1509 = vst.msk [vmem:[#allocation3 + $0x70] sm:$0xff] %vm1500_vm10, %v1453_v5  ;;  %v1455_v8 = vpop.permute.xlu1 %1454  ;;  %v1704_v9 = vld [vmem:[#allocation3 + $0x20] sm:$0xff]  ;;  %1979 = vmatmul.mubr.bf16.vlgmr.msra.gmra.mrb[0].mxu0 %v1700_v7 }
 0x176   : > { %1510 = vst.msk [vmem:[#allocation3 + $0x80] sm:$0xff] %vm1498_vm9, %v1455_v8  ;;  %1986 = vmatprep.mubr.bf16.mxu0 %v1704_v9  ;;  %v1724_v9 = vld [vmem:[#allocation3 + $0xc0] sm:$0xff] }
 0x177   : > { %1511 = vst.msk [vmem:[#allocation3 + $0x88] sm:$0xff] %vm1500_vm10, %v1455_v8  ;;  %v1457_v10 = vpop.permute.xlu0 %1456  ;;  %v1707_v16 = vld [vmem:[#allocation3 + $0x38] sm:$0xff] }
 0x178   : > { %1512 = vst.msk [vmem:[#allocation3 + $0x98] sm:$0xff] %vm1498_vm9, %v1457_v10 }
 0x179   : > { %1513 = vst.msk [vmem:[#allocation3 + $0xa0] sm:$0xff] %vm1500_vm10, %v1457_v10  ;;  %v1459_v11 = vpop.permute.xlu1 %1458  ;;  %v1710_v24 = vld [vmem:[#allocation3 + $0x50] sm:$0xff] }
 0x17a   : > { %1514 = vst.msk [vmem:[#allocation3 + $0xb0] sm:$0xff] %vm1498_vm9, %v1459_v11 }
 0x17b   : > { %1515 = vst.msk [vmem:[#allocation3 + $0xb8] sm:$0xff] %vm1500_vm10, %v1459_v11  ;;  %v1461_v12 = vpop.permute.xlu0 %1460  ;;  %v1713_v31 = vld [vmem:[#allocation3 + $0x68] sm:$0xff] }
 0x17c   : > { %1516 = vst.msk [vmem:[#allocation3 + $0xc8] sm:$0xff] %vm1498_vm9, %v1461_v12 }
 0x17d   : > { %1517 = vst.msk [vmem:[#allocation3 + $0xd0] sm:$0xff] %vm1500_vm10, %v1461_v12  ;;  %v1463_v15 = vpop.permute.xlu1 %1462  ;;  %1987 = vmatmul.mubr.bf16.gmra.mrb[4].mxu0 %v1703_v14  ;;  %v1716_v39 = vld [vmem:[#allocation3 + $0x80] sm:$0xff]  ;;  %v1727_v14 = vld [vmem:[#allocation3 + $0xd8] sm:$0xff] }
 0x17e   : > { %1518 = vst.msk [vmem:[#allocation3 + $0xe0] sm:$0xff] %vm1498_vm9, %v1463_v15  ;;  %1994 = vmatprep.mubr.bf16.mxu0 %v1707_v16 }
 0x17f   : > { %1519 = vst.msk [vmem:[#allocation3 + $0xe8] sm:$0xff] %vm1500_vm10, %v1463_v15  ;;  %v1465_v17 = vpop.permute.xlu0 %1464  ;;  %v1719_v49 = vld [vmem:[#allocation3 + $0x98] sm:$0xff] }
 0x180   : > { %1520 = vst.msk [vmem:[#allocation3 + $0xf8] sm:$0xff] %vm1498_vm9, %v1465_v17 }
 0x181   : > { %1521 = vst.msk [vmem:[#allocation3 + $0x100] sm:$0xff] %vm1500_vm10, %v1465_v17  ;;  %v1467_v18 = vpop.permute.xlu1 %1466  ;;  %v1722_v63 = vld [vmem:[#allocation3 + $0xb0] sm:$0xff] }
 0x182   : > { %1522 = vst.msk [vmem:[#allocation3 + $0x110] sm:$0xff] %vm1498_vm9, %v1467_v18 }
 0x183   : > { %1523 = vst.msk [vmem:[#allocation3 + $0x118] sm:$0xff] %vm1500_vm10, %v1467_v18  ;;  %v1469_v20 = vpop.permute.xlu0 %1468  ;;  %v1725_v0 = vld [vmem:[#allocation3 + $0xc8] sm:$0xff]  ;;  %v1730_v18 = vld [vmem:[#allocation3 + $0xf0] sm:$0xff] }
 0x184   : > { %1524 = vst.msk [vmem:[#allocation3 + $0x128] sm:$0xff] %vm1498_vm9, %v1469_v20 }
 0x185   : > { %1525 = vst.msk [vmem:[#allocation3 + $0x130] sm:$0xff] %vm1500_vm10, %v1469_v20  ;;  %v1471_v22 = vpop.permute.xlu1 %1470  ;;  %1995 = vmatmul.mubr.bf16.gmra.mrb[8].mxu0 %v1706_v21  ;;  %v1728_v10 = vld [vmem:[#allocation3 + $0xe0] sm:$0xff] }
 0x186   : > { %1526 = vst.msk [vmem:[#allocation3 + $0x140] sm:$0xff] %vm1498_vm9, %v1471_v22  ;;  %2002 = vmatprep.mubr.bf16.mxu0 %v1710_v24 }
 0x187   : > { %1527 = vst.msk [vmem:[#allocation3 + $0x148] sm:$0xff] %vm1500_vm10, %v1471_v22  ;;  %v1473_v25 = vpop.permute.xlu0 %1472  ;;  %v1731_v15 = vld [vmem:[#allocation3 + $0xf8] sm:$0xff]  ;;  %v1733_v22 = vld [vmem:[#allocation3 + $0x108] sm:$0xff] }
 0x188   : > { %1528 = vst.msk [vmem:[#allocation3 + $0x158] sm:$0xff] %vm1498_vm9, %v1473_v25 }
 0x189   : > { %1529 = vst.msk [vmem:[#allocation3 + $0x160] sm:$0xff] %vm1500_vm10, %v1473_v25  ;;  %v1475_v26 = vpop.permute.xlu1 %1474  ;;  %v1734_v20 = vld [vmem:[#allocation3 + $0x110] sm:$0xff] }
 0x18a   : > { %1530 = vst.msk [vmem:[#allocation3 + $0x170] sm:$0xff] %vm1498_vm9, %v1475_v26 }
 0x18b   : > { %1531 = vst.msk [vmem:[#allocation3 + $0x178] sm:$0xff] %vm1500_vm10, %v1475_v26  ;;  %v1477_v27 = vpop.permute.xlu0 %1476  ;;  %v1737_v24 = vld [vmem:[#allocation3 + $0x128] sm:$0xff] }
 0x18c   : > { %1532 = vst.msk [vmem:[#allocation3 + $0x188] sm:$0xff] %vm1498_vm9, %v1477_v27 }
 0x18d   : > { %1533 = vst.msk [vmem:[#allocation3 + $0x190] sm:$0xff] %vm1500_vm10, %v1477_v27  ;;  %v1479_v30 = vpop.permute.xlu1 %1478  ;;  %2003 = vmatmul.mubr.bf16.gmra.mrb[12].mxu0 %v1709_v29  ;;  %v1736_v27 = vld [vmem:[#allocation3 + $0x120] sm:$0xff] }
 0x18e   : > { %1534 = vst.msk [vmem:[#allocation3 + $0x1a0] sm:$0xff] %vm1498_vm9, %v1479_v30  ;;  %2010 = vmatprep.mubr.bf16.mxu0 %v1713_v31  ;;  %v1740_v29 = vld [vmem:[#allocation3 + $0x140] sm:$0xff] }
 0x18f   : > { %1535 = vst.msk [vmem:[#allocation3 + $0x1a8] sm:$0xff] %vm1500_vm10, %v1479_v30  ;;  %v1743_v32 = vld [vmem:[#allocation3 + $0x158] sm:$0xff]  ;;  %v1609_v34 = vpop.permute.xlu0 %1608 }
 0x190   : > { %2090 = vmatprep.mubr.bf16.mxu1 %v1743_v32  ;;  %1663 = vst.msk [vmem:[#allocation3 + $0x10] sm:$0xff] %vm1662_vm11, %v1609_v34  ;;  %v1739_v32 = vld [vmem:[#allocation3 + $0x138] sm:$0xff] }
 0x191   : > { %v1746_v23 = vld [vmem:[#allocation3 + $0x170] sm:$0xff]  ;;  %v1611_v28 = vpop.permute.xlu1 %1610  ;;  %2091 = vmatmul.mubr.bf16.vlgmr.msra.gmra.mrb[0].mxu1 %v1742_v13  ;;  %1682 = vst.msk [vmem:[#allocation3 + $0x10] sm:$0xff] %vm1681_vm12, %v4243_v61 }
 0x192   : > { %1664 = vst.msk [vmem:[#allocation3 + $0x28] sm:$0xff] %vm1662_vm11, %v1611_v28  ;;  %3907 = vmatpush3.bf16.msra.mxu1 %v4742_v19  ;;  %2098 = vmatprep.mubr.bf16.mxu1 %v1746_v23  ;;  %v4033_v19 = vld [vmem:[%s5933_s3 + $0x98] sm:$0xff]  }
 0x193   : > { %1683 = vst.msk [vmem:[#allocation3 + $0x28] sm:$0xff] %vm1681_vm12, %v4243_v61  ;;  %3908 = vmatprep.subr.bf16.mxu1 %v4031_v33  ;;  %v1613_v36 = vpop.permute.xlu0 %1612  ;;  %v1749_v40 = vld [vmem:[#allocation3 + $0x188] sm:$0xff] }
 0x194   : > { %1665 = vst.msk [vmem:[#allocation3 + $0x40] sm:$0xff] %vm1662_vm11, %v1613_v36 }
 0x195   : > { %v1615_v38 = vpop.permute.xlu1 %1614  ;;  %2011 = vmatmul.mubr.bf16.gmra.mrb[16].mxu0 %v1712_v37  ;;  %1684 = vst.msk [vmem:[#allocation3 + $0x40] sm:$0xff] %vm1681_vm12, %v4243_v61  ;;  %v1752_v52 = vld [vmem:[#allocation3 + $0x1a0] sm:$0xff] }
 0x196   : > { %1666 = vst.msk [vmem:[#allocation3 + $0x58] sm:$0xff] %vm1662_vm11, %v1615_v38  ;;  %3909 = vmatpush3.bf16.msra.mxu1 %v4031_v33  ;;  %2018 = vmatprep.mubr.bf16.mxu0 %v1716_v39 }
 0x197   : > { %1685 = vst.msk [vmem:[#allocation3 + $0x58] sm:$0xff] %vm1681_vm12, %v4243_v61  ;;  %3910 = vmatprep.subr.bf16.mxu1 %v4032_v35  ;;  %v1617_v41 = vpop.permute.xlu0 %1616 }
 0x198   : > { %1667 = vst.msk [vmem:[#allocation3 + $0x70] sm:$0xff] %vm1662_vm11, %v1617_v41  ;;  %v1702_v2 = vld [vmem:[#allocation3 + $0x10] sm:$0xff] }
 0x199   : > { %v1619_v43 = vpop.permute.xlu1 %1618  ;;  %2099 = vmatmul.mubr.bf16.gmra.mrb[4].mxu1 %v1745_v42  ;;  %1686 = vst.msk [vmem:[#allocation3 + $0x70] sm:$0xff] %vm1681_vm12, %v4243_v61 }
 0x19a   : > { %1668 = vst.msk [vmem:[#allocation3 + $0x88] sm:$0xff] %vm1662_vm11, %v1619_v43  ;;  %3911 = vmatpush3.bf16.msra.mxu1 %v4032_v35  ;;  %2106 = vmatprep.mubr.bf16.mxu1 %v1749_v40  ;;  %v1705_v5 = vld [vmem:[#allocation3 + $0x28] sm:$0xff] }
 0x19b   : > { %1687 = vst.msk [vmem:[#allocation3 + $0x88] sm:$0xff] %vm1681_vm12, %v4243_v61  ;;  %3912 = vmatprep.subr.bf16.mxu1 %v4033_v19  ;;  %v1621_v45 = vpop.permute.xlu0 %1620 }
 0x19c   : > { %1669 = vst.msk [vmem:[#allocation3 + $0xa0] sm:$0xff] %vm1662_vm11, %v1621_v45  ;;  %v1708_v6 = vld [vmem:[#allocation3 + $0x40] sm:$0xff] }
 0x19d   : > { %v1623_v48 = vpop.permute.xlu1 %1622  ;;  %2019 = vmatmul.mubr.bf16.gmra.mrb[20].mxu0 %v1715_v47  ;;  %1688 = vst.msk [vmem:[#allocation3 + $0xa0] sm:$0xff] %vm1681_vm12, %v4243_v61 }
 0x19e   : > { %1670 = vst.msk [vmem:[#allocation3 + $0xb8] sm:$0xff] %vm1662_vm11, %v1623_v48  ;;  %3913 = vmatpush3.bf16.msra.mxu1 %v4033_v19  ;;  %2026 = vmatprep.mubr.bf16.mxu0 %v1719_v49  ;;  %v1711_v11 = vld [vmem:[#allocation3 + $0x58] sm:$0xff] }
 0x19f   : > { %1689 = vst.msk [vmem:[#allocation3 + $0xb8] sm:$0xff] %vm1681_vm12, %v4243_v61  ;;  %3914 = vmatprep.subr.bf16.mxu1 %v4034_v44  ;;  %v1625_v53 = vpop.permute.xlu0 %1624 }
 0x1a0   : > { %1671 = vst.msk [vmem:[#allocation3 + $0xd0] sm:$0xff] %vm1662_vm11, %v1625_v53  ;;  %v1714_v12 = vld [vmem:[#allocation3 + $0x70] sm:$0xff] }
 0x1a1   : > { %v1627_v56 = vpop.permute.xlu1 %1626  ;;  %2107 = vmatmul.mubr.bf16.gmra.mrb[8].mxu1 %v1748_v55  ;;  %1690 = vst.msk [vmem:[#allocation3 + $0xd0] sm:$0xff] %vm1681_vm12, %v4243_v61 }
 0x1a2   : > { %1672 = vst.msk [vmem:[#allocation3 + $0xe8] sm:$0xff] %vm1662_vm11, %v1627_v56  ;;  %3915 = vmatpush3.bf16.msra.mxu1 %v4034_v44  ;;  %2114 = vmatprep.mubr.bf16.mxu1 %v1752_v52  ;;  %v1717_v16 = vld [vmem:[#allocation3 + $0x88] sm:$0xff] }
 0x1a3   : > { %1691 = vst.msk [vmem:[#allocation3 + $0xe8] sm:$0xff] %vm1681_vm12, %v4243_v61  ;;  %3916 = vmatprep.subr.bf16.mxu1 %v4035_v50  ;;  %v1629_v58 = vpop.permute.xlu0 %1628 }
 0x1a4   : > { %1673 = vst.msk [vmem:[#allocation3 + $0x100] sm:$0xff] %vm1662_vm11, %v1629_v58  ;;  %v1720_v17 = vld [vmem:[#allocation3 + $0xa0] sm:$0xff] }
 0x1a5   : > { %v1631_v62 = vpop.permute.xlu1 %1630  ;;  %2027 = vmatmul.mubr.bf16.gmra.mrb[24].mxu0 %v1718_v59  ;;  %1692 = vst.msk [vmem:[#allocation3 + $0x100] sm:$0xff] %vm1681_vm12, %v4243_v61 }
 0x1a6   : > { %1674 = vst.msk [vmem:[#allocation3 + $0x118] sm:$0xff] %vm1662_vm11, %v1631_v62  ;;  %3917 = vmatpush3.bf16.msra.mxu1 %v4035_v50  ;;  %2034 = vmatprep.mubr.bf16.mxu0 %v1722_v63 }
 0x1a7   : > { %1693 = vst.msk [vmem:[#allocation3 + $0x118] sm:$0xff] %vm1681_vm12, %v4243_v61  ;;  %3918 = vmatprep.subr.bf16.mxu1 %v4036_v57  ;;  %v1633_v3 = vpop.permute.xlu0 %1632 }
 0x1a8   : > { %1675 = vst.msk [vmem:[#allocation3 + $0x130] sm:$0xff] %vm1662_vm11, %v1633_v3  ;;  %v1726_v21 = vld [vmem:[#allocation3 + $0xd0] sm:$0xff] }
 0x1a9   : > { %v1635_v51 = vpop.permute.xlu1 %1634  ;;  %2115 = vmatmul.mubr.bf16.gmra.mrb[12].mxu1 %v1751_v46  ;;  %1694 = vst.msk [vmem:[#allocation3 + $0x130] sm:$0xff] %vm1681_vm12, %v4243_v61 }
 0x1aa   : > { %1676 = vst.msk [vmem:[#allocation3 + $0x148] sm:$0xff] %vm1662_vm11, %v1635_v51  ;;  %3919 = vmatpush3.bf16.msra.mxu1 %v4036_v57  ;;  %3922 = vmatprep.mubr.bf16.mxu1 %v1702_v2  ;;  %v1729_v25 = vld [vmem:[#allocation3 + $0xe8] sm:$0xff] }
 0x1ab   : > { %1695 = vst.msk [vmem:[#allocation3 + $0x148] sm:$0xff] %vm1681_vm12, %v4243_v61  ;;  %3920 = vmatprep.subr.bf16.mxu1 %v4037_v1  ;;  %v1637_v54 = vpop.permute.xlu0 %1636 }
 0x1ac   : > { %1677 = vst.msk [vmem:[#allocation3 + $0x160] sm:$0xff] %vm1662_vm11, %v1637_v54  ;;  %v1732_v26 = vld [vmem:[#allocation3 + $0x100] sm:$0xff] }
 0x1ad   : > { %v1639_v4 = vpop.permute.xlu1 %1638  ;;  %2035 = vmatmul.mubr.bf16.gmra.mrb[28].mxu0 %v1721_v60  ;;  %1696 = vst.msk [vmem:[#allocation3 + $0x160] sm:$0xff] %vm1681_vm12, %v4243_v61 }
 0x1ae   : > { %1678 = vst.msk [vmem:[#allocation3 + $0x178] sm:$0xff] %vm1662_vm11, %v1639_v4  ;;  %3921 = vmatpush3.bf16.msra.mxu1 %v4037_v1  ;;  %2042 = vmatprep.mubr.bf16.mxu0 %v1725_v0  ;;  %v1735_v30 = vld [vmem:[#allocation3 + $0x118] sm:$0xff] }
 0x1af   : > { %1697 = vst.msk [vmem:[#allocation3 + $0x178] sm:$0xff] %vm1681_vm12, %v4243_v61  ;;  %v1641_v7 = vpop.permute.xlu0 %1640 }
 0x1b0   : > { %1679 = vst.msk [vmem:[#allocation3 + $0x190] sm:$0xff] %vm1662_vm11, %v1641_v7  ;;  %v1738_v31 = vld [vmem:[#allocation3 + $0x130] sm:$0xff] }
 0x1b1   : > { %v1643_v8 = vpop.permute.xlu1 %1642  ;;  %3923 = vmatmul.mubr.bf16.vlgmr.msra.gmra.mrb[16].mxu1 %v1705_v5  ;;  %1698 = vst.msk [vmem:[#allocation3 + $0x190] sm:$0xff] %vm1681_vm12, %v4243_v61 }
 0x1b2   : > { %1680 = vst.msk [vmem:[#allocation3 + $0x1a8] sm:$0xff] %vm1662_vm11, %v1643_v8  ;;  %3926 = vmatprep.mubr.bf16.mxu1 %v1708_v6  ;;  %v1741_v33 = vld [vmem:[#allocation3 + $0x148] sm:$0xff] }
 0x1b3   : > { %1699 = vst.msk [vmem:[#allocation3 + $0x1a8] sm:$0xff] %vm1681_vm12, %v4243_v61  ;;  %v1723_v61 = vld [vmem:[#allocation3 + $0xb8] sm:$0xff] }
 0x1b4   : > { %v1744_v34 = vld [vmem:[#allocation3 + $0x160] sm:$0xff] }
 0x1b5   : > { %2043 = vmatmul.mubr.bf16.gmra.mrb[32].mxu0 %v1724_v9 }
 0x1b6   : > { %2050 = vmatprep.mubr.bf16.mxu0 %v1728_v10  ;;  %v1747_v13 = vld [vmem:[#allocation3 + $0x178] sm:$0xff] }
 0x1b8   : > { %v1750_v23 = vld [vmem:[#allocation3 + $0x190] sm:$0xff] }
 0x1b9   : > { %3927 = vmatmul.mubr.bf16.gmra.mrb[20].mxu1 %v1711_v11 }
 0x1ba   : > { %3930 = vmatprep.mubr.bf16.mxu1 %v1714_v12  ;;  %v1753_v28 = vld [vmem:[#allocation3 + $0x1a8] sm:$0xff] }
 0x1bd   : > { %2051 = vmatmul.mubr.bf16.gmra.mrb[36].mxu0 %v1727_v14 }
 0x1be   : > { %2058 = vmatprep.mubr.bf16.mxu0 %v1731_v15 }
 0x1c1   : > { %3931 = vmatmul.mubr.bf16.gmra.mrb[24].mxu1 %v1717_v16 }
 0x1c2   : > { %3934 = vmatprep.mubr.bf16.mxu1 %v1720_v17 }
 0x1c5   : > { %2059 = vmatmul.mubr.bf16.gmra.mrb[40].mxu0 %v1730_v18 }
 0x1c6   : > { %2066 = vmatprep.mubr.bf16.mxu0 %v1734_v20 }
 0x1c9   : > { %3935 = vmatmul.mubr.bf16.gmra.mrb[28].mxu1 %v1723_v61 }
 0x1ca   : > { %3938 = vmatprep.mubr.bf16.mxu1 %v1726_v21 }
 0x1cd   : > { %2067 = vmatmul.mubr.bf16.gmra.mrb[44].mxu0 %v1733_v22 }
 0x1ce   : > { %2074 = vmatprep.mubr.bf16.mxu0 %v1737_v24 }
 0x1d1   : > { %3939 = vmatmul.mubr.bf16.gmra.mrb[32].mxu1 %v1729_v25 }
 0x1d2   : > { %3942 = vmatprep.mubr.bf16.mxu1 %v1732_v26 }
 0x1d5   : > { %2075 = vmatmul.mubr.bf16.gmra.mrb[48].mxu0 %v1736_v27 }
 0x1d6   : > { %2082 = vmatprep.mubr.bf16.mxu0 %v1740_v29 }
 0x1d9   : > { %3943 = vmatmul.mubr.bf16.gmra.mrb[36].mxu1 %v1735_v30 }
 0x1da   : > { %3946 = vmatprep.mubr.bf16.mxu1 %v1738_v31 }
 0x1dd   : > { %2083 = vmatmul.mubr.bf16.gmra.mrb[52].mxu0 %v1739_v32 }
 0x1e1   : > { %3947 = vmatmul.mubr.bf16.gmra.mrb[40].mxu1 %v1741_v33 }
 0x1e2   : > { %3950 = vmatprep.mubr.bf16.mxu1 %v1744_v34 }
 0x1e9   : > { %3951 = vmatmul.mubr.bf16.gmra.mrb[44].mxu1 %v1747_v13 }
 0x1ea   : > { %3954 = vmatprep.mubr.bf16.mxu1 %v1750_v23 }
 0x1f1   : > { %3955 = vmatmul.mubr.bf16.gmra.mrb[48].mxu1 %v1753_v28 }
 0x248   : > { %v1980_v35 = vpop.f32.mrb[0].mxu0 }
 0x249   : > { %v1982_v36 = vpop.f32.mrb[1].mxu0 }
 0x24a   : > { %v1983_v37 = vpop.f32.mrb[2].mxu0 }
 0x24b   : > { %v1985_v38 = vpop.f32.mrb[3].mxu0 }
 0x250   : > { %v1988_v39 = vpop.f32.mrb[4].mxu0 }
 0x251   : > { %v1990_v19 = vpop.f32.mrb[5].mxu0 }
 0x252   : > { %v1991_v40 = vpop.f32.mrb[6].mxu0 }
 0x253   : > { %v1993_v41 = vpop.f32.mrb[7].mxu0 }
 0x258   : > { %v1996_v42 = vpop.f32.mrb[8].mxu0 }
 0x259   : > { %v1998_v43 = vpop.f32.mrb[9].mxu0 }
 0x25a   : > { %v4927_v44 = vpop.f32.mrb[10].mxu0 }
 0x25b   : > { %v2001_v45 = vpop.f32.mrb[11].mxu0 }
 0x260   : > { %v2004_v47 = vpop.f32.mrb[12].mxu0 }
 0x261   : > { %v2006_v48 = vpop.f32.mrb[13].mxu0 }
 0x262   : > { %v2007_v49 = vpop.f32.mrb[14].mxu0 }
 0x263   : > { %v2009_v50 = vpop.f32.mrb[15].mxu0 }
 0x264   : > { %v4929_v52 = vpop.f32.mrb[0].mxu1 }
 0x265   : > { %v2094_v53 = vpop.f32.mrb[1].mxu1 }
 0x266   : > { %v4931_v55 = vpop.f32.mrb[2].mxu1 }
 0x267   : > { %v2097_v56 = vpop.f32.mrb[3].mxu1 }
 0x268   : > { %v4933_v57 = vpop.f32.mrb[16].mxu0 }
 0x269   : > { %v2014_v58 = vpop.f32.mrb[17].mxu0 }
 0x26a   : > { %v4935_v59 = vpop.f32.mrb[18].mxu0 }
 0x26b   : > { %v2017_v62 = vpop.f32.mrb[19].mxu0 }
 0x26c   : > { %v4937_v63 = vpop.f32.mrb[4].mxu1 }
 0x26d   : > { %v2102_v1 = vpop.f32.mrb[5].mxu1 }
 0x26e   : > { %v4939_v2 = vpop.f32.mrb[6].mxu1 }
 0x26f   : > { %v2105_v3 = vpop.f32.mrb[7].mxu1 }
 0x270   : > { %v2020_v46 = vpop.f32.mrb[20].mxu0 }
 0x271   : > { %v2022_v51 = vpop.f32.mrb[21].mxu0 }
 0x272   : > { %v2023_v54 = vpop.f32.mrb[22].mxu0 }
 0x273   : > { %v2025_v60 = vpop.f32.mrb[23].mxu0 }
 0x274   : > { %v4941_v4 = vpop.f32.mrb[8].mxu1 }
 0x275   : > { %v2110_v0 = vpop.f32.mrb[9].mxu1 }
 0x276   : > { %v4943_v5 = vpop.f32.mrb[10].mxu1 }
 0x277   : > { %v2113_v6 = vpop.f32.mrb[11].mxu1 }
 0x278   : > { %v4945_v7 = vpop.f32.mrb[24].mxu0 }
 0x279   : > { %v2030_v8 = vpop.f32.mrb[25].mxu0 }
 0x27a   : > { %v4947_v9 = vpop.f32.mrb[26].mxu0 }
 0x27b   : > { %v2033_v10 = vpop.f32.mrb[27].mxu0 }
 0x27c   : > { %v4949_v11 = vpop.f32.mrb[12].mxu1 }
 0x27d   : > { %v2118_v12 = vpop.f32.mrb[13].mxu1 }
 0x27e   : > { %v4951_v14 = vpop.f32.mrb[14].mxu1 }
 0x27f   : > { %v2121_v15 = vpop.f32.mrb[15].mxu1 }
 0x280   : > { %v2036_v16 = vpop.f32.mrb[28].mxu0 }
 0x281   : > { %v2038_v17 = vpop.f32.mrb[29].mxu0 }
 0x282   : > { %v2039_v18 = vpop.f32.mrb[30].mxu0 }
 0x283   : > { %v2041_v20 = vpop.f32.mrb[31].mxu0 }
 0x284   : > { %v3924_v61 = vpop.f32.mrb[16].mxu1 }
 0x285   : > { %v4953_v21 = vadd.f32 %v3924_v61, %v1988_v39  ;;  %v2157_v22 = vpop.f32.mrb[17].mxu1 }
 0x286   : > { %v4955_v24 = vadd.f32 %v2157_v22, %v1980_v35  ;;  %v3925_v25 = vpop.f32.mrb[18].mxu1 }
 0x287   : > { %v4957_v26 = vadd.f32 %v3925_v25, %v1991_v40  ;;  %v2160_v27 = vpop.f32.mrb[19].mxu1  ;;  %2424 = vrot.lane.b32.xlu0 %v4953_v21, %s4247_s15 }
 0x288   : > { %v4961_v29 = vadd.f32 %v2160_v27, %v1983_v37  ;;  %v2044_v30 = vpop.f32.mrb[32].mxu0 }
 0x289   : > { %2426 = vrot.lane.b32.xlu1 %v4957_v26, %s4247_s15  ;;  %v2046_v31 = vpop.f32.mrb[33].mxu0 }
 0x28a   : > { %v2047_v32 = vpop.f32.mrb[34].mxu0 }
 0x28b   : > { %2953 = vrot.lane.b32.xlu0 %v4953_v21, %s4246_s24  ;;  %v2049_v33 = vpop.f32.mrb[35].mxu0 }
 0x28c   : > { %v3928_v34 = vpop.f32.mrb[20].mxu1 }
 0x28d   : > { %v4967_v13 = vadd.f32 %v3928_v34, %v2004_v47  ;;  %v2173_v23 = vpop.f32.mrb[21].mxu1  ;;  %2955 = vrot.lane.b32.xlu1 %v4957_v26, %s4246_s24 }
 0x28e   : > { %v4971_v28 = vadd.f32 %v2173_v23, %v1996_v42  ;;  %v3929_v35 = vpop.f32.mrb[22].mxu1 }
 0x28f   : > { %v4973_v36 = vadd.f32 %v3929_v35, %v2007_v49  ;;  %v2176_v37 = vpop.f32.mrb[23].mxu1  ;;  %2420 = vrot.lane.b32.xlu0 %v4955_v24, %s4247_s15 }
 0x290   : > { %v4978_v38 = vadd.f32 %v2176_v37, %v4927_v44  ;;  %v2052_v39 = vpop.f32.mrb[36].mxu0 }
 0x291   : > { %2422 = vrot.lane.b32.xlu1 %v4961_v29, %s4247_s15  ;;  %v2054_v19 = vpop.f32.mrb[37].mxu0 }
 0x292   : > { %v2055_v40 = vpop.f32.mrb[38].mxu0 }
 0x293   : > { %2949 = vrot.lane.b32.xlu0 %v4955_v24, %s4246_s24  ;;  %v2057_v41 = vpop.f32.mrb[39].mxu0 }
 0x294   : > { %v3932_v42 = vpop.f32.mrb[24].mxu1 }
 0x295   : > { %v4984_v43 = vadd.f32 %v3932_v42, %v2020_v46  ;;  %v2189_v45 = vpop.f32.mrb[25].mxu1  ;;  %2951 = vrot.lane.b32.xlu1 %v4961_v29, %s4246_s24 }
 0x296   : > { %v4989_v44 = vadd.f32 %v2189_v45, %v4933_v57  ;;  %v3933_v47 = vpop.f32.mrb[26].mxu1 }
 0x297   : > { %v4991_v48 = vadd.f32 %v3933_v47, %v2023_v54  ;;  %v2192_v49 = vpop.f32.mrb[27].mxu1  ;;  %2432 = vrot.lane.b32.xlu0 %v4967_v13, %s4247_s15 }
 0x298   : > { %v4996_v50 = vadd.f32 %v2192_v49, %v4935_v59  ;;  %v2060_v53 = vpop.f32.mrb[40].mxu0 }
 0x299   : > { %2434 = vrot.lane.b32.xlu1 %v4973_v36, %s4247_s15  ;;  %v2062_v56 = vpop.f32.mrb[41].mxu0 }
 0x29a   : > { %v2063_v58 = vpop.f32.mrb[42].mxu0 }
 0x29b   : > { %2961 = vrot.lane.b32.xlu0 %v4967_v13, %s4246_s24  ;;  %v2065_v57 = vpop.f32.mrb[43].mxu0 }
 0x29c   : > { %v3936_v62 = vpop.f32.mrb[28].mxu1 }
 0x29d   : > { %v5002_v1 = vadd.f32 %v3936_v62, %v2036_v16  ;;  %v2205_v3 = vpop.f32.mrb[29].mxu1  ;;  %2963 = vrot.lane.b32.xlu1 %v4973_v36, %s4246_s24 }
 0x29e   : > { %v5007_v59 = vadd.f32 %v2205_v3, %v4945_v7  ;;  %v3937_v46 = vpop.f32.mrb[30].mxu1 }
 0x29f   : > { %v5009_v51 = vadd.f32 %v3937_v46, %v2039_v18  ;;  %v2208_v54 = vpop.f32.mrb[31].mxu1  ;;  %2428 = vrot.lane.b32.xlu0 %v4971_v28, %s4247_s15 }
 0x2a0   : > { %v5014_v60 = vadd.f32 %v2208_v54, %v4947_v9  ;;  %v2068_v0 = vpop.f32.mrb[44].mxu0 }
 0x2a1   : > { %5942 = vst [vmem:[#allocation5_spill] sm:$0xff] %v5009_v51  ;;  %2430 = vrot.lane.b32.xlu1 %v4978_v38, %s4247_s15  ;;  %v2070_v6 = vpop.f32.mrb[45].mxu0 }
 0x2a2   : > { %v2071_v8 = vpop.f32.mrb[46].mxu0 }
 0x2a3   : > { %2957 = vrot.lane.b32.xlu0 %v4971_v28, %s4246_s24  ;;  %v2073_v7 = vpop.f32.mrb[47].mxu0 }
 0x2a4   : > { %v3940_v10 = vpop.f32.mrb[32].mxu1 }
 0x2a5   : > { %v5020_v12 = vadd.f32 %v3940_v10, %v2052_v39  ;;  %v2221_v15 = vpop.f32.mrb[33].mxu1  ;;  %2959 = vrot.lane.b32.xlu1 %v4978_v38, %s4246_s24 }
 0x2a6   : > { %v5024_v16 = vadd.f32 %v2221_v15, %v2044_v30  ;;  %v3941_v9 = vpop.f32.mrb[34].mxu1 }
 0x2a7   : > { %v5026_v17 = vadd.f32 %v3941_v9, %v2055_v40  ;;  %v2224_v18 = vpop.f32.mrb[35].mxu1  ;;  %2440 = vrot.lane.b32.xlu0 %v4984_v43, %s4247_s15 }
 0x2a8   : > { %v5030_v20 = vadd.f32 %v2224_v18, %v2047_v32  ;;  %v2076_v61 = vpop.f32.mrb[48].mxu0 }
 0x2a9   : > { %2442 = vrot.lane.b32.xlu1 %v4991_v48, %s4247_s15  ;;  %v2078_v22 = vpop.f32.mrb[49].mxu0 }
 0x2aa   : > { %v2079_v25 = vpop.f32.mrb[50].mxu0 }
 0x2ab   : > { %2969 = vrot.lane.b32.xlu0 %v4984_v43, %s4246_s24  ;;  %v2081_v27 = vpop.f32.mrb[51].mxu0 }
 0x2ac   : > { %v3944_v30 = vpop.f32.mrb[36].mxu1 }
 0x2ad   : > { %v5036_v31 = vadd.f32 %v3944_v30, %v2068_v0  ;;  %v2237_v33 = vpop.f32.mrb[37].mxu1  ;;  %2971 = vrot.lane.b32.xlu1 %v4991_v48, %s4246_s24 }
 0x2ae   : > { %v5040_v34 = vadd.f32 %v2237_v33, %v2060_v53  ;;  %v3945_v32 = vpop.f32.mrb[38].mxu1 }
 0x2af   : > { %v5042_v23 = vadd.f32 %v3945_v32, %v2071_v8  ;;  %v2240_v35 = vpop.f32.mrb[39].mxu1  ;;  %2436 = vrot.lane.b32.xlu0 %v4989_v44, %s4247_s15 }
 0x2b0   : > { %v5046_v37 = vadd.f32 %v2240_v35, %v2063_v58  ;;  %v2084_v39 = vpop.f32.mrb[52].mxu0 }
 0x2b1   : > { %2438 = vrot.lane.b32.xlu1 %v4996_v50, %s4247_s15  ;;  %v2086_v19 = vpop.f32.mrb[53].mxu0 }
 0x2b2   : > { %v2087_v40 = vpop.f32.mrb[54].mxu0 }
 0x2b3   : > { %2965 = vrot.lane.b32.xlu0 %v4989_v44, %s4246_s24  ;;  %v2089_v41 = vpop.f32.mrb[55].mxu0 }
 0x2b4   : > { %v3948_v42 = vpop.f32.mrb[40].mxu1 }
 0x2b5   : > { %v5052_v45 = vadd.f32 %v3948_v42, %v2084_v39  ;;  %v2253_v47 = vpop.f32.mrb[41].mxu1  ;;  %2967 = vrot.lane.b32.xlu1 %v4996_v50, %s4246_s24  ;;  %v3154_v39 = vld [vmem:[%s5934_s4 + $0x8] sm:$0xff]  ;;  %v3155_v42 = vld [vmem:[%s5934_s4 + $0x10] sm:$0xff] }
 0x2b6   : > { %v5056_v49 = vadd.f32 %v2253_v47, %v2076_v61  ;;  %v3949_v53 = vpop.f32.mrb[42].mxu1 }
 0x2b7   : > { %v5058_v56 = vadd.f32 %v3949_v53, %v2087_v40  ;;  %v2256_v58 = vpop.f32.mrb[43].mxu1  ;;  %2448 = vrot.lane.b32.xlu0 %v5002_v1, %s4247_s15  ;;  %v3153_v40 = vld [vmem:[%s5934_s4] sm:$0xff]  ;;  %v3156_v53 = vld [vmem:[%s5934_s4 + $0x18] sm:$0xff] }
 0x2b8   : > { %v5062_v57 = vadd.f32 %v2256_v58, %v2079_v25 }
 0x2b9   : > { %2450 = vrot.lane.b32.xlu1 %v5009_v51, %s4247_s15 }
 0x2bb   : > { %2977 = vrot.lane.b32.xlu0 %v5002_v1, %s4246_s24 }
 0x2bc   : > { %v3952_v62 = vpop.f32.mrb[44].mxu1 }
 0x2bd   : > { %v5069_v3 = vadd.f32 %v3952_v62, %v4937_v63  ;;  %v2269_v46 = vpop.f32.mrb[45].mxu1  ;;  %2979 = vrot.lane.b32.xlu1 %v5009_v51, %s4246_s24 }
 0x2be   : > { %v5074_v54 = vadd.f32 %v2269_v46, %v4929_v52  ;;  %v3953_v0 = vpop.f32.mrb[46].mxu1 }
 0x2bf   : > { %v5077_v6 = vadd.f32 %v3953_v0, %v4939_v2  ;;  %v2272_v8 = vpop.f32.mrb[47].mxu1  ;;  %2444 = vrot.lane.b32.xlu0 %v5007_v59, %s4247_s15 }
 0x2c0   : > { %v5082_v7 = vadd.f32 %v2272_v8, %v4931_v55 }
 0x2c1   : > { %2446 = vrot.lane.b32.xlu1 %v5014_v60, %s4247_s15 }
 0x2c3   : > { %2973 = vrot.lane.b32.xlu0 %v5007_v59, %s4246_s24 }
 0x2c4   : > { %v3956_v63 = vpop.f32.mrb[48].mxu1 }
 0x2c5   : > { %v5089_v52 = vadd.f32 %v3956_v63, %v4949_v11  ;;  %v2285_v10 = vpop.f32.mrb[49].mxu1  ;;  %2975 = vrot.lane.b32.xlu1 %v5014_v60, %s4246_s24 }
 0x2c6   : > { %v5094_v2 = vadd.f32 %v2285_v10, %v4941_v4  ;;  %v3957_v15 = vpop.f32.mrb[50].mxu1 }
 0x2c7   : > { %5943 = vst [vmem:[#allocation6_spill] sm:$0xff] %v5089_v52  ;;  %v5097_v55 = vadd.f32 %v3957_v15, %v4951_v14  ;;  %v2288_v9 = vpop.f32.mrb[51].mxu1  ;;  %2452 = vrot.lane.b32.xlu0 %v5024_v16, %s4247_s15 }
 0x2c8   : > { %5944 = vst [vmem:[#allocation7_spill] sm:$0xff] %v5094_v2  ;;  %v5102_v18 = vadd.f32 %v2288_v9, %v4943_v5 }
 0x2c9   : > { %5945 = vst [vmem:[#allocation8_spill] sm:$0xff] %v5097_v55  ;;  %2454 = vrot.lane.b32.xlu1 %v5030_v20, %s4247_s15 }
 0x2ca   : > { %5946 = vst [vmem:[#allocation9_spill] sm:$0xff] %v5102_v18 }
 0x2cb   : > { %2981 = vrot.lane.b32.xlu0 %v5024_v16, %s4246_s24 }
 0x2cd   : > { %2983 = vrot.lane.b32.xlu1 %v5030_v20, %s4246_s24 }
 0x2cf   : > { %2456 = vrot.lane.b32.xlu0 %v5020_v12, %s4247_s15 }
 0x2d1   : > { %2458 = vrot.lane.b32.xlu1 %v5026_v17, %s4247_s15 }
 0x2d3   : > { %2985 = vrot.lane.b32.xlu0 %v5020_v12, %s4246_s24 }
 0x2d5   : > { %2987 = vrot.lane.b32.xlu1 %v5026_v17, %s4246_s24 }
 0x2d7   : > { %2460 = vrot.lane.b32.xlu0 %v5040_v34, %s4247_s15 }
 0x2d9   : > { %2462 = vrot.lane.b32.xlu1 %v5046_v37, %s4247_s15 }
 0x2db   : > { %2989 = vrot.lane.b32.xlu0 %v5040_v34, %s4246_s24 }
 0x2dd   : > { %2991 = vrot.lane.b32.xlu1 %v5046_v37, %s4246_s24 }
 0x2df   : > { %2464 = vrot.lane.b32.xlu0 %v5036_v31, %s4247_s15 }
 0x2e1   : > { %2466 = vrot.lane.b32.xlu1 %v5042_v23, %s4247_s15 }
 0x2e3   : > { %2480 = vrot.lane.b32.xlu0 %v5069_v3, %s4247_s15 }
 0x2e5   : > { %2482 = vrot.lane.b32.xlu1 %v5077_v6, %s4247_s15 }
 0x2e7   : > { %2993 = vrot.lane.b32.xlu0 %v5036_v31, %s4246_s24 }
 0x2e9   : > { %2995 = vrot.lane.b32.xlu1 %v5042_v23, %s4246_s24 }
 0x2eb   : > { %3009 = vrot.lane.b32.xlu0 %v5069_v3, %s4246_s24 }
 0x2ed   : > { %3011 = vrot.lane.b32.xlu1 %v5077_v6, %s4246_s24 }
 0x2ef   : > { %2476 = vrot.lane.b32.xlu0 %v5074_v54, %s4247_s15 }
 0x2f1   : > { %2478 = vrot.lane.b32.xlu1 %v5082_v7, %s4247_s15 }
 0x2f3   : > { %3005 = vrot.lane.b32.xlu0 %v5074_v54, %s4246_s24 }
 0x2f5   : > { %3007 = vrot.lane.b32.xlu1 %v5082_v7, %s4246_s24 }
 0x2f7   : > { %2468 = vrot.lane.b32.xlu0 %v5056_v49, %s4247_s15 }
 0x2f9   : > { %v5152_v4 = vpop.permute.xlu0 %2424  ;;  %2470 = vrot.lane.b32.xlu1 %v5062_v57, %s4247_s15 }
 0x2fb   : > { %v5156_v5 = vpop.permute.xlu1 %2426  ;;  %2488 = vrot.lane.b32.xlu0 %v5089_v52, %s4247_s15 }
 0x2fd   : > { %v5160_v11 = vpop.permute.xlu0 %2953  ;;  %2490 = vrot.lane.b32.xlu1 %v5097_v55, %s4247_s15 }
 0x2fe   : > { %5947 = vst [vmem:[#allocation10_spill] sm:$0xff] %v5160_v11 }
 0x2ff   : > { %v5164_v14 = vpop.permute.xlu1 %2955  ;;  %2997 = vrot.lane.b32.xlu0 %v5056_v49, %s4246_s24 }
 0x300   : > { %5948 = vst [vmem:[#allocation11_spill] sm:$0xff] %v5164_v14 }
 0x301   : > { %v5168_v61 = vpop.permute.xlu0 %2420  ;;  %2999 = vrot.lane.b32.xlu1 %v5062_v57, %s4246_s24 }
 0x303   : > { %v5172_v22 = vpop.permute.xlu1 %2422  ;;  %3017 = vrot.lane.b32.xlu0 %v5089_v52, %s4246_s24 }
 0x305   : > { %v5176_v25 = vpop.permute.xlu0 %2949  ;;  %3019 = vrot.lane.b32.xlu1 %v5097_v55, %s4246_s24 }
 0x307   : > { %v5180_v27 = vpop.permute.xlu1 %2951  ;;  %2484 = vrot.lane.b32.xlu0 %v5094_v2, %s4247_s15 }
 0x309   : > { %v5184_v30 = vpop.permute.xlu0 %2432  ;;  %2486 = vrot.lane.b32.xlu1 %v5102_v18, %s4247_s15 }
 0x30b   : > { %3013 = vrot.lane.b32.xlu0 %v5094_v2, %s4246_s24  ;;  %v5190_v33 = vpop.permute.xlu1 %2434 }
 0x30d   : > { %3015 = vrot.lane.b32.xlu1 %v5102_v18, %s4246_s24  ;;  %v5194_v32 = vpop.permute.xlu0 %2961 }
 0x30e   : > { %5949 = vst [vmem:[#allocation12_spill] sm:$0xff] %v5194_v32 }
 0x30f   : > { %2472 = vrot.lane.b32.xlu0 %v5052_v45, %s4247_s15  ;;  %v5200_v35 = vpop.permute.xlu1 %2963 }
 0x310   : > { %5950 = vst [vmem:[#allocation13_spill] sm:$0xff] %v5200_v35 }
 0x311   : > { %2474 = vrot.lane.b32.xlu1 %v5058_v56, %s4247_s15  ;;  %v5207_v19 = vpop.permute.xlu0 %2428 }
 0x313   : > { %3001 = vrot.lane.b32.xlu0 %v5052_v45, %s4246_s24  ;;  %v5214_v41 = vpop.permute.xlu1 %2430 }
 0x315   : > { %3003 = vrot.lane.b32.xlu1 %v5058_v56, %s4246_s24  ;;  %v5219_v47 = vpop.permute.xlu0 %2957 }
 0x316   : > { %5951 = vst [vmem:[#allocation14_spill] sm:$0xff] %v5219_v47 }
 0x317   : > { %3164 = vperm.xlu0 %4013, %v3154_v39   ;;  %v5226_v58 = vpop.permute.xlu1 %2959 }
 0x318   : > { %5952 = vst [vmem:[#allocation15_spill] sm:$0xff] %v5226_v58 }
 0x319   : > { %3159 = vperm.xlu1 %4012, %v3153_v40   ;;  %v5230_v62 = vpop.permute.xlu0 %2440 }
 0x31b   : > { %3227 = vrot.lane.b32.xlu0 %v4961_v29, %s4248_s25  ;;  %v5234_v46 = vpop.permute.xlu1 %2442 }
 0x31d   : > { %3169 = vperm.xlu1 %4012, %v3155_v42   ;;  %v5238_v0 = vpop.permute.xlu0 %2969 }
 0x31e   : > { %5953 = vst [vmem:[#allocation16_spill] sm:$0xff] %v5238_v0 }
 0x31f   : > { %3229 = vrot.lane.b32.xlu0 %v4953_v21, %s4248_s25  ;;  %v5244_v8 = vpop.permute.xlu1 %2971 }
 0x320   : > { %5954 = vst [vmem:[#allocation17_spill] sm:$0xff] %v5244_v8 }
 0x321   : > { %3174 = vperm.xlu1 %4012, %v3156_v53   ;;  %v5248_v63 = vpop.permute.xlu0 %2436 }
 0x323   : > { %3231 = vrot.lane.b32.xlu0 %v4957_v26, %s4248_s25  ;;  %v5254_v10 = vpop.permute.xlu1 %2438 }
 0x325   : > { %3225 = vrot.lane.b32.xlu1 %v4955_v24, %s4248_s25  ;;  %v5258_v15 = vpop.permute.xlu0 %2965 }
 0x326   : > { %5955 = vst [vmem:[#allocation18_spill] sm:$0xff] %v5258_v15 }
 0x327   : > { %3233 = vrot.lane.b32.xlu0 %v4971_v28, %s4248_s25  ;;  %v5264_v9 = vpop.permute.xlu1 %2967 }
 0x328   : > { %5956 = vst [vmem:[#allocation19_spill] sm:$0xff] %v5264_v9 }
 0x329   : > { %3257 = vrot.lane.b32.xlu1 %v5024_v16, %s4248_s25  ;;  %v5268_v39 = vpop.permute.xlu0 %2448 }
 0x32b   : > { %3235 = vrot.lane.b32.xlu0 %v4978_v38, %s4248_s25  ;;  %v5274_v40 = vpop.permute.xlu1 %2450 }
 0x32d   : > { %3259 = vrot.lane.b32.xlu1 %v5030_v20, %s4248_s25  ;;  %v5278_v42 = vpop.permute.xlu0 %2977 }
 0x32e   : > { %5957 = vst [vmem:[#allocation20_spill] sm:$0xff] %v5278_v42 }
 0x32f   : > { %3237 = vrot.lane.b32.xlu0 %v4967_v13, %s4248_s25  ;;  %v5284_v53 = vpop.permute.xlu1 %2979 }
 0x330   : > { %5958 = vst [vmem:[#allocation21_spill] sm:$0xff] %v5284_v53 }
 0x331   : > { %3261 = vrot.lane.b32.xlu1 %v5020_v12, %s4248_s25  ;;  %v5288_v8 = vpop.permute.xlu0 %2444 }
 0x333   : > { %3239 = vrot.lane.b32.xlu0 %v4973_v36, %s4248_s25  ;;  %v5294_v42 = vpop.permute.xlu1 %2446 }
 0x335   : > { %3263 = vrot.lane.b32.xlu1 %v5026_v17, %s4248_s25  ;;  %v5298_v0 = vpop.permute.xlu0 %2973 }
 0x336   : > { %5959 = vst [vmem:[#allocation22_spill] sm:$0xff] %v5298_v0 }
 0x337   : > { %3241 = vrot.lane.b32.xlu0 %v4989_v44, %s4248_s25  ;;  %v5304_v53 = vpop.permute.xlu1 %2975 }
 0x338   : > { %5960 = vst [vmem:[#allocation23_spill] sm:$0xff] %v5304_v53 }
 0x339   : > { %3265 = vrot.lane.b32.xlu1 %v5040_v34, %s4248_s25  ;;  %v2453_v9 = vpop.permute.xlu0 %2452 }
 0x33b   : > { %3243 = vrot.lane.b32.xlu0 %v4996_v50, %s4248_s25  ;;  %v2455_v15 = vpop.permute.xlu1 %2454 }
 0x33d   : > { %3267 = vrot.lane.b32.xlu1 %v5046_v37, %s4248_s25  ;;  %v5314_v0 = vpop.permute.xlu0 %2981 }
 0x33e   : > { %5961 = vst [vmem:[#allocation24_spill] sm:$0xff] %v5314_v0 }
 0x33f   : > { %3245 = vrot.lane.b32.xlu0 %v4984_v43, %s4248_s25  ;;  %v5320_v53 = vpop.permute.xlu1 %2983 }
 0x340   : > { %5962 = vst [vmem:[#allocation25_spill] sm:$0xff] %v5320_v53 }
 0x341   : > { %3269 = vrot.lane.b32.xlu1 %v5036_v31, %s4248_s25  ;;  %v2457_v35 = vpop.permute.xlu0 %2456 }
 0x343   : > { %3247 = vrot.lane.b32.xlu0 %v4991_v48, %s4248_s25  ;;  %v2459_v32 = vpop.permute.xlu1 %2458 }
 0x345   : > { %3271 = vrot.lane.b32.xlu1 %v5042_v23, %s4248_s25  ;;  %v5328_v0 = vpop.permute.xlu0 %2985 }
 0x346   : > { %5963 = vst [vmem:[#allocation26_spill] sm:$0xff] %v5328_v0 }
 0x347   : > { %3249 = vrot.lane.b32.xlu0 %v5007_v59, %s4248_s25 }
 0x349   : > { %3273 = vrot.lane.b32.xlu1 %v5056_v49, %s4248_s25  ;;  %v2461_v58 = vpop.permute.xlu0 %2460 }
 0x34b   : > { %3289 = vrot.lane.b32.xlu0 %v5094_v2, %s4248_s25 }
 0x34d   : > { %3275 = vrot.lane.b32.xlu1 %v5062_v57, %s4248_s25  ;;  %v5338_v47 = vpop.permute.xlu0 %2989 }
 0x34e   : > { %5965 = vst [vmem:[#allocation28_spill] sm:$0xff] %v5338_v47 }
 0x34f   : > { %3283 = vrot.lane.b32.xlu0 %v5082_v7, %s4248_s25 }
 0x351   : > { %3277 = vrot.lane.b32.xlu1 %v5052_v45, %s4248_s25 }
 0x353   : > { %3253 = vrot.lane.b32.xlu0 %v5002_v1, %s4248_s25 }
 0x355   : > { %3279 = vrot.lane.b32.xlu1 %v5058_v56, %s4248_s25 }
 0x357   : > { %3293 = vrot.lane.b32.xlu0 %v5089_v52, %s4248_s25  ;;  %v5332_v52 = vpop.permute.xlu1 %2987 }
 0x358   : > { %5964 = vst [vmem:[#allocation27_spill] sm:$0xff] %v5332_v52 }
 0x359   : > { %3281 = vrot.lane.b32.xlu1 %v5074_v54, %s4248_s25 }
 0x35b   : > { %3287 = vrot.lane.b32.xlu0 %v5077_v6, %s4248_s25  ;;  %v2463_v53 = vpop.permute.xlu1 %2462 }
 0x35d   : > { %3251 = vrot.lane.b32.xlu1 %v5014_v60, %s4248_s25 }
 0x35f   : > { %v5340_v2 = vpop.permute.xlu1 %2991 }
 0x360   : > { %5966 = vst [vmem:[#allocation29_spill] sm:$0xff] %v5340_v2 }
 0x361   : > { %3291 = vrot.lane.b32.xlu1 %v5102_v18, %s4248_s25  ;;  %v2465_v18 = vpop.permute.xlu0 %2464 }
 0x363   : > { %v2467_v14 = vpop.permute.xlu1 %2466 }
 0x365   : > { %3285 = vrot.lane.b32.xlu1 %v5069_v3, %s4248_s25  ;;  %v2481_v0 = vpop.permute.xlu0 %2480 }
 0x367   : > { %v2483_v52 = vpop.permute.xlu1 %2482 }
 0x369   : > { %3255 = vrot.lane.b32.xlu1 %v5009_v51, %s4248_s25  ;;  %v5344_v11 = vpop.permute.xlu0 %2993 }
 0x36b   : > { %v5347_v51 = vpop.permute.xlu1 %2995 }
 0x36d   : > { %3295 = vrot.lane.b32.xlu1 %v5097_v55, %s4248_s25  ;;  %v5350_v55 = vpop.permute.xlu0 %3009 }
 0x36f   : > { %v5353_v2 = vpop.permute.xlu1 %3011 }
 0x370   : > { %5967 = vst [vmem:[#allocation30_spill] sm:$0xff] %v5353_v2 }
 0x371   : > { %v2477_v47 = vpop.permute.xlu0 %2476 }
 0x379   : > { %2528 = vxpose.xlu0.b32.start [1/16] (narrow) %v5168_v61, 32  ;;  %v2479_v61 = vpop.permute.xlu1 %2478 }
 0x37d   : > { %2529 = vxpose.xlu0.b32.cont [2/16] (narrow) %v5172_v22, 32  ;;  %v5357_v22 = vpop.permute.xlu0 %3005 }
 0x381   : > { %2530 = vxpose.xlu0.b32.cont [3/16] (narrow) %v5152_v4, 32  ;;  %v5360_v4 = vpop.permute.xlu1 %3007 }
 0x385   : > { %2531 = vxpose.xlu0.b32.cont [4/16] (narrow) %v5156_v5, 32  ;;  %v2469_v5 = vpop.permute.xlu0 %2468 }
 0x389   : > { %2532 = vxpose.xlu0.b32.cont [5/16] (narrow) %v5207_v19, 32  ;;  %v2471_v19 = vpop.permute.xlu1 %2470  ;;  %v2489_v2 = vpop.permute.xlu0 %2488 }
 0x38d   : > { %2533 = vxpose.xlu0.b32.cont [6/16] (narrow) %v5214_v41, 32  ;;  %v5365_v41 = vpop.permute.xlu0 %2997 }
 0x391   : > { %2534 = vxpose.xlu0.b32.cont [7/16] (narrow) %v5184_v30, 32  ;;  %v2491_v30 = vpop.permute.xlu1 %2490 }
 0x395   : > { %2535 = vxpose.xlu0.b32.cont [8/16] (narrow) %v5190_v33, 32  ;;  %v5368_v33 = vpop.permute.xlu1 %2999 }
 0x396   : > { %2560 = vxpose.xlu1.b32.start [1/16] (narrow) %v2453_v9, 32 }
 0x399   : > { %2536 = vxpose.xlu0.b32.cont [9/16] (narrow) %v5248_v63, 32  ;;  %v5371_v63 = vpop.permute.xlu0 %3017 }
 0x39a   : > { %2561 = vxpose.xlu1.b32.cont [2/16] (narrow) %v2455_v15, 32 }
 0x39d   : > { %2537 = vxpose.xlu0.b32.cont [10/16] (narrow) %v5254_v10, 32 }
 0x39e   : > { %2562 = vxpose.xlu1.b32.cont [3/16] (narrow) %v2457_v35, 32  ;;  %v5374_v35 = vpop.permute.xlu1 %3019 }
 0x3a1   : > { %2538 = vxpose.xlu0.b32.cont [11/16] (narrow) %v5230_v62, 32  ;;  %v2485_v62 = vpop.permute.xlu0 %2484 }
 0x3a2   : > { %2563 = vxpose.xlu1.b32.cont [4/16] (narrow) %v2459_v32, 32  ;;  %v2487_v32 = vpop.permute.xlu1 %2486 }
 0x3a5   : > { %2539 = vxpose.xlu0.b32.cont [12/16] (narrow) %v5234_v46, 32 }
 0x3a6   : > { %2564 = vxpose.xlu1.b32.cont [5/16] (narrow) %v2461_v58, 32  ;;  %v5378_v58 = vpop.permute.xlu0 %3013  ;;  %v5380_v46 = vpop.permute.xlu1 %3015 }
 0x3a9   : > { %2540 = vxpose.xlu0.b32.cont [13/16] (narrow) %v5288_v8, 32 }
 0x3aa   : > { %2565 = vxpose.xlu1.b32.cont [6/16] (narrow) %v2463_v53, 32  ;;  %v2473_v8 = vpop.permute.xlu0 %2472  ;;  %v5980_v53 = vld [vmem:[#allocation18_spill] sm:$0xff] }
 0x3ad   : > { %2541 = vxpose.xlu0.b32.cont [14/16] (narrow) %v5294_v42, 32 }
 0x3ae   : > { %2566 = vxpose.xlu1.b32.cont [7/16] (narrow) %v2465_v18, 32  ;;  %v2475_v18 = vpop.permute.xlu1 %2474  ;;  %v5389_v15 = vpop.permute.xlu0 %3001 }
 0x3b1   : > { %2542 = vxpose.xlu0.b32.cont [15/16] (narrow) %v5268_v39, 32  ;;  %v5978_v39 = vld [vmem:[#allocation13_spill] sm:$0xff] }
 0x3b2   : > { %2567 = vxpose.xlu1.b32.cont [8/16] (narrow) %v2467_v14, 32  ;;  %v5383_v14 = vpop.permute.xlu1 %3003 }
 0x3b5   : > { %2543 = vxpose.xlu0.b32.end [16/16] (narrow) %v5274_v40, 32  ;;  %v5979_v40 = vld [vmem:[#allocation24_spill] sm:$0xff] }
 0x3b6   : > { %2568 = vxpose.xlu1.b32.cont [9/16] (narrow) %v2469_v5, 32  ;;  %v5386_v10 = vpop.permute.xlu1 %3159 }
 0x3b9   : > { %2592 = vxpose.xlu0.b32.start [1/4] (short) (narrow) %v2485_v62, 32  ;;  %v5983_v62 = vld [vmem:[#allocation26_spill] sm:$0xff] }
 0x3ba   : > { %2569 = vxpose.xlu1.b32.cont [10/16] (narrow) %v2471_v19, 32  ;;  %v5391_v9 = vpop.permute.xlu1 %3169  ;;  %v5982_v19 = vld [vmem:[#allocation19_spill] sm:$0xff] }
 0x3bd   : > { %2593 = vxpose.xlu0.b32.cont [2/4] (short) (narrow) %v2487_v32, 32 }
 0x3be   : > { %2570 = vxpose.xlu1.b32.cont [11/16] (narrow) %v2473_v8, 32  ;;  %v5984_v8 = vld [vmem:[#allocation16_spill] sm:$0xff] }
 0x3c1   : > { %2594 = vxpose.xlu0.b32.cont [3/4] (short) (narrow) %v2489_v2, 32  ;;  %v5398_v2 = vpop.permute.xlu1 %3174 }
 0x3c2   : > { %2571 = vxpose.xlu1.b32.cont [12/16] (narrow) %v2475_v18, 32  ;;  %v5985_v18 = vld [vmem:[#allocation27_spill] sm:$0xff] }
 0x3c5   : > { %2595 = vxpose.xlu0.b32.end [4/4] (short) (narrow) %v2491_v30, 32 }
 0x3c6   : > { %2572 = vxpose.xlu1.b32.cont [13/16] (narrow) %v2477_v47, 32  ;;  %v5977_v47 = vld [vmem:[#allocation8_spill] sm:$0xff] }
 0x3c9   : > { %2777 = vxpose.xlu0.b32.start [1/16] (narrow) %v5024_v16, 32  ;;  %v5395_v16 = vpop.permute.xlu0 %3164 }
 0x3ca   : > { %2573 = vxpose.xlu1.b32.cont [14/16] (narrow) %v2479_v61, 32  ;;  %v5981_v61 = vld [vmem:[#allocation25_spill] sm:$0xff] }
 0x3cd   : > { %2778 = vxpose.xlu0.b32.cont [2/16] (narrow) %v5030_v20, 32  ;;  %v5401_v20 = vpop.permute.xlu0 %3227 }
 0x3ce   : > { %2574 = vxpose.xlu1.b32.cont [15/16] (narrow) %v2481_v0, 32 }
 0x3d1   : > { %2779 = vxpose.xlu0.b32.cont [3/16] (narrow) %v5020_v12, 32  ;;  %v5405_v12 = vpop.permute.xlu1 %3225 }
 0x3d2   : > { %2575 = vxpose.xlu1.b32.end [16/16] (narrow) %v2483_v52, 32 }
 0x3d5   : > { %2780 = vxpose.xlu0.b32.cont [4/16] (narrow) %v5026_v17, 32  ;;  %v5412_v17 = vpop.permute.xlu1 %3257 }
 0x3d6   : > { %2745 = vxpose.xlu1.b32.start [1/16] (narrow) %v4955_v24, 32  ;;  %v5409_v24 = vpop.permute.xlu0 %3229 }
 0x3d9   : > { %2781 = vxpose.xlu0.b32.cont [5/16] (narrow) %v5040_v34, 32 }
 0x3da   : > { %2746 = vxpose.xlu1.b32.cont [2/16] (narrow) %v4961_v29, 32  ;;  %v5415_v29 = vpop.permute.xlu0 %3231 }
 0x3dd   : > { %2782 = vxpose.xlu0.b32.cont [6/16] (narrow) %v5046_v37, 32  ;;  %v5968_v37 = vld [vmem:[#allocation10_spill] sm:$0xff] }
 0x3de   : > { %2747 = vxpose.xlu1.b32.cont [3/16] (narrow) %v4953_v21, 32  ;;  %v5419_v21 = vpop.permute.xlu1 %3259 }
 0x3e1   : > { %2783 = vxpose.xlu0.b32.cont [7/16] (narrow) %v5036_v31, 32 }
 0x3e2   : > { %2748 = vxpose.xlu1.b32.cont [4/16] (narrow) %v4957_v26, 32  ;;  %v5423_v26 = vpop.permute.xlu0 %3233  ;;  %v5426_v31 = vpop.permute.xlu1 %3261 }
 0x3e5   : > { %2784 = vxpose.xlu0.b32.cont [8/16] (narrow) %v5042_v23, 32 }
 0x3e6   : > { %2749 = vxpose.xlu1.b32.cont [5/16] (narrow) %v4971_v28, 32  ;;  %v5429_v28 = vpop.permute.xlu0 %3235 }
 0x3e9   : > { %2785 = vxpose.xlu0.b32.cont [9/16] (narrow) %v5056_v49, 32  ;;  %v5970_v49 = vld [vmem:[#allocation11_spill] sm:$0xff] }
 0x3ea   : > { %2750 = vxpose.xlu1.b32.cont [6/16] (narrow) %v4978_v38, 32  ;;  %v5433_v38 = vpop.permute.xlu1 %3263 }
 0x3ed   : > { %2786 = vxpose.xlu0.b32.cont [10/16] (narrow) %v5062_v57, 32  ;;  %v5971_v57 = vld [vmem:[#allocation7_spill] sm:$0xff] }
 0x3ee   : > { %2751 = vxpose.xlu1.b32.cont [7/16] (narrow) %v4967_v13, 32  ;;  %v5437_v13 = vpop.permute.xlu0 %3237  ;;  %v5440_v34 = vpop.permute.xlu1 %3265 }
 0x3f1   : > { %2787 = vxpose.xlu0.b32.cont [11/16] (narrow) %v5052_v45, 32  ;;  %v5969_v45 = vld [vmem:[#allocation5_spill] sm:$0xff] }
 0x3f2   : > { %2752 = vxpose.xlu1.b32.cont [8/16] (narrow) %v4973_v36, 32  ;;  %v5443_v36 = vpop.permute.xlu0 %3239 }
 0x3f5   : > { %2788 = vxpose.xlu0.b32.cont [12/16] (narrow) %v5058_v56, 32 }
 0x3f6   : > { %2753 = vxpose.xlu1.b32.cont [9/16] (narrow) %v4989_v44, 32  ;;  %v5447_v44 = vpop.permute.xlu1 %3267 }
 0x3f9   : > { %2789 = vxpose.xlu0.b32.cont [13/16] (narrow) %v5074_v54, 32  ;;  %v5973_v54 = vld [vmem:[#allocation9_spill] sm:$0xff] }
 0x3fa   : > { %2754 = vxpose.xlu1.b32.cont [10/16] (narrow) %v4996_v50, 32  ;;  %v5451_v50 = vpop.permute.xlu0 %3241  ;;  %v5454_v23 = vpop.permute.xlu1 %3269 }
 0x3fd   : > { %2790 = vxpose.xlu0.b32.cont [14/16] (narrow) %v5082_v7, 32  ;;  %v5975_v7 = vld [vmem:[#allocation6_spill] sm:$0xff] }
 0x3fe   : > { %2755 = vxpose.xlu1.b32.cont [11/16] (narrow) %v4984_v43, 32  ;;  %v5457_v43 = vpop.permute.xlu0 %3243 }
 0x401   : > { %2791 = vxpose.xlu0.b32.cont [15/16] (narrow) %v5069_v3, 32  ;;  %v5972_v3 = vld [vmem:[#allocation14_spill] sm:$0xff] }
 0x402   : > { %2756 = vxpose.xlu1.b32.cont [12/16] (narrow) %v4991_v48, 32  ;;  %v5461_v48 = vpop.permute.xlu1 %3271 }
 0x405   : > { %2792 = vxpose.xlu0.b32.end [16/16] (narrow) %v5077_v6, 32  ;;  %v5974_v6 = vld [vmem:[#allocation15_spill] sm:$0xff] }
 0x406   : > { %2757 = vxpose.xlu1.b32.cont [13/16] (narrow) %v5007_v59, 32  ;;  %v5465_v59 = vpop.permute.xlu0 %3245  ;;  %v5468_v56 = vpop.permute.xlu1 %3273 }
 0x409   : > { %3057 = vxpose.xlu0.b32.start [1/16] (narrow) %v5176_v25, 32  ;;  %v5976_v25 = vld [vmem:[#allocation12_spill] sm:$0xff] }
 0x40a   : > { %2758 = vxpose.xlu1.b32.cont [14/16] (narrow) %v5014_v60, 32  ;;  %v5471_v60 = vpop.permute.xlu0 %3247 }
 0x40d   : > { %3058 = vxpose.xlu0.b32.cont [2/16] (narrow) %v5180_v27, 32 }
 0x40e   : > { %2759 = vxpose.xlu1.b32.cont [15/16] (narrow) %v5002_v1, 32  ;;  %v5475_v1 = vpop.permute.xlu1 %3275  ;;  %v5479_v52 = vpop.permute.xlu0 %3249 }
 0x411   : > { %3059 = vxpose.xlu0.b32.cont [3/16] (narrow) %v5968_v37, 32 }
 0x412   : > { %2760 = vxpose.xlu1.b32.end [16/16] (narrow) %v5969_v45, 32  ;;  %v5482_v27 = vpop.permute.xlu1 %3277  ;;  %v5485_v0 = vpop.permute.xlu0 %3289  ;;  %v5986_v45 = vld [vmem:[#allocation17_spill] sm:$0xff] }
 0x415   : > { %3060 = vxpose.xlu0.b32.cont [4/16] (narrow) %v5970_v49, 32  ;;  %v5987_v49 = vld [vmem:[#allocation28_spill] sm:$0xff] }
 0x416   : > { %2809 = vxpose.xlu1.b32.start [1/4] (short) (narrow) %v5971_v57, 32  ;;  %v5489_v42 = vpop.permute.xlu1 %3279  ;;  %v5493_v5 = vpop.permute.xlu0 %3283 }
 0x419   : > { %3061 = vxpose.xlu0.b32.cont [5/16] (narrow) %v5972_v3, 32  ;;  %v5988_v3 = vld [vmem:[#allocation22_spill] sm:$0xff] }
 0x41a   : > { %2810 = vxpose.xlu1.b32.cont [2/4] (short) (narrow) %v5973_v54, 32  ;;  %v5496_v30 = vpop.permute.xlu1 %3281  ;;  %v5499_v32 = vpop.permute.xlu0 %3253 }
 0x41d   : > { %3062 = vxpose.xlu0.b32.cont [6/16] (narrow) %v5974_v6, 32  ;;  %v5989_v6 = vld [vmem:[#allocation29_spill] sm:$0xff] }
 0x41e   : > { %2811 = vxpose.xlu1.b32.cont [3/4] (short) (narrow) %v5975_v7, 32  ;;  %v5503_v37 = vpop.permute.xlu1 %3251  ;;  %v5507_v57 = vpop.permute.xlu0 %3293 }
 0x421   : > { %3063 = vxpose.xlu0.b32.cont [7/16] (narrow) %v5976_v25, 32  ;;  %v5990_v25 = vld [vmem:[#allocation23_spill] sm:$0xff] }
 0x422   : > { %2812 = vxpose.xlu1.b32.end [4/4] (short) (narrow) %v5977_v47, 32  ;;  %v5510_v54 = vpop.permute.xlu1 %3291  ;;  %v5513_v7 = vpop.permute.xlu0 %3287 }
 0x425   : > { %3064 = vxpose.xlu0.b32.cont [8/16] (narrow) %v5978_v39, 32  ;;  %v5991_v39 = vld [vmem:[#allocation20_spill] sm:$0xff] }
 0x426   : > { %3089 = vxpose.xlu1.b32.start [1/16] (narrow) %v5979_v40, 32  ;;  %v5517_v47 = vpop.permute.xlu1 %3285  ;;  %v2544_v40 = vpop.trf.xlu0 }
 0x429   : > { %3065 = vxpose.xlu0.b32.cont [9/16] (narrow) %v5980_v53, 32  ;;  %v5992_v53 = vld [vmem:[#allocation21_spill] sm:$0xff] }
 0x42a   : > { %3090 = vxpose.xlu1.b32.cont [2/16] (narrow) %v5981_v61, 32  ;;  %v5522_v61 = vpop.permute.xlu1 %3255 }
 0x42d   : > { %3066 = vxpose.xlu0.b32.cont [10/16] (narrow) %v5982_v19, 32  ;;  %v2545_v19 = vpop.trf.xlu0 }
 0x42e   : > { %3091 = vxpose.xlu1.b32.cont [3/16] (narrow) %v5983_v62, 32  ;;  %v5527_v62 = vpop.permute.xlu1 %3295 }
 0x431   : > { %3067 = vxpose.xlu0.b32.cont [11/16] (narrow) %v5984_v8, 32  ;;  %v2844_v8 = vld [vmem:[%s5932_s2 + $0x18] sm:$0xff] }
 0x432   : > { %3092 = vxpose.xlu1.b32.cont [4/16] (narrow) %v5985_v18, 32 }
 0x435   : > { %3068 = vxpose.xlu0.b32.cont [12/16] (narrow) %v5986_v45, 32 }
 0x436   : > { %3093 = vxpose.xlu1.b32.cont [5/16] (narrow) %v5987_v49, 32  ;;  %v5594_v49 = vld [vmem:[%s5560_s30 + $0x30] sm:$0xff] }
 0x439   : > { %3069 = vxpose.xlu0.b32.cont [13/16] (narrow) %v5988_v3, 32  ;;  %v3725_v3 = vld [vmem:[%s5932_s2 + $0x90] sm:$0xff] }
 0x43a   : > { %3094 = vxpose.xlu1.b32.cont [6/16] (narrow) %v5989_v6, 32  ;;  %v5600_v6 = vld [vmem:[%s5560_s30 + $0x48] sm:$0xff] }
 0x43d   : > { %3070 = vxpose.xlu0.b32.cont [14/16] (narrow) %v5990_v25, 32 }
 0x43e   : > { %3095 = vxpose.xlu1.b32.cont [7/16] (narrow) %v5344_v11, 32  ;;  %v2546_v11 = vpop.trf.xlu0 }
 0x441   : > { %3071 = vxpose.xlu0.b32.cont [15/16] (narrow) %v5991_v39, 32 }
 0x442   : > { %3096 = vxpose.xlu1.b32.cont [8/16] (narrow) %v5347_v51, 32  ;;  %v5531_v51 = vpop.trf.xlu1 }
 0x445   : > { %3072 = vxpose.xlu0.b32.end [16/16] (narrow) %v5992_v53, 32  ;;  %v2643_v53 = vmul.f32 %v3725_v3, %v5594_v49 }
 0x446   : > { %3097 = vxpose.xlu1.b32.cont [9/16] (narrow) %v5365_v41, 32  ;;  %v2547_v41 = vpop.trf.xlu0 }
 0x449   : > { %3121 = vxpose.xlu0.b32.start [1/4] (short) (narrow) %v5378_v58, 32 }
 0x44a   : > { %3098 = vxpose.xlu1.b32.cont [10/16] (narrow) %v5368_v33, 32  ;;  %v5537_v33 = vpop.trf.xlu1  ;;  %v5540_v58 = vpop.trf.xlu0 }
 0x44d   : > { %3122 = vxpose.xlu0.b32.cont [2/4] (short) (narrow) %v5380_v46, 32 }
 0x44e   : > { %3099 = vxpose.xlu1.b32.cont [11/16] (narrow) %v5389_v15, 32  ;;  %v5543_v46 = vpop.trf.xlu1 }
 0x451   : > { %3123 = vxpose.xlu0.b32.cont [3/4] (short) (narrow) %v5371_v63, 32  ;;  %v5547_v63 = vpop.trf.xlu0 }
 0x452   : > { %3100 = vxpose.xlu1.b32.cont [12/16] (narrow) %v5383_v14, 32  ;;  %v3719_v14 = vld [vmem:[%s5932_s2 + $0x60] sm:$0xff] }
 0x455   : > { %3124 = vxpose.xlu0.b32.end [4/4] (short) (narrow) %v5374_v35, 32  ;;  %v5554_v35 = vpop.trf.xlu1 }
 0x456   : > { %3101 = vxpose.xlu1.b32.cont [13/16] (narrow) %v5357_v22, 32  ;;  %v5993_v22 = vld [vmem:[#allocation30_spill] sm:$0xff] }
 0x459   : > { %3333 = vxpose.xlu0.b32.start [1/16] (narrow) %v5405_v12, 32  ;;  %v2761_v15 = vpop.trf.xlu1 }
 0x45a   : > { %3102 = vxpose.xlu1.b32.cont [14/16] (narrow) %v5360_v4, 32  ;;  %v5567_v4 = vld [vmem:[%s5560_s30] sm:$0xff] }
 0x45b   : > { %v2637_v12 = vmul.f32 %v3719_v14, %v5567_v4 }
 0x45d   : > { %3334 = vxpose.xlu0.b32.cont [2/16] (narrow) %v5401_v20, 32  ;;  %v2841_v20 = vld [vmem:[%s5932_s2] sm:$0xff]  ;;  %v2762_v18 = vpop.trf.xlu1  ;;  %v2649_v45 = vadd.f32 %v2637_v12, %v2544_v40 }
 0x45e   : > { %3103 = vxpose.xlu1.b32.cont [15/16] (narrow) %v5350_v55, 32  ;;  %v5563_v55 = vpop.trf.xlu0 }
 0x45f   : > { %v3731_v14 = vmul.f32 -1.442695, %v2649_v45 }
 0x461   : > { %3335 = vxpose.xlu0.b32.cont [3/16] (narrow) %v5409_v24, 32  ;;  %v5579_v24 = vld [vmem:[%s5560_s30 + $0x18] sm:$0xff]  ;;  %v2763_v12 = vpop.trf.xlu1  ;;  %4038 = vpow2.f32 %v3731_v14  ;;  %v3720_v14 = vld [vmem:[%s5932_s2 + $0x68] sm:$0xff] }
 0x462   : > { %3104 = vxpose.xlu1.b32.end [16/16] (narrow) %v5993_v22, 32  ;;  %v2856_v39 = vmul.f32 %v2844_v8, %v5579_v24  ;;  %v2847_v22 = vld [vmem:[%s5932_s2 + $0x30] sm:$0xff] }
 0x465   : > { %3336 = vxpose.xlu0.b32.cont [4/16] (narrow) %v5415_v29, 32  ;;  %v5584_v29 = vpop.trf.xlu0 }
 0x466   : > { %3365 = vxpose.xlu1.b32.start [1/16] (narrow) %v5412_v17, 32  ;;  %v3722_v17 = vld [vmem:[%s5932_s2 + $0x78] sm:$0xff] }
 0x469   : > { %3337 = vxpose.xlu0.b32.cont [5/16] (narrow) %v5423_v26, 32  ;;  %v2853_v26 = vmul.f32 %v2841_v20, %v5567_v4 }
 0x46a   : > { %3366 = vxpose.xlu1.b32.cont [2/16] (narrow) %v5419_v21, 32  ;;  %v2640_v21 = vmul.f32 %v3722_v17, %v5579_v24  ;;  %v2868_v17 = vadd.f32 %v2856_v39, %v2762_v18 }
 0x46b   : > { %v2865_v25 = vadd.f32 %v2853_v26, %v2761_v15  ;;  %v2859_v15 = vmul.f32 %v2847_v22, %v5594_v49  ;;  %v5635_v22 = vld [vmem:[%s5560_s30 + $0x8] sm:$0xff] }
 0x46c   : > { %v2652_v40 = vadd.f32 %v2640_v21, %v2545_v19  ;;  %v2655_v19 = vadd.f32 %v2643_v53, %v2546_v11 }
 0x46d   : > { %3338 = vxpose.xlu0.b32.cont [6/16] (narrow) %v5429_v28, 32  ;;  %v3728_v28 = vld [vmem:[%s5932_s2 + $0xa8] sm:$0xff]  ;;  %v2871_v45 = vadd.f32 %v2859_v15, %v2763_v12 }
 0x46e   : > { %3367 = vxpose.xlu1.b32.cont [3/16] (narrow) %v5426_v31, 32  ;;  %v5606_v31 = vpop.trf.xlu0  ;;  %v2646_v20 = vmul.f32 %v3728_v28, %v5600_v6  ;;  %v3734_v26 = vmul.f32 -1.442695, %v2652_v40  ;;  %v3737_v3 = vmul.f32 -1.442695, %v2655_v19 }
 0x470   : > { %v2658_v8 = vadd.f32 %v2646_v20, %v2547_v41  ;;  %v3749_v41 = vmul.f32 -1.442695, %v2871_v45 }
 0x471   : > { %3339 = vxpose.xlu0.b32.cont [7/16] (narrow) %v5437_v13, 32  ;;  %v3743_v13 = vmul.f32 -1.442695, %v2865_v25 }
 0x472   : > { %3368 = vxpose.xlu1.b32.cont [4/16] (narrow) %v5433_v38, 32  ;;  %v2850_v38 = vld [vmem:[%s5932_s2 + $0x48] sm:$0xff]  ;;  %v5621_v21 = vpop.trf.xlu0  ;;  %v3740_v11 = vmul.f32 -1.442695, %v2658_v8 }
 0x473   : > { %4040 = vpow2.f32 %v3743_v13  ;;  %v2862_v18 = vmul.f32 %v2850_v38, %v5600_v6  ;;  %v2638_v13 = vmul.f32 %v3720_v14, %v5635_v22  ;;  %v5678_v14 = vld [vmem:[%s5560_s30 + $0x50] sm:$0xff] }
 0x474   : > { %4042 = vpow2.f32 %v3734_v26 }
 0x475   : > { %3340 = vxpose.xlu0.b32.cont [8/16] (narrow) %v5443_v36, 32  ;;  %v3746_v36 = vmul.f32 -1.442695, %v2868_v17  ;;  %v2650_v45 = vadd.f32 %v2638_v13, %v5531_v51 }
 0x476   : > { %3369 = vxpose.xlu1.b32.cont [5/16] (narrow) %v5440_v34, 32  ;;  %v2764_v34 = vpop.trf.xlu1  ;;  %v5627_v28 = vpop.trf.xlu0 }
 0x477   : > { %4044 = vpow2.f32 %v3746_v36  ;;  %v2874_v25 = vadd.f32 %v2862_v18, %v2764_v34 }
 0x478   : > { %4046 = vpow2.f32 %v3737_v3  ;;  %v2845_v3 = vld [vmem:[%s5932_s2 + $0x20] sm:$0xff] }
 0x479   : > { %3341 = vxpose.xlu0.b32.cont [9/16] (narrow) %v5451_v50, 32  ;;  %4048 = vpow2.f32 %v3740_v11  ;;  %v4039_v50 = vpop.eup %4038  ;;  %v5663_v11 = vld [vmem:[%s5560_s30 + $0x38] sm:$0xff] }
 0x47a   : > { %3370 = vxpose.xlu1.b32.cont [6/16] (narrow) %v5447_v44, 32  ;;  %4050 = vpow2.f32 %v3749_v41  ;;  %v3752_v44 = vmul.f32 -1.442695, %v2874_v25  ;;  %v2697_v53 = vadd.f32 1.0, %v4039_v50 }
 0x47c   : > { %4052 = vpow2.f32 %v3752_v44  ;;  %v3732_v44 = vmul.f32 -1.442695, %v2650_v45 }
 0x47d   : > { %3342 = vxpose.xlu0.b32.cont [10/16] (narrow) %v5457_v43, 32  ;;  %v4041_v39 = vpop.eup %4040  ;;  %v5632_v43 = vpop.trf.xlu0  ;;  %4054 = vrcp.f32 %v2697_v53  ;;  %v2848_v53 = vld [vmem:[%s5932_s2 + $0x38] sm:$0xff] }
 0x47e   : > { %3371 = vxpose.xlu1.b32.cont [7/16] (narrow) %v5454_v23, 32  ;;  %v4043_v40 = vpop.eup %4042  ;;  %v5642_v23 = vld [vmem:[%s5560_s30 + $0x20] sm:$0xff] }
 0x47f   : > { %v2700_v12 = vadd.f32 1.0, %v4043_v40 }
 0x481   : > { %3343 = vxpose.xlu0.b32.cont [11/16] (narrow) %v5465_v59, 32  ;;  %v2913_v59 = vadd.f32 1.0, %v4041_v39  ;;  %v4045_v20 = vpop.eup %4044  ;;  %v2857_v39 = vmul.f32 %v2845_v3, %v5642_v23 }
 0x482   : > { %3372 = vxpose.xlu1.b32.cont [8/16] (narrow) %v5461_v48, 32  ;;  %v3723_v48 = vld [vmem:[%s5932_s2 + $0x80] sm:$0xff]  ;;  %v4047_v17 = vpop.eup %4046  ;;  %v2916_v38 = vadd.f32 1.0, %v4045_v20 }
 0x483   : > { %v2641_v15 = vmul.f32 %v3723_v48, %v5642_v23  ;;  %v4049_v19 = vpop.eup %4048  ;;  %4056 = vrcp.f32 %v2913_v59  ;;  %v2703_v36 = vadd.f32 1.0, %v4047_v17  ;;  %v2869_v13 = vadd.f32 %v2857_v39, %v5621_v21 }
 0x484   : > { %v4051_v8 = vpop.eup %4050  ;;  %4058 = vrcp.f32 %v2700_v12  ;;  %v2860_v17 = vmul.f32 %v2848_v53, %v5663_v11 }
 0x485   : > { %3344 = vxpose.xlu0.b32.cont [12/16] (narrow) %v5471_v60, 32  ;;  %v2842_v60 = vld [vmem:[%s5932_s2 + $0x8] sm:$0xff]  ;;  %v2653_v34 = vadd.f32 %v2641_v15, %v5537_v33  ;;  %v2919_v51 = vadd.f32 1.0, %v4051_v8 }
 0x486   : > { %3373 = vxpose.xlu1.b32.cont [9/16] (narrow) %v5468_v56, 32  ;;  %v2854_v18 = vmul.f32 %v2842_v60, %v5635_v22  ;;  %v4053_v50 = vpop.eup %4052  ;;  %v2851_v60 = vld [vmem:[%s5932_s2 + $0x50] sm:$0xff]  ;;  %v2872_v45 = vadd.f32 %v2860_v17, %v5627_v28 }
 0x487   : > { %v2922_v59 = vadd.f32 1.0, %v4053_v50 }
 0x488   : > { %v2866_v33 = vadd.f32 %v2854_v18, %v5606_v31  ;;  %v4055_v31 = vpop.eup %4054 }
 0x489   : > { %v3073_v26 = vpop.trf.xlu0  ;;  %3345 = vxpose.xlu0.b32.cont [13/16] (narrow) %v5479_v52, 32  ;;  %v2706_v52 = vadd.f32 1.0, %v4049_v19 }
 0x48a   : > { %v3177_v56 = vadd.f32 %v5386_v10, %v3073_v26  ;;  %3374 = vxpose.xlu1.b32.cont [10/16] (narrow) %v5475_v1, 32  ;;  %v3726_v1 = vld [vmem:[%s5932_s2 + $0x98] sm:$0xff]  ;;  %v3744_v12 = vmul.f32 -1.442695, %v2866_v33 }
 0x48b   : > { %v2644_v40 = vmul.f32 %v3726_v1, %v5663_v11 }
 0x48c   : > { %4060 = vtanh.f32 %v3177_v56  ;;  %v2863_v56 = vmul.f32 %v2851_v60, %v5678_v14 }
 0x48d   : > { %v3074_v41 = vpop.trf.xlu0  ;;  %3346 = vxpose.xlu0.b32.cont [14/16] (narrow) %v5503_v37, 32  ;;  %4062 = vrcp.f32 %v2916_v38  ;;  %v3735_v37 = vmul.f32 -1.442695, %v2653_v34  ;;  %v4057_v15 = vpop.eup %4056 }
 0x48e   : > { %v3180_v25 = vadd.f32 %v5395_v16, %v3074_v41  ;;  %3375 = vxpose.xlu1.b32.cont [11/16] (narrow) %v5482_v27, 32  ;;  %4064 = vrcp.f32 %v2703_v36  ;;  %v3729_v27 = vld [vmem:[%s5932_s2 + $0xb0] sm:$0xff]  ;;  %v4059_v19 = vpop.eup %4058  ;;  %v3747_v36 = vmul.f32 -1.442695, %v2869_v13  ;;  %v2875_v50 = vadd.f32 %v2863_v56, %v5632_v43 }
 0x48f   : > { %v2647_v26 = vmul.f32 %v3729_v27, %v5678_v14 }
 0x490   : > { %4066 = vtanh.f32 %v3180_v25  ;;  %v3750_v25 = vmul.f32 -1.442695, %v2872_v45 }
 0x491   : > { %4068 = vrcp.f32 %v2706_v52  ;;  %v3075_v48 = vpop.trf.xlu0  ;;  %3347 = vxpose.xlu0.b32.cont [15/16] (narrow) %v5499_v32, 32  ;;  %v2656_v32 = vadd.f32 %v2644_v40, %v5543_v46  ;;  %v2659_v52 = vadd.f32 %v2647_v26, %v5554_v35 }
 0x492   : > { %4070 = vrcp.f32 %v2919_v51  ;;  %v3183_v20 = vadd.f32 %v5391_v9, %v3075_v48  ;;  %3376 = vxpose.xlu1.b32.cont [12/16] (narrow) %v5489_v42, 32  ;;  %v2733_v42 = vmul.f32 %v4055_v31, %v5567_v4 }
 0x493   : > { %4072 = vpow2.f32 %v3732_v44  ;;  %v3741_v33 = vmul.f32 -1.442695, %v2659_v52 }
 0x494   : > { %4074 = vtanh.f32 %v3183_v20 }
 0x495   : > { %4076 = vpow2.f32 %v3735_v37  ;;  %v3076_v38 = vpop.trf.xlu0  ;;  %3348 = vxpose.xlu0.b32.end [16/16] (narrow) %v5522_v61, 32  ;;  %v3738_v61 = vmul.f32 -1.442695, %v2656_v32  ;;  %v3753_v37 = vmul.f32 -1.442695, %v2875_v50 }
 0x496   : > { %v4061_v21 = vpop.eup %4060  ;;  %4078 = vrcp.f32 %v2922_v59  ;;  %v3186_v8 = vadd.f32 %v5398_v2, %v3076_v38  ;;  %3377 = vxpose.xlu1.b32.cont [13/16] (narrow) %v5496_v30, 32  ;;  %v5698_v46 = vpop.trf.xlu1  ;;  %v2736_v30 = vmul.f32 %v4059_v19, %v5579_v24  ;;  %v5743_v19 = vld [vmem:[%s5560_s30 + $0x10] sm:$0xff] }
 0x497   : > { %4080 = vpow2.f32 %v3744_v12  ;;  %v3201_v18 = vmul.f32 %v4061_v21, %v4057_v15  ;;  %v4063_v3 = vpop.eup %4062 }
 0x498   : > { %4082 = vtanh.f32 %v3186_v8  ;;  %v4065_v34 = vpop.eup %4064  ;;  %v2843_v8 = vld [vmem:[%s5932_s2 + $0x10] sm:$0xff] }
 0x499   : > { %v5709_v1 = vadd.f32 %v3201_v18, %v2733_v42  ;;  %3397 = vxpose.xlu0.b32.start [1/4] (short) (narrow) %v5485_v0, 32  ;;  %4084 = vpow2.f32 %v3747_v36  ;;  %v2739_v0 = vmul.f32 %v4065_v34, %v5594_v49  ;;  %v3721_v42 = vld [vmem:[%s5932_s2 + $0x70] sm:$0xff]  ;;  %v5753_v18 = vld [vmem:[%s5560_s30 + $0x28] sm:$0xff] }
 0x49a   : > { %v4067_v28 = vpop.eup %4066  ;;  %3378 = vxpose.xlu1.b32.cont [14/16] (narrow) %v5493_v5, 32  ;;  %v5713_v41 = vpop.trf.xlu1  ;;  %4086 = vpow2.f32 %v3738_v61  ;;  %v2639_v45 = vmul.f32 %v3721_v42, %v5743_v19 }
 0x49b   : > { %v4069_v51 = vpop.eup %4068  ;;  %3562 = vst [vmem:[%s5705_s19] sm:$0xff] %v5709_v1  ;;  %v3204_v35 = vmul.f32 %v4067_v28, %v4063_v3  ;;  %4088 = vpow2.f32 %v3750_v25  ;;  %v3724_v3 = vld [vmem:[%s5932_s2 + $0x88] sm:$0xff]  ;;  %v2855_v28 = vmul.f32 %v2843_v8, %v5743_v19 }
 0x49c   : > { %v4071_v44 = vpop.eup %4070  ;;  %4090 = vpow2.f32 %v3741_v33  ;;  %v2742_v59 = vmul.f32 %v4069_v51, %v5600_v6  ;;  %v2642_v51 = vmul.f32 %v3724_v3, %v5753_v18  ;;  %v2846_v25 = vld [vmem:[%s5932_s2 + $0x28] sm:$0xff]  ;;  %v3727_v33 = vld [vmem:[%s5932_s2 + $0xa0] sm:$0xff] }
 0x49d   : > { %v4073_v39 = vpop.eup %4072  ;;  %v5719_v40 = vadd.f32 %v3204_v35, %v2736_v30  ;;  %3398 = vxpose.xlu0.b32.cont [2/4] (short) (narrow) %v5510_v54, 32  ;;  %4092 = vpow2.f32 %v3753_v37  ;;  %v2651_v35 = vadd.f32 %v2639_v45, %v5540_v58  ;;  %v2858_v37 = vmul.f32 %v2846_v25, %v5753_v18 }
 0x49e   : > { %v4075_v5 = vpop.eup %4074  ;;  %3379 = vxpose.xlu1.b32.cont [15/16] (narrow) %v5517_v47, 32  ;;  %v5723_v53 = vpop.trf.xlu1  ;;  %v2698_v47 = vadd.f32 1.0, %v4073_v39  ;;  %v2654_v58 = vadd.f32 %v2642_v51, %v5547_v63 }
 0x49f   : > { %v4077_v43 = vpop.eup %4076  ;;  %3565 = vst [vmem:[%s5705_s19 + $0x18] sm:$0xff] %v5719_v40  ;;  %v3207_v27 = vmul.f32 %v4075_v5, %v4071_v44  ;;  %v5766_v44 = vld [vmem:[%s5560_s30 + $0x40] sm:$0xff] }
 0x4a0   : > { %v4079_v48 = vpop.eup %4078  ;;  %v2701_v15 = vadd.f32 1.0, %v4077_v43  ;;  %4094 = vrcp.f32 %v2698_v47  ;;  %v2867_v43 = vadd.f32 %v2855_v28, %v5698_v46  ;;  %v3733_v47 = vmul.f32 -1.442695, %v2651_v35  ;;  %v3730_v46 = vld [vmem:[%s5932_s2 + $0xb8] sm:$0xff] }
 0x4a1   : > { %v4081_v31 = vpop.eup %4080  ;;  %v5728_v20 = vadd.f32 %v3207_v27, %v2739_v0  ;;  %3399 = vxpose.xlu0.b32.cont [3/4] (short) (narrow) %v5507_v57, 32 }
 0x4a2   : > { %v4083_v54 = vpop.eup %4082  ;;  %3380 = vxpose.xlu1.b32.end [16/16] (narrow) %v5513_v7, 32  ;;  %v5732_v12 = vpop.trf.xlu1  ;;  %v2914_v17 = vadd.f32 1.0, %v4081_v31  ;;  %v2849_v31 = vld [vmem:[%s5932_s2 + $0x40] sm:$0xff] }
 0x4a3   : > { %3568 = vst [vmem:[%s5705_s19 + $0x30] sm:$0xff] %v5728_v20  ;;  %v3210_v13 = vmul.f32 %v4083_v54, %v4079_v48  ;;  %v4085_v60 = vpop.eup %4084  ;;  %v2645_v48 = vmul.f32 %v3727_v33, %v5766_v44 }
 0x4a4   : > { %v4087_v57 = vpop.eup %4086  ;;  %4096 = vrcp.f32 %v2914_v17  ;;  %v2917_v38 = vadd.f32 1.0, %v4085_v60  ;;  %v5781_v17 = vld [vmem:[%s5560_s30 + $0x58] sm:$0xff] }
 0x4a5   : > { %v5736_v32 = vadd.f32 %v3210_v13, %v2742_v59  ;;  %3400 = vxpose.xlu0.b32.end [4/4] (short) (narrow) %v5527_v62, 32  ;;  %v4089_v21 = vpop.eup %4088  ;;  %4098 = vrcp.f32 %v2701_v15  ;;  %v2704_v56 = vadd.f32 1.0, %v4087_v57  ;;  %v3745_v15 = vmul.f32 -1.442695, %v2867_v43 }
 0x4a6   : > { %v3105_v26 = vpop.trf.xlu1  ;;  %v4091_v62 = vpop.eup %4090  ;;  %v2920_v52 = vadd.f32 1.0, %v4089_v21  ;;  %v2870_v57 = vadd.f32 %v2858_v37, %v5713_v41  ;;  %v3736_v21 = vmul.f32 -1.442695, %v2654_v58 }
 0x4a7   : > { %3571 = vst [vmem:[%s5705_s19 + $0x48] sm:$0xff] %v5736_v32  ;;  %v3178_v7 = vadd.f32 %v5386_v10, %v3105_v26  ;;  %v4093_v34 = vpop.eup %4092  ;;  %v2707_v30 = vadd.f32 1.0, %v4091_v62  ;;  %v2861_v26 = vmul.f32 %v2849_v31, %v5766_v44  ;;  %v2648_v62 = vmul.f32 %v3730_v46, %v5781_v17 }
 0x4a8   : > { %v2923_v5 = vadd.f32 1.0, %v4093_v34 }
 0x4a9   : > { %4100 = vtanh.f32 %v3178_v7  ;;  %v2852_v7 = vld [vmem:[%s5932_s2 + $0x58] sm:$0xff]  ;;  %v2660_v28 = vadd.f32 %v2648_v62, %v5584_v29 }
 0x4aa   : > { %v3106_v36 = vpop.trf.xlu1  ;;  %4102 = vrcp.f32 %v2917_v38  ;;  %v4095_v0 = vpop.eup %4094  ;;  %v2864_v3 = vmul.f32 %v2852_v7, %v5781_v17 }
 0x4ab   : > { %v3181_v61 = vadd.f32 %v5395_v16, %v3106_v36  ;;  %4104 = vrcp.f32 %v2704_v56  ;;  %v2734_v13 = vmul.f32 %v4095_v0, %v5635_v22  ;;  %v2657_v56 = vadd.f32 %v2645_v48, %v5563_v55 }
 0x4ad   : > { %4106 = vtanh.f32 %v3181_v61  ;;  %v3748_v61 = vmul.f32 -1.442695, %v2870_v57 }
 0x4ae   : > { %v3107_v50 = vpop.trf.xlu1  ;;  %4108 = vrcp.f32 %v2920_v52  ;;  %v4097_v27 = vpop.eup %4096  ;;  %v2873_v52 = vadd.f32 %v2861_v26, %v5723_v53 }
 0x4af   : > { %v3184_v39 = vadd.f32 %v5391_v9, %v3107_v50  ;;  %4110 = vrcp.f32 %v2707_v30  ;;  %v4099_v54 = vpop.eup %4098  ;;  %v3739_v30 = vmul.f32 -1.442695, %v2657_v56 }
 0x4b0   : > { %v2737_v36 = vmul.f32 %v4099_v54, %v5642_v23  ;;  %v3751_v33 = vmul.f32 -1.442695, %v2873_v52 }
 0x4b1   : > { %4112 = vtanh.f32 %v3184_v39  ;;  %v2876_v39 = vadd.f32 %v2864_v3, %v5732_v12 }
 0x4b2   : > { %v3108_v59 = vpop.trf.xlu1  ;;  %4114 = vrcp.f32 %v2923_v5  ;;  %v3742_v5 = vmul.f32 -1.442695, %v2660_v28 }
 0x4b3   : > { %v3187_v63 = vadd.f32 %v5398_v2, %v3108_v59  ;;  %v4101_v60 = vpop.eup %4100  ;;  %v3754_v58 = vmul.f32 -1.442695, %v2876_v39 }
 0x4b4   : > { %v3202_v42 = vmul.f32 %v4101_v60, %v4097_v27  ;;  %v4103_v38 = vpop.eup %4102 }
 0x4b5   : > { %4116 = vtanh.f32 %v3187_v63  ;;  %v4105_v8 = vpop.eup %4104 }
 0x4b6   : > { %4118 = vpow2.f32 %v3733_v47  ;;  %v5795_v41 = vadd.f32 %v3202_v42, %v2734_v13  ;;  %v2740_v25 = vmul.f32 %v4105_v8, %v5663_v11 }
 0x4b7   : > { %v4107_v45 = vpop.eup %4106  ;;  %4120 = vpow2.f32 %v3745_v15 }
 0x4b8   : > { %3563 = vst [vmem:[%s5705_s19 + $0x8] sm:$0xff] %v5795_v41  ;;  %v3205_v55 = vmul.f32 %v4107_v45, %v4103_v38  ;;  %v4109_v34 = vpop.eup %4108  ;;  %4122 = vpow2.f32 %v3736_v21 }
 0x4b9   : > { %v4111_v51 = vpop.eup %4110  ;;  %4124 = vpow2.f32 %v3748_v61  ;;  %v3755_v61 = vld [vmem:[%s5932_s2 + $0xc0] sm:$0xff] }
 0x4ba   : > { %v5803_v50 = vadd.f32 %v3205_v55, %v2737_v36  ;;  %4126 = vpow2.f32 %v3739_v30  ;;  %v2743_v29 = vmul.f32 %v4111_v51, %v5678_v14  ;;  %v3442_v51 = vmul.f32 %v3755_v61, %v5567_v4 }
 0x4bb   : > { %v4113_v35 = vpop.eup %4112  ;;  %4128 = vpow2.f32 %v3751_v33 }
 0x4bc   : > { %3566 = vst [vmem:[%s5705_s19 + $0x20] sm:$0xff] %v5803_v50  ;;  %v3208_v53 = vmul.f32 %v4113_v35, %v4109_v34  ;;  %v4115_v0 = vpop.eup %4114  ;;  %4130 = vpow2.f32 %v3742_v5 }
 0x4bd   : > { %4132 = vpow2.f32 %v3754_v58 }
 0x4be   : > { %v5809_v43 = vadd.f32 %v3208_v53, %v2740_v25 }
 0x4bf   : > { %v4117_v37 = vpop.eup %4116 }
 0x4c0   : > { %v4119_v27 = vpop.eup %4118  ;;  %3569 = vst [vmem:[%s5705_s19 + $0x38] sm:$0xff] %v5809_v43  ;;  %v3211_v48 = vmul.f32 %v4117_v37, %v4115_v0  ;;  %v3761_v37 = vld [vmem:[%s5932_s2 + $0xf0] sm:$0xff] }
 0x4c1   : > { %v4121_v12 = vpop.eup %4120  ;;  %v2699_v54 = vadd.f32 1.0, %v4119_v27 }
 0x4c2   : > { %v5813_v31 = vadd.f32 %v3211_v48, %v2743_v29  ;;  %v4123_v59 = vpop.eup %4122  ;;  %v2915_v47 = vadd.f32 1.0, %v4121_v12 }
 0x4c3   : > { %v4125_v13 = vpop.eup %4124  ;;  %v2702_v46 = vadd.f32 1.0, %v4123_v59  ;;  %4134 = vrcp.f32 %v2699_v54 }
 0x4c4   : > { %3572 = vst [vmem:[%s5705_s19 + $0x50] sm:$0xff] %v5813_v31  ;;  %v4127_v63 = vpop.eup %4126  ;;  %4136 = vrcp.f32 %v2915_v47  ;;  %v2918_v15 = vadd.f32 1.0, %v4125_v13  ;;  %v3448_v13 = vmul.f32 %v3761_v37, %v5594_v49 }
 0x4c5   : > { %v4129_v26 = vpop.eup %4128  ;;  %4138 = vrcp.f32 %v2702_v46  ;;  %v2705_v7 = vadd.f32 1.0, %v4127_v63  ;;  %v3764_v63 = vld [vmem:[%s5932_s2 + $0x108] sm:$0xff] }
 0x4c6   : > { %v4131_v42 = vpop.eup %4130  ;;  %v2921_v21 = vadd.f32 1.0, %v4129_v26 }
 0x4c7   : > { %v4133_v62 = vpop.eup %4132  ;;  %v2708_v8 = vadd.f32 1.0, %v4131_v42 }
 0x4c8   : > { %v2924_v3 = vadd.f32 1.0, %v4133_v62 }
 0x4c9   : > { %v3137_v60 = vpop.trf.xlu0 }
 0x4ca   : > { %v3179_v57 = vadd.f32 %v5386_v10, %v3137_v60 }
 0x4cc   : > { %4140 = vtanh.f32 %v3179_v57  ;;  %v3756_v57 = vld [vmem:[%s5932_s2 + $0xc8] sm:$0xff] }
 0x4cd   : > { %v3138_v38 = vpop.trf.xlu0  ;;  %4142 = vrcp.f32 %v2918_v15  ;;  %v4135_v45 = vpop.eup %4134  ;;  %v3443_v62 = vmul.f32 %v3756_v57, %v5635_v22  ;;  %v3762_v22 = vld [vmem:[%s5932_s2 + $0xf8] sm:$0xff] }
 0x4ce   : > { %v3182_v56 = vadd.f32 %v5395_v16, %v3138_v38  ;;  %4144 = vrcp.f32 %v2705_v7  ;;  %v4137_v52 = vpop.eup %4136  ;;  %v2735_v16 = vmul.f32 %v4135_v45, %v5743_v19 }
 0x4cf   : > { %v4139_v55 = vpop.eup %4138 }
 0x4d0   : > { %4146 = vtanh.f32 %v3182_v56  ;;  %v2738_v39 = vmul.f32 %v4139_v55, %v5753_v18 }
 0x4d1   : > { %v3139_v36 = vpop.trf.xlu0  ;;  %4148 = vrcp.f32 %v2921_v21  ;;  %v3451_v21 = vmul.f32 %v3764_v63, %v5600_v6 }
 0x4d2   : > { %v3185_v10 = vadd.f32 %v5391_v9, %v3139_v36  ;;  %4150 = vrcp.f32 %v2708_v8  ;;  %v3758_v9 = vld [vmem:[%s5932_s2 + $0xd8] sm:$0xff]  ;;  %v3759_v36 = vld [vmem:[%s5932_s2 + $0xe0] sm:$0xff] }
 0x4d4   : > { %4152 = vtanh.f32 %v3185_v10 }
 0x4d5   : > { %v3140_v34 = vpop.trf.xlu0  ;;  %4154 = vrcp.f32 %v2924_v3 }
 0x4d6   : > { %v4141_v30 = vpop.eup %4140  ;;  %v3188_v28 = vadd.f32 %v5398_v2, %v3140_v34  ;;  %v3445_v2 = vmul.f32 %v3758_v9, %v5579_v24 }
 0x4d7   : > { %v3203_v25 = vmul.f32 %v4141_v30, %v4137_v52  ;;  %v4143_v35 = vpop.eup %4142  ;;  %v3446_v52 = vmul.f32 %v3759_v36, %v5642_v23  ;;  %v3765_v23 = vld [vmem:[%s5932_s2 + $0x110] sm:$0xff] }
 0x4d8   : > { %4156 = vtanh.f32 %v3188_v28  ;;  %v4145_v33 = vpop.eup %4144 }
 0x4d9   : > { %v5830_v53 = vadd.f32 %v3203_v25, %v2735_v16  ;;  %v3349_v0 = vpop.trf.xlu0  ;;  %v2741_v12 = vmul.f32 %v4145_v33, %v5766_v44  ;;  %v3449_v25 = vmul.f32 %v3762_v22, %v5663_v11 }
 0x4da   : > { %v4147_v5 = vpop.eup %4146  ;;  %v3454_v29 = vadd.f32 %v3442_v51, %v3349_v0  ;;  %v3452_v0 = vmul.f32 %v3765_v23, %v5678_v14 }
 0x4db   : > { %3564 = vst.msk [vmem:[%s5705_s19 + $0x10] sm:$0xff] %vm1500_vm10, %v5830_v53  ;;  %v3206_v4 = vmul.f32 %v4147_v5, %v4143_v35  ;;  %v4149_v27 = vpop.eup %4148 }
 0x4dc   : > { %v3767_v58 = vmul.f32 -1.442695, %v3454_v29  ;;  %v4151_v48 = vpop.eup %4150 }
 0x4dd   : > { %v5840_v59 = vadd.f32 %v3206_v4, %v2738_v39  ;;  %v3350_v54 = vpop.trf.xlu0  ;;  %v2744_v26 = vmul.f32 %v4151_v48, %v5781_v17 }
 0x4de   : > { %v4153_v47 = vpop.eup %4152  ;;  %4158 = vpow2.f32 %v3767_v58  ;;  %v3457_v24 = vadd.f32 %v3445_v2, %v3350_v54 }
 0x4df   : > { %3567 = vst.msk [vmem:[%s5705_s19 + $0x28] sm:$0xff] %vm1500_vm10, %v5840_v59  ;;  %v3209_v46 = vmul.f32 %v4153_v47, %v4149_v27  ;;  %v4155_v60 = vpop.eup %4154 }
 0x4e0   : > { %v3770_v15 = vmul.f32 -1.442695, %v3457_v24 }
 0x4e1   : > { %v5853_v7 = vadd.f32 %v3209_v46, %v2741_v12  ;;  %v3351_v49 = vpop.trf.xlu0 }
 0x4e2   : > { %v4157_v42 = vpop.eup %4156  ;;  %4160 = vpow2.f32 %v3770_v15  ;;  %v3460_v38 = vadd.f32 %v3448_v13, %v3351_v49 }
 0x4e3   : > { %3570 = vst.msk [vmem:[%s5705_s19 + $0x40] sm:$0xff] %vm1500_vm10, %v5853_v7  ;;  %v3212_v56 = vmul.f32 %v4157_v42, %v4155_v60 }
 0x4e4   : > { %v3773_v8 = vmul.f32 -1.442695, %v3460_v38 }
 0x4e5   : > { %v5863_v45 = vadd.f32 %v3212_v56, %v2744_v26  ;;  %v3352_v3 = vpop.trf.xlu0 }
 0x4e6   : > { %4162 = vpow2.f32 %v3773_v8  ;;  %v3463_v10 = vadd.f32 %v3451_v21, %v3352_v3  ;;  %v3381_v61 = vpop.trf.xlu1 }
 0x4e7   : > { %3573 = vst.msk [vmem:[%s5705_s19 + $0x58] sm:$0xff] %vm1500_vm10, %v5863_v45  ;;  %v3455_v6 = vadd.f32 %v3443_v62, %v3381_v61  ;;  %4164 = vtanh.f32 %v5709_v1 }
 0x4e8   : > { %v4159_v55 = vpop.eup %4158  ;;  %v3776_v16 = vmul.f32 -1.442695, %v3463_v10 }
 0x4e9   : > { %v3502_v34 = vadd.f32 1.0, %v4159_v55  ;;  %v3768_v30 = vmul.f32 -1.442695, %v3455_v6 }
 0x4ea   : > { %4166 = vpow2.f32 %v3776_v16  ;;  %v3382_v28 = vpop.trf.xlu1  ;;  %v3760_v16 = vld [vmem:[%s5932_s2 + $0xe8] sm:$0xff] }
 0x4eb   : > { %4168 = vrcp.f32 %v3502_v34  ;;  %v3458_v51 = vadd.f32 %v3446_v52, %v3382_v28  ;;  %v3763_v28 = vld [vmem:[%s5932_s2 + $0x100] sm:$0xff] }
 0x4ec   : > { %v4161_v9 = vpop.eup %4160  ;;  %4170 = vpow2.f32 %v3768_v30  ;;  %v3447_v30 = vmul.f32 %v3760_v16, %v5753_v18  ;;  %v3450_v23 = vmul.f32 %v3763_v28, %v5766_v44 }
 0x4ed   : > { %v3505_v35 = vadd.f32 1.0, %v4161_v9  ;;  %v3771_v33 = vmul.f32 -1.442695, %v3458_v51  ;;  %4172 = vtanh.f32 %v5719_v40 }
 0x4ee   : > { %v3383_v39 = vpop.trf.xlu1 }
 0x4ef   : > { %4174 = vrcp.f32 %v3505_v35  ;;  %v3461_v1 = vadd.f32 %v3449_v25, %v3383_v39 }
 0x4f0   : > { %v4163_v5 = vpop.eup %4162  ;;  %4176 = vpow2.f32 %v3771_v33 }
 0x4f1   : > { %v3508_v29 = vadd.f32 1.0, %v4163_v5  ;;  %v3774_v11 = vmul.f32 -1.442695, %v3461_v1  ;;  %4178 = vtanh.f32 %v5728_v20  ;;  %v4165_v4 = vpop.eup %4164 }
 0x4f2   : > { %v3384_v2 = vpop.trf.xlu1 }
 0x4f3   : > { %4180 = vrcp.f32 %v3508_v29  ;;  %v3464_v37 = vadd.f32 %v3452_v0, %v3384_v2 }
 0x4f4   : > { %v4167_v27 = vpop.eup %4166  ;;  %4182 = vpow2.f32 %v3774_v11 }
 0x4f5   : > { %v4169_v58 = vpop.eup %4168  ;;  %4184 = vtanh.f32 %v5736_v32  ;;  %v3511_v14 = vadd.f32 1.0, %v4167_v27  ;;  %v3777_v40 = vmul.f32 -1.442695, %v3464_v37 }
 0x4f6   : > { %v4171_v48 = vpop.eup %4170  ;;  %4186 = vtanh.f32 %v5795_v41  ;;  %v3550_v20 = vmul.f32 %v4169_v58, %v4165_v4 }
 0x4f7   : > { %4188 = vrcp.f32 %v3511_v14  ;;  %v3503_v12 = vadd.f32 1.0, %v4171_v48  ;;  %v4173_v54 = vpop.eup %4172 }
 0x4f8   : > { %3574 = vst [vmem:[%s5884_s11] sm:$0xff] %v3550_v20  ;;  %4190 = vpow2.f32 %v3777_v40 }
 0x4f9   : > { %v4175_v47 = vpop.eup %4174  ;;  %4192 = vrcp.f32 %v3503_v12 }
 0x4fa   : > { %v4177_v24 = vpop.eup %4176  ;;  %v3553_v13 = vmul.f32 %v4175_v47, %v4173_v54  ;;  %4194 = vtanh.f32 %v5803_v50 }
 0x4fb   : > { %v3506_v46 = vadd.f32 1.0, %v4177_v24  ;;  %v4179_v63 = vpop.eup %4178 }
 0x4fc   : > { %3577 = vst [vmem:[%s5884_s11 + $0x18] sm:$0xff] %v3553_v13 }
 0x4fd   : > { %v4181_v32 = vpop.eup %4180  ;;  %4196 = vrcp.f32 %v3506_v46 }
 0x4fe   : > { %v4183_v41 = vpop.eup %4182  ;;  %v3556_v60 = vmul.f32 %v4181_v32, %v4179_v63  ;;  %4198 = vtanh.f32 %v5809_v43 }
 0x4ff   : > { %v4185_v15 = vpop.eup %4184  ;;  %v3509_v57 = vadd.f32 1.0, %v4183_v41 }
 0x500   : > { %v4187_v26 = vpop.eup %4186  ;;  %3580 = vst [vmem:[%s5884_s11 + $0x30] sm:$0xff] %v3556_v60 }
 0x501   : > { %v4189_v49 = vpop.eup %4188  ;;  %4200 = vrcp.f32 %v3509_v57 }
 0x502   : > { %v4191_v42 = vpop.eup %4190  ;;  %v3559_v38 = vmul.f32 %v4189_v49, %v4185_v15  ;;  %4202 = vtanh.f32 %v5813_v31  ;;  %v3757_v31 = vld [vmem:[%s5932_s2 + $0xd0] sm:$0xff] }
 0x503   : > { %v4193_v50 = vpop.eup %4192  ;;  %v3512_v21 = vadd.f32 1.0, %v4191_v42  ;;  %v3444_v55 = vmul.f32 %v3757_v31, %v5743_v19  ;;  %v3766_v19 = vld [vmem:[%s5932_s2 + $0x118] sm:$0xff] }
 0x504   : > { %3583 = vst [vmem:[%s5884_s11 + $0x48] sm:$0xff] %v3559_v38  ;;  %v3551_v56 = vmul.f32 %v4193_v50, %v4187_v26  ;;  %v4195_v62 = vpop.eup %4194  ;;  %v3453_v18 = vmul.f32 %v3766_v19, %v5781_v17 }
 0x505   : > { %4204 = vrcp.f32 %v3512_v21 }
 0x506   : > { %3575 = vst [vmem:[%s5884_s11 + $0x8] sm:$0xff] %v3551_v56 }
 0x507   : > { %v4197_v8 = vpop.eup %4196 }
 0x508   : > { %v3554_v36 = vmul.f32 %v4197_v8, %v4195_v62  ;;  %v4199_v43 = vpop.eup %4198 }
 0x50a   : > { %3578 = vst [vmem:[%s5884_s11 + $0x20] sm:$0xff] %v3554_v36 }
 0x50b   : > { %v4201_v3 = vpop.eup %4200 }
 0x50c   : > { %v3557_v10 = vmul.f32 %v4201_v3, %v4199_v43  ;;  %v4203_v61 = vpop.eup %4202 }
 0x50e   : > { %3581 = vst [vmem:[%s5884_s11 + $0x38] sm:$0xff] %v3557_v10 }
 0x50f   : > { %v4205_v6 = vpop.eup %4204 }
 0x510   : > { %v3560_v52 = vmul.f32 %v4205_v6, %v4203_v61 }
 0x512   : > { %3584 = vst [vmem:[%s5884_s11 + $0x50] sm:$0xff] %v3560_v52 }
 0x519   : > { %v3413_v22 = vpop.trf.xlu0 }
 0x51a   : > { %v3456_v34 = vadd.f32 %v3444_v55, %v3413_v22 }
 0x51c   : > { %v3769_v51 = vmul.f32 -1.442695, %v3456_v34 }
 0x51d   : > { %v3414_v25 = vpop.trf.xlu0 }
 0x51e   : > { %4206 = vpow2.f32 %v3769_v51  ;;  %v3459_v9 = vadd.f32 %v3447_v30, %v3414_v25 }
 0x520   : > { %v3772_v35 = vmul.f32 -1.442695, %v3459_v9 }
 0x521   : > { %v3415_v33 = vpop.trf.xlu0 }
 0x522   : > { %4208 = vpow2.f32 %v3772_v35  ;;  %v3462_v39 = vadd.f32 %v3450_v23, %v3415_v33 }
 0x524   : > { %v3775_v1 = vmul.f32 -1.442695, %v3462_v39 }
 0x525   : > { %v3416_v0 = vpop.trf.xlu0 }
 0x526   : > { %4210 = vpow2.f32 %v3775_v1  ;;  %v3465_v5 = vadd.f32 %v3453_v18, %v3416_v0 }
 0x527   : > { %4212 = vtanh.f32 %v5830_v53 }
 0x528   : > { %v4207_v29 = vpop.eup %4206  ;;  %v3778_v11 = vmul.f32 -1.442695, %v3465_v5 }
 0x529   : > { %v3504_v2 = vadd.f32 1.0, %v4207_v29 }
 0x52a   : > { %4214 = vpow2.f32 %v3778_v11 }
 0x52b   : > { %4216 = vrcp.f32 %v3504_v2 }
 0x52c   : > { %v4209_v44 = vpop.eup %4208  ;;  %4218 = vtanh.f32 %v5840_v59 }
 0x52d   : > { %v3507_v4 = vadd.f32 1.0, %v4209_v44 }
 0x52f   : > { %4220 = vrcp.f32 %v3507_v4 }
 0x530   : > { %v4211_v37 = vpop.eup %4210  ;;  %4222 = vtanh.f32 %v5853_v7 }
 0x531   : > { %v3510_v17 = vadd.f32 1.0, %v4211_v37  ;;  %v4213_v27 = vpop.eup %4212 }
 0x533   : > { %4224 = vrcp.f32 %v3510_v17 }
 0x534   : > { %v4215_v58 = vpop.eup %4214  ;;  %4226 = vtanh.f32 %v5863_v45 }
 0x535   : > { %v4217_v14 = vpop.eup %4216  ;;  %v3513_v53 = vadd.f32 1.0, %v4215_v58 }
 0x536   : > { %v3552_v40 = vmul.f32 %v4217_v14, %v4213_v27  ;;  %v4219_v48 = vpop.eup %4218 }
 0x537   : > { %4228 = vrcp.f32 %v3513_v53 }
 0x538   : > { %3576 = vst.msk [vmem:[%s5884_s11 + $0x10] sm:$0xff] %vm1500_vm10, %v3552_v40 }
 0x539   : > { %v4221_v59 = vpop.eup %4220 }
 0x53a   : > { %v3555_v20 = vmul.f32 %v4221_v59, %v4219_v48  ;;  %v4223_v12 = vpop.eup %4222 }
 0x53c   : > { %3579 = vst.msk [vmem:[%s5884_s11 + $0x28] sm:$0xff] %vm1500_vm10, %v3555_v20 }
 0x53d   : > { %v4225_v7 = vpop.eup %4224 }
 0x53e   : > { %v3558_v54 = vmul.f32 %v4225_v7, %v4223_v12  ;;  %v4227_v47 = vpop.eup %4226 }
 0x540   : > { %3582 = vst.msk [vmem:[%s5884_s11 + $0x40] sm:$0xff] %vm1500_vm10, %v3558_v54 }
 0x541   : > { %v4229_v24 = vpop.eup %4228 }
 0x542   : > { %v3561_v13 = vmul.f32 %v4229_v24, %v4227_v47 }
 0x544   : > { %3585 = vst.msk [vmem:[%s5884_s11 + $0x58] sm:$0xff] %vm1500_vm10, %v3561_v13 }
 0x545 PF: > { %s17_s21 = sadd.s32 1, %s4236_s21  }
 0x546   : > { %p14_p4 = scmp.ge.s32.totalorder %s17_s21, 4  }
 0x548   :  { %16 = sbr.rel (!%p14_p4) target bundleno = 1 (0x1), region = 87 }

</bundles_post_ra>
